<compile_context>
chip_gen: v5e
topology: v5e:2x2
jax: 0.10.0
libtpu: 0.0.40
codegen_flags: <defaults>
</compile_context>

<pallas_src>
import functools

import jax
import jax.numpy as jnp
from jax.experimental import pallas as pl
from jax.experimental.pallas import tpu as pltpu

K_STEM = 7                      # stem Conv1d kernel size (1 -> 64 channels)
K_CONV = 3                      # second Conv1d kernel size (64 -> 64 channels)
K_TAPS = K_STEM + K_CONV - 1    # 9 input taps per output position
C_HID = 64
C_EXP = K_CONV * C_HID          # 192 "expanded" stem channels (3 shifted copies)
FC1 = 32
N_CLASSES = 3
OUT_PAD = 128                   # lane-dense padded logits width


def sleep_stage_kernel(x_ref, w_big_ref, b_big_ref, w_fold_ref, b1_ref,
                       wfc1_ref, bfc1_ref, wfc2_ref, bfc2_ref,
                       out_ref, acc_ref, *, inv_len, valid_last, need_mask):
    l = pl.program_id(1)
    n_l = pl.num_programs(1)
    bt = x_ref.shape[0]
    lt = x_ref.shape[2]

    @pl.when(l == 0)
    def _init():
        acc_ref[...] = jnp.zeros_like(acc_ref)

    x = x_ref[...]                                                     # (bt, 9, lt) bf16

    # stem Conv1d(1->64, k=7) + ReLU, expanded at the 3 conv-tap shifts (192 channels):
    # one batched bf16 MXU matmul over the 9 taps, channels-first so length stays on lanes.
    w_big = jnp.broadcast_to(w_big_ref[...], (bt,) + tuple(w_big_ref.shape))
    h1 = jnp.einsum("bej,bjl->bel", w_big, x,
                    preferred_element_type=jnp.float32)                # (bt, 192, lt) f32
    h1 = jnp.maximum(h1 + b_big_ref[...][None], 0.0).astype(jnp.bfloat16)

    # Conv1d(64->64, k=3) + ReLU with all 3 taps folded into one K=192 batched matmul.
    w_fold = jnp.broadcast_to(w_fold_ref[...], (bt,) + tuple(w_fold_ref.shape))
    h2 = jnp.einsum("bce,bel->bcl", w_fold, h1,
                    preferred_element_type=jnp.float32)                # (bt, 64, lt) f32
    h2 = jnp.maximum(h2 + b1_ref[...][None], 0.0)

    # AdaptiveAvgPool1d(1) fused: accumulate lane-sums; mask only the last length tile.
    if need_mask:
        @pl.when(l < n_l - 1)
        def _acc_full():
            acc_ref[...] += jnp.sum(h2, axis=2)

        @pl.when(l == n_l - 1)
        def _acc_masked():
            pos = jax.lax.broadcasted_iota(jnp.int32, (1, 1, lt), 2)
            acc_ref[...] += jnp.sum(
                h2 * (pos < valid_last).astype(jnp.float32), axis=2)
    else:
        acc_ref[...] += jnp.sum(h2, axis=2)

    @pl.when(l == n_l - 1)
    def _finalize():
        g = acc_ref[...] * inv_len                                     # (bt, 64) global avg pool
        f1 = jnp.maximum(
            jnp.dot(g, wfc1_ref[...], preferred_element_type=jnp.float32)
            + bfc1_ref[...], 0.0)
        # TODO(synk): nn.Dropout(p=0.5) is identity in eval mode; training-mode RNG dropout not implemented.
        out_ref[...] = jnp.dot(f1, wfc2_ref[...],
                               preferred_element_type=jnp.float32) + bfc2_ref[...]


def sleep_stage_classifier(x, p, *, b_tile=8, l_tile=1024, min_batch_blocks=1):
    """x: (B, 1, L) float32 (PyTorch NCW). Returns (B, 3) logits."""
    assert b_tile % 8 == 0 and l_tile % 128 == 0
    xs = x[:, 0, :].astype(jnp.float32)                    # (B, L)
    B, L = xs.shape
    L2 = L - (K_STEM + K_CONV - 2)                         # valid-conv output length
    assert L2 >= 1, "signal too short for k=7 then k=3 valid convolutions"

    l_tile = max(128, min(l_tile, pl.cdiv(L2, 128) * 128)) # don't over-tile tiny signals
    nL = pl.cdiv(L2, l_tile)
    L2p = nL * l_tile
    # min_batch_blocks=2 keeps both v7x TensorCores busy when B <= b_tile.
    nB = max(pl.cdiv(B, b_tile), min_batch_blocks)
    Bp = nB * b_tile

    # ---- SimpleAdaptiveNorm: stats MLP + scale/shift, hoisted to plain JAX ----
    mean = xs.mean(axis=1, keepdims=True)
    std = jnp.std(xs, axis=1, keepdims=True, ddof=1)       # torch.std default: unbiased
    mx = xs.max(axis=1, keepdims=True)
    mn = xs.min(axis=1, keepdims=True)
    stats = jnp.concatenate([mean, std, mx, mn], axis=1)   # (B, 4)
    h = jax.nn.relu(stats @ p["wa1"] + p["ba1"])
    adj = h @ p["wa2"] + p["ba2"]
    scale = p["norm_scale"] + adj[:, 0:1]                  # (B, 1)
    shift = p["norm_shift"] + adj[:, 1:2]                  # (B, 1)
    xn = (xs * scale + shift).astype(jnp.bfloat16)         # normalised signal, bf16

    # ---- fold conv weights (channels-first orientation), cast heavy ones to bf16 ----
    # w_big[64*k + c, j] = w_stem[j-k, c]  -> expanded stem output holds out1 at shifts 0..2
    w_big = jnp.zeros((C_EXP, K_TAPS), jnp.float32)
    for k in range(K_CONV):
        w_big = w_big.at[k * C_HID:(k + 1) * C_HID, k:k + K_STEM].set(p["w_stem"].T)
    b_big = jnp.tile(p["b_stem"].reshape(-1), K_CONV).reshape(C_EXP, 1)       # (192, 1)
    w_fold = p["w1"].transpose(2, 0, 1).reshape(C_HID, C_EXP)  # [c_out, 64*k + c_in]
    b1 = p["b1"].reshape(C_HID, 1)                                            # (64, 1)
    w_big = w_big.astype(jnp.bfloat16)
    w_fold = w_fold.astype(jnp.bfloat16)

    # fc2 zero-padded to a lane-dense 128-wide output slab
    wfc2p = jnp.zeros((FC1, OUT_PAD), jnp.float32).at[:, :N_CLASSES].set(p["wfc2"])
    bfc2p = jnp.zeros((1, OUT_PAD), jnp.float32).at[:, :N_CLASSES].set(p["bfc2"])

    # ---- batch/length pad + tap-major im2col: (Bp, nL, 9, l_tile), lane-dense length ----
    xn_p = jnp.pad(xn, ((0, Bp - B), (0, L2p + K_TAPS - 1 - L)))
    xcol = jnp.stack(
        [xn_p[:, j:j + L2p].reshape(Bp, nL, l_tile) for j in range(K_TAPS)],
        axis=2)                                            # (Bp, nL, 9, l_tile) bf16

    grid = (Bp // b_tile, nL)
    kernel = functools.partial(
        sleep_stage_kernel,
        inv_len=1.0 / L2,
        valid_last=int(L2 - (nL - 1) * l_tile),
        need_mask=(L2p != L2))

    flops = (2 * Bp * L2p * (K_TAPS * C_EXP + C_EXP * C_HID)
             + 2 * Bp * (C_HID * FC1 + FC1 * OUT_PAD))
    bytes_accessed = (xcol.size * 2 + Bp * OUT_PAD * 4
                      + (C_EXP * K_TAPS + C_HID * C_EXP) * 2
                      + (C_EXP + C_HID + FC1 + OUT_PAD
                         + C_HID * FC1 + FC1 * OUT_PAD) * 4)

    # VMEM-need estimate per grid step: h1 (f32 + bf16), h2 (f32 + masked copy),
    # double-buffered bf16 input (9 -> 16 sublane pad), weights/biases/broadcasts slack.
    elems = b_tile * l_tile
    vmem_est = (elems * (2 * C_EXP * 4 + C_EXP * 2 + 2 * C_HID * 4)
                + 2 * b_tile * 16 * l_tile * 2
                + (6 << 20))
    vmem_limit = int(min(max(vmem_est, 16 << 20), 100 << 20))   # ~26 MiB at defaults

    out_p = pl.pallas_call(
        kernel,
        out_shape=jax.ShapeDtypeStruct((Bp, OUT_PAD), jnp.float32),
        grid_spec=pltpu.PrefetchScalarGridSpec(
            num_scalar_prefetch=0,
            grid=grid,
            in_specs=[
                pl.BlockSpec((b_tile, None, K_TAPS, l_tile), lambda b, l: (b, l, 0, 0)),
                pl.BlockSpec((C_EXP, K_TAPS), lambda b, l: (0, 0)),
                pl.BlockSpec((C_EXP, 1), lambda b, l: (0, 0)),
                pl.BlockSpec((C_HID, C_EXP), lambda b, l: (0, 0)),
                pl.BlockSpec((C_HID, 1), lambda b, l: (0, 0)),
                pl.BlockSpec((C_HID, FC1), lambda b, l: (0, 0)),
                pl.BlockSpec((1, FC1), lambda b, l: (0, 0)),
                pl.BlockSpec((FC1, OUT_PAD), lambda b, l: (0, 0)),
                pl.BlockSpec((1, OUT_PAD), lambda b, l: (0, 0)),
            ],
            out_specs=pl.BlockSpec((b_tile, OUT_PAD), lambda b, l: (b, 0)),
            scratch_shapes=[pltpu.VMEM((b_tile, C_HID), jnp.float32)],
        ),
        compiler_params=pltpu.CompilerParams(
            dimension_semantics=("parallel", "arbitrary"),
            vmem_limit_bytes=vmem_limit,
        ),
        cost_estimate=pl.CostEstimate(
            flops=int(flops), transcendentals=0, bytes_accessed=int(bytes_accessed)),
    )(xcol, w_big, b_big, w_fold, b1,
      p["wfc1"], p["bfc1"], wfc2p, bfc2p)

    return out_p[:B, :N_CLASSES]


def init_params(key):
    ks = jax.random.split(key, 10)

    def w(k, shape, scale=0.1):
        return jax.random.normal(k, shape, jnp.float32) * scale

    return dict(
        # SimpleAdaptiveNorm
        norm_scale=jnp.ones((1, 1), jnp.float32),
        norm_shift=jnp.zeros((1, 1), jnp.float32),
        wa1=w(ks[0], (4, 8)),   ba1=w(ks[1], (1, 8)),      # Linear(4, 8)   (in, out)
        wa2=w(ks[2], (8, 2)),   ba2=w(ks[3], (1, 2)),      # Linear(8, 2)
        # stem Conv1d(1, 64, 7): torch weight (64, 1, 7) -> (7, 64)
        w_stem=w(ks[4], (K_STEM, C_HID)), b_stem=w(ks[5], (1, C_HID)),
        # Conv1d(64, 64, 3): torch weight (64, 64, 3) -> (3, in, out)
        w1=w(ks[6], (K_CONV, C_HID, C_HID)), b1=w(ks[7], (1, C_HID)),
        # fc1 / fc2, (in, out)
        wfc1=w(ks[8], (C_HID, FC1)), bfc1=jnp.zeros((1, FC1), jnp.float32),
        wfc2=w(ks[9], (FC1, N_CLASSES)), bfc2=jnp.zeros((1, N_CLASSES), jnp.float32),
    )


def reference(x, p):
    """Plain-JAX (f32) replica of the PyTorch forward pass for validation."""
    xs = x[:, 0, :]
    B, L = xs.shape
    mean = xs.mean(axis=1, keepdims=True)
    std = jnp.std(xs, axis=1, keepdims=True, ddof=1)
    mx = xs.max(axis=1, keepdims=True)
    mn = xs.min(axis=1, keepdims=True)
    stats = jnp.concatenate([mean, std, mx, mn], axis=1)
    h = jax.nn.relu(stats @ p["wa1"] + p["ba1"])
    adj = h @ p["wa2"] + p["ba2"]
    xn = xs * (p["norm_scale"][0, 0] + adj[:, 0:1]) + (p["norm_shift"][0, 0] + adj[:, 1:2])
    L1 = L - (K_STEM - 1)
    out1 = jnp.zeros((B, L1, C_HID), jnp.float32)
    for k in range(K_STEM):
        out1 = out1 + xn[:, k:k + L1, None] * p["w_stem"][k][None, None, :]
    out1 = jax.nn.relu(out1 + p["b_stem"][None])
    L2 = L1 - (K_CONV - 1)
    out2 = jnp.zeros((B, L2, C_HID), jnp.float32)
    for k in range(K_CONV):
        out2 = out2 + out1[:, k:k + L2, :] @ p["w1"][k]
    out2 = jax.nn.relu(out2 + p["b1"][None])
    g = out2.mean(axis=1)
    f1 = jax.nn.relu(g @ p["wfc1"] + p["bfc1"])
    return f1 @ p["wfc2"] + p["bfc2"]


if __name__ == "__main__":
    key = jax.random.PRNGKey(0)
    kx, kp = jax.random.split(key)
    # Small but non-trivial: B=10 pads to 16 (2 batch tiles); L=300 -> L2=292 splits into
    # 3 length tiles of 128 with masking on the last tile (exercises streaming + mask).
    B, L = 10, 300
    x = jax.random.normal(kx, (B, 1, L), jnp.float32)
    params = init_params(kp)

    out = sleep_stage_classifier(x, params, b_tile=8, l_tile=128)
    out = jax.block_until_ready(out)

    ref = reference(x, params)
    assert out.shape == (B, N_CLASSES)
    # bf16 matmul operands (f32 accumulation) -> loosen tolerance vs. the f32 reference.
    assert jnp.allclose(out, ref, atol=2e-2, rtol=2e-2), (out, ref)
    print("KERNEL_OK")
</pallas_src>

<mosaic_0001>
module attributes {stable_mosaic.version = 11 : i64} {
  func.func @sleep_stage_kernel(%arg0: i32, %arg1: i32, %arg2: memref<8x1x9x128xbf16, #tpu.memory_space<vmem>>, %arg3: memref<192x9xbf16, #tpu.memory_space<vmem>>, %arg4: memref<192x1xf32, #tpu.memory_space<vmem>>, %arg5: memref<64x192xbf16, #tpu.memory_space<vmem>>, %arg6: memref<64x1xf32, #tpu.memory_space<vmem>>, %arg7: memref<64x32xf32, #tpu.memory_space<vmem>>, %arg8: memref<1x32xf32, #tpu.memory_space<vmem>>, %arg9: memref<32x128xf32, #tpu.memory_space<vmem>>, %arg10: memref<1x128xf32, #tpu.memory_space<vmem>>, %arg11: memref<8x128xf32, #tpu.memory_space<vmem>>, %arg12: memref<8x64xf32, #tpu.memory_space<vmem>>) attributes {dimension_semantics = [#tpu.dimension_semantics<parallel>, #tpu.dimension_semantics<arbitrary>], iteration_bounds = array<i64: 2, 3>, scalar_prefetch = 0 : i64, scratch_operands = 1 : i64, tpu.core_type = #tpu.core_type<tc>, window_params = [{transform_indices = @transform_0, window_bounds = array<i64: 8, 1, 9, 128>}, {pipeline_mode = #tpu.pipeline_mode<synchronous>, transform_indices = @transform_1, window_bounds = array<i64: 192, 9>}, {pipeline_mode = #tpu.pipeline_mode<synchronous>, transform_indices = @transform_2, window_bounds = array<i64: 192, 1>}, {pipeline_mode = #tpu.pipeline_mode<synchronous>, transform_indices = @transform_3, window_bounds = array<i64: 64, 192>}, {pipeline_mode = #tpu.pipeline_mode<synchronous>, transform_indices = @transform_4, window_bounds = array<i64: 64, 1>}, {pipeline_mode = #tpu.pipeline_mode<synchronous>, transform_indices = @transform_5, window_bounds = array<i64: 64, 32>}, {pipeline_mode = #tpu.pipeline_mode<synchronous>, transform_indices = @transform_6, window_bounds = array<i64: 1, 32>}, {pipeline_mode = #tpu.pipeline_mode<synchronous>, transform_indices = @transform_7, window_bounds = array<i64: 32, 128>}, {pipeline_mode = #tpu.pipeline_mode<synchronous>, transform_indices = @transform_8, window_bounds = array<i64: 1, 128>}, {transform_indices = @transform_9, window_bounds = array<i64: 8, 128>}]} {
    %c0_i32 = arith.constant 0 : i32
    %0 = arith.cmpi eq, %arg1, %c0_i32 : i32
    %1 = arith.extui %0 : i1 to i32
    %c0_i32_0 = arith.constant 0 : i32
    %2 = arith.cmpi ne, %1, %c0_i32_0 : i32
    scf.if %2 {
      %cst_20 = arith.constant 0.000000e+00 : f32
      %35 = vector.broadcast %cst_20 : f32 to vector<8x64xf32>
      %c0_21 = arith.constant 0 : index
      %c0_22 = arith.constant 0 : index
      %36 = vector.load %arg12[%c0_21, %c0_22] : memref<8x64xf32, #tpu.memory_space<vmem>>, vector<8x64xf32>
      tpu.vector_store %arg12[%c0_21, %c0_22], %35 {strides = array<i32>} : memref<8x64xf32, #tpu.memory_space<vmem>>, vector<8x64xf32>,
    } else {
    }
    %c0 = arith.constant 0 : index
    %c0_1 = arith.constant 0 : index
    %c0_2 = arith.constant 0 : index
    %c0_3 = arith.constant 0 : index
    %3 = vector.load %arg2[%c0, %c0_1, %c0_2, %c0_3] : memref<8x1x9x128xbf16, #tpu.memory_space<vmem>>, vector<8x1x9x128xbf16>
    %4 = vector.shape_cast %3 : vector<8x1x9x128xbf16> to vector<8x9x128xbf16>
    %c0_4 = arith.constant 0 : index
    %c0_5 = arith.constant 0 : index
    %5 = vector.load %arg3[%c0_4, %c0_5] : memref<192x9xbf16, #tpu.memory_space<vmem>>, vector<192x9xbf16>
    %6 = vector.shape_cast %5 : vector<192x9xbf16> to vector<1x192x9xbf16>
    %7 = vector.broadcast %6 : vector<1x192x9xbf16> to vector<8x192x9xbf16>
    "tpu.trace_start"() <{level = 10 : i32, message = "bej,bjl->bel"}> : () -> ()
    %cst = arith.constant dense<0.000000e+00> : vector<8x192x128xf32>
    %8 = tpu.matmul %7, %4, %cst {dimension_numbers = #tpu.dot_dimension_numbers<[2], [1], [1], [2], [0, 0, 0, 1, 1, 2], [0], [0]>} : vector<8x192x9xbf16>, vector<8x9x128xbf16>, vector<8x192x128xf32> -> vector<8x192x128xf32>
    "tpu.trace_stop"() : () -> ()
    %c0_6 = arith.constant 0 : index
    %c0_7 = arith.constant 0 : index
    %9 = vector.load %arg4[%c0_6, %c0_7] : memref<192x1xf32, #tpu.memory_space<vmem>>, vector<192x1xf32>
    %10 = vector.shape_cast %9 : vector<192x1xf32> to vector<1x192x1xf32>
    %11 = vector.broadcast %10 : vector<1x192x1xf32> to vector<8x192x128xf32>
    %12 = arith.addf %8, %11 : vector<8x192x128xf32>
    %cst_8 = arith.constant 0.000000e+00 : f32
    %13 = vector.broadcast %cst_8 : f32 to vector<8x192x128xf32>
    %14 = arith.maximumf %12, %13 : vector<8x192x128xf32>
    %15 = arith.truncf %14 : vector<8x192x128xf32> to vector<8x192x128xbf16>
    %c0_9 = arith.constant 0 : index
    %c0_10 = arith.constant 0 : index
    %16 = vector.load %arg5[%c0_9, %c0_10] : memref<64x192xbf16, #tpu.memory_space<vmem>>, vector<64x192xbf16>
    %17 = vector.shape_cast %16 : vector<64x192xbf16> to vector<1x64x192xbf16>
    %18 = vector.broadcast %17 : vector<1x64x192xbf16> to vector<8x64x192xbf16>
    "tpu.trace_start"() <{level = 10 : i32, message = "bce,bel->bcl"}> : () -> ()
    %cst_11 = arith.constant dense<0.000000e+00> : vector<8x64x128xf32>
    %19 = tpu.matmul %18, %15, %cst_11 {dimension_numbers = #tpu.dot_dimension_numbers<[2], [1], [1], [2], [0, 0, 0, 1, 1, 2], [0], [0]>} : vector<8x64x192xbf16>, vector<8x192x128xbf16>, vector<8x64x128xf32> -> vector<8x64x128xf32>
    "tpu.trace_stop"() : () -> ()
    %c0_12 = arith.constant 0 : index
    %c0_13 = arith.constant 0 : index
    %20 = vector.load %arg6[%c0_12, %c0_13] : memref<64x1xf32, #tpu.memory_space<vmem>>, vector<64x1xf32>
    %21 = vector.shape_cast %20 : vector<64x1xf32> to vector<1x64x1xf32>
    %22 = vector.broadcast %21 : vector<1x64x1xf32> to vector<8x64x128xf32>
    %23 = arith.addf %19, %22 : vector<8x64x128xf32>
    %cst_14 = arith.constant 0.000000e+00 : f32
    %24 = vector.broadcast %cst_14 : f32 to vector<8x64x128xf32>
    %25 = arith.maximumf %23, %24 : vector<8x64x128xf32>
    %c2_i32 = arith.constant 2 : i32
    %26 = arith.cmpi slt, %arg1, %c2_i32 : i32
    %27 = arith.extui %26 : i1 to i32
    %c0_i32_15 = arith.constant 0 : i32
    %28 = arith.cmpi ne, %27, %c0_i32_15 : i32
    scf.if %28 {
      %c0_20 = arith.constant 0 : index
      %c0_21 = arith.constant 0 : index
      %35 = vector.load %arg12[%c0_20, %c0_21] : memref<8x64xf32, #tpu.memory_space<vmem>>, vector<8x64xf32>
      %cst_22 = arith.constant dense<0.000000e+00> : vector<8x64xf32>
      %36 = vector.multi_reduction <add>, %25, %cst_22 [2] : vector<8x64x128xf32> to vector<8x64xf32>
      %37 = arith.addf %35, %36 : vector<8x64xf32>
      %c0_23 = arith.constant 0 : index
      %c0_24 = arith.constant 0 : index
      %38 = vector.load %arg12[%c0_23, %c0_24] : memref<8x64xf32, #tpu.memory_space<vmem>>, vector<8x64xf32>
      tpu.vector_store %arg12[%c0_23, %c0_24], %37 {strides = array<i32>} : memref<8x64xf32, #tpu.memory_space<vmem>>, vector<8x64xf32>,
    } else {
    }
    %c2_i32_16 = arith.constant 2 : i32
    %29 = arith.cmpi eq, %arg1, %c2_i32_16 : i32
    %30 = arith.extui %29 : i1 to i32
    %c0_i32_17 = arith.constant 0 : i32
    %31 = arith.cmpi ne, %30, %c0_i32_17 : i32
    scf.if %31 {
      %35 = tpu.iota {dimensions = array<i32: 2>} : vector<1x1x128xi32>
      %c0_20 = arith.constant 0 : index
      %c0_21 = arith.constant 0 : index
      %36 = vector.load %arg12[%c0_20, %c0_21] : memref<8x64xf32, #tpu.memory_space<vmem>>, vector<8x64xf32>
      %c36_i32 = arith.constant 36 : i32
      %37 = vector.broadcast %c36_i32 : i32 to vector<1x1x128xi32>
      %38 = arith.cmpi slt, %35, %37 : vector<1x1x128xi32>
      %39 = arith.extui %38 : vector<1x1x128xi1> to vector<1x1x128xi32>
      %40 = arith.sitofp %39 : vector<1x1x128xi32> to vector<1x1x128xf32>
      %41 = vector.broadcast %40 : vector<1x1x128xf32> to vector<8x64x128xf32>
      %42 = arith.mulf %25, %41 : vector<8x64x128xf32>
      %cst_22 = arith.constant dense<0.000000e+00> : vector<8x64xf32>
      %43 = vector.multi_reduction <add>, %42, %cst_22 [2] : vector<8x64x128xf32> to vector<8x64xf32>
      %44 = arith.addf %36, %43 : vector<8x64xf32>
      %c0_23 = arith.constant 0 : index
      %c0_24 = arith.constant 0 : index
      %45 = vector.load %arg12[%c0_23, %c0_24] : memref<8x64xf32, #tpu.memory_space<vmem>>, vector<8x64xf32>
      tpu.vector_store %arg12[%c0_23, %c0_24], %44 {strides = array<i32>} : memref<8x64xf32, #tpu.memory_space<vmem>>, vector<8x64xf32>,
    } else {
    }
    %c2_i32_18 = arith.constant 2 : i32
    %32 = arith.cmpi eq, %arg1, %c2_i32_18 : i32
    %33 = arith.extui %32 : i1 to i32
    %c0_i32_19 = arith.constant 0 : i32
    %34 = arith.cmpi ne, %33, %c0_i32_19 : i32
    scf.if %34 {
      %c0_20 = arith.constant 0 : index
      %c0_21 = arith.constant 0 : index
      %35 = vector.load %arg12[%c0_20, %c0_21] : memref<8x64xf32, #tpu.memory_space<vmem>>, vector<8x64xf32>
      %cst_22 = arith.constant 0.00342465751 : f32
      %36 = vector.broadcast %cst_22 : f32 to vector<8x64xf32>
      %37 = arith.mulf %35, %36 : vector<8x64xf32>
      %c0_23 = arith.constant 0 : index
      %c0_24 = arith.constant 0 : index
      %38 = vector.load %arg7[%c0_23, %c0_24] : memref<64x32xf32, #tpu.memory_space<vmem>>, vector<64x32xf32>
      %cst_25 = arith.constant dense<0.000000e+00> : vector<8x32xf32>
      %39 = tpu.matmul %37, %38, %cst_25 {dimension_numbers = #tpu.dot_dimension_numbers<[1], [0], [0], [1], [0, 0, 1, 1], [], []>} : vector<8x64xf32>, vector<64x32xf32>, vector<8x32xf32> -> vector<8x32xf32>
      %c0_26 = arith.constant 0 : index
      %c0_27 = arith.constant 0 : index
      %40 = vector.load %arg8[%c0_26, %c0_27] : memref<1x32xf32, #tpu.memory_space<vmem>>, vector<1x32xf32>
      %41 = vector.broadcast %40 : vector<1x32xf32> to vector<8x32xf32>
      %42 = arith.addf %39, %41 : vector<8x32xf32>
      %cst_28 = arith.constant 0.000000e+00 : f32
      %43 = vector.broadcast %cst_28 : f32 to vector<8x32xf32>
      %44 = arith.maximumf %42, %43 : vector<8x32xf32>
      %c0_29 = arith.constant 0 : index
      %c0_30 = arith.constant 0 : index
      %45 = vector.load %arg9[%c0_29, %c0_30] : memref<32x128xf32, #tpu.memory_space<vmem>>, vector<32x128xf32>
      %cst_31 = arith.constant dense<0.000000e+00> : vector<8x128xf32>
      %46 = tpu.matmul %44, %45, %cst_31 {dimension_numbers = #tpu.dot_dimension_numbers<[1], [0], [0], [1], [0, 0, 1, 1], [], []>} : vector<8x32xf32>, vector<32x128xf32>, vector<8x128xf32> -> vector<8x128xf32>
      %c0_32 = arith.constant 0 : index
      %c0_33 = arith.constant 0 : index
      %47 = vector.load %arg10[%c0_32, %c0_33] : memref<1x128xf32, #tpu.memory_space<vmem>>, vector<1x128xf32>
      %48 = vector.broadcast %47 : vector<1x128xf32> to vector<8x128xf32>
      %49 = arith.addf %46, %48 : vector<8x128xf32>
      %c0_34 = arith.constant 0 : index
      %c0_35 = arith.constant 0 : index
      %50 = vector.load %arg11[%c0_34, %c0_35] : memref<8x128xf32, #tpu.memory_space<vmem>>, vector<8x128xf32>
      tpu.vector_store %arg11[%c0_34, %c0_35], %49 {strides = array<i32>} : memref<8x128xf32, #tpu.memory_space<vmem>>, vector<8x128xf32>,
    } else {
    }
    return
  }
  func.func @transform_0(%arg0: i32, %arg1: i32) -> (i32, i32, i32, i32) {
    %c0_i32 = arith.constant 0 : i32
    %c0_i32_0 = arith.constant 0 : i32
    %c0_i32_1 = arith.constant 0 : i32
    return %arg0, %arg1, %c0_i32, %c0_i32_0 : i32, i32, i32, i32
  }
  func.func @transform_1(%arg0: i32, %arg1: i32) -> (i32, i32) {
    %c0_i32 = arith.constant 0 : i32
    %c0_i32_0 = arith.constant 0 : i32
    %c0_i32_1 = arith.constant 0 : i32
    return %c0_i32, %c0_i32_0 : i32, i32
  }
  func.func @transform_2(%arg0: i32, %arg1: i32) -> (i32, i32) {
    %c0_i32 = arith.constant 0 : i32
    %c0_i32_0 = arith.constant 0 : i32
    %c0_i32_1 = arith.constant 0 : i32
    return %c0_i32, %c0_i32_0 : i32, i32
  }
  func.func @transform_3(%arg0: i32, %arg1: i32) -> (i32, i32) {
    %c0_i32 = arith.constant 0 : i32
    %c0_i32_0 = arith.constant 0 : i32
    %c0_i32_1 = arith.constant 0 : i32
    return %c0_i32, %c0_i32_0 : i32, i32
  }
  func.func @transform_4(%arg0: i32, %arg1: i32) -> (i32, i32) {
    %c0_i32 = arith.constant 0 : i32
    %c0_i32_0 = arith.constant 0 : i32
    %c0_i32_1 = arith.constant 0 : i32
    return %c0_i32, %c0_i32_0 : i32, i32
  }
  func.func @transform_5(%arg0: i32, %arg1: i32) -> (i32, i32) {
    %c0_i32 = arith.constant 0 : i32
    %c0_i32_0 = arith.constant 0 : i32
    %c0_i32_1 = arith.constant 0 : i32
    return %c0_i32, %c0_i32_0 : i32, i32
  }
  func.func @transform_6(%arg0: i32, %arg1: i32) -> (i32, i32) {
    %c0_i32 = arith.constant 0 : i32
    %c0_i32_0 = arith.constant 0 : i32
    %c0_i32_1 = arith.constant 0 : i32
    return %c0_i32, %c0_i32_0 : i32, i32
  }
  func.func @transform_7(%arg0: i32, %arg1: i32) -> (i32, i32) {
    %c0_i32 = arith.constant 0 : i32
    %c0_i32_0 = arith.constant 0 : i32
    %c0_i32_1 = arith.constant 0 : i32
    return %c0_i32, %c0_i32_0 : i32, i32
  }
  func.func @transform_8(%arg0: i32, %arg1: i32) -> (i32, i32) {
    %c0_i32 = arith.constant 0 : i32
    %c0_i32_0 = arith.constant 0 : i32
    %c0_i32_1 = arith.constant 0 : i32
    return %c0_i32, %c0_i32_0 : i32, i32
  }
  func.func @transform_9(%arg0: i32, %arg1: i32) -> (i32, i32) {
    %c0_i32 = arith.constant 0 : i32
    %c0_i32_0 = arith.constant 0 : i32
    return %arg0, %c0_i32 : i32, i32
  }
}

</mosaic_0001>

<bundles_post_ra>
// kernel: tpu_custom_call.1
= control target key start
LH: loop header
LB: loop body
LE: loop exit
PB: predicated region body
PF: predicated region fallthrough
CT: control target
= control target key end

     0   :  { %s6783_s0 = inlined_call_operand.vmem [shape: bf16[16,3,9,128], index: 0, kind: input, shape index: {}]   ;;  %s6784_s1 = inlined_call_operand.vmem [shape: bf16[192,9], index: 1, kind: input, shape index: {}]   ;;  %s6785_s2 = inlined_call_operand.vmem [shape: f32[192,1], index: 2, kind: input, shape index: {}]   ;;  %s6786_s3 = inlined_call_operand.vmem [shape: bf16[64,192], index: 3, kind: input, shape index: {}]   ;;  %s6787_s4 = inlined_call_operand.vmem [shape: f32[64,1], index: 4, kind: input, shape index: {}]   ;;  %s6788_s5 = inlined_call_operand.vmem [shape: f32[64,32], index: 5, kind: input, shape index: {}]   ;;  %s6789_s6 = inlined_call_operand.vmem [shape: f32[1,32], index: 6, kind: input, shape index: {}]   ;;  %s6790_s7 = inlined_call_operand.vmem [shape: f32[32,128], index: 7, kind: input, shape index: {}]   ;;  %s6791_s8 = inlined_call_operand.vmem [shape: f32[1,128], index: 8, kind: input, shape index: {}]   ;;  %s6792_s9 = inlined_call_operand.hbm [shape: f32[16,128], index: 9, kind: output, shape index: {}]  }
   0x1   :  { %6879 = sst [smem:[#allocation50_spill]] %s6783_s0 }
   0x2   :  { %6880 = sst [smem:[#allocation51_spill]] %s6784_s1 }
   0x3   :  { %6881 = sst [smem:[#allocation52_spill]] %s6792_s9 }
   0x4   :  { %14 = vsyncpa [#allocation5], 0 }
   0x5   :  { %16 = vsyncpa [#allocation5 + $0x1], 0  ;;  %s4445_s30 = smov 0   ;;  %s4447_s10 = smov 0  }
   0x6   :  { %s4449_s11 = smov 0   ;;  %s4451_s12 = smov 0  }
   0x7   :  { %s4453_s13 = smov 0   ;;  %s4455_s14 = smov 0  }
   0x8   :  { %s4457_s15 = smov 0   ;;  %s4459_s16 = smov 0  }
   0x9   :  { %s4461_s17 = smov 0   ;;  %s4463_s18 = smov 0  }
   0xa LB: > { %6882 = sst [smem:[#allocation7_spill]] %s4353_s30  ;;  %s3887_s19 = sadd.s32 4294967295, %s4389_s18   ;;  %s4389_s18 = sphi %s4463_s18, %s22_s18   ;;  %s4385_s17 = sphi %s4461_s17, %s7212_s17   ;;  %s4381_s16 = sphi %s4459_s16, %s7211_s16   ;;  %s4377_s15 = sphi %s4457_s15, %s7210_s15   ;;  %s4373_s14 = sphi %s4455_s14, %s7209_s14   ;;  %s4369_s13 = sphi %s4453_s13, %s7208_s13   ;;  %s4365_s12 = sphi %s4451_s12, %s7207_s12   ;;  %s4361_s11 = sphi %s4449_s11, %s7206_s11   ;;  %s4357_s10 = sphi %s4447_s10, %s7205_s10   ;;  %s4353_s30 = sphi %s4445_s30, %s7204_s30  }
   0xb   : > { %s3888_s20 = sadd.s32 4294967294, %s4389_s18   ;;  %s31_s21 = sadd.s32 1, %s4381_s16 }
   0xc   : > { %s34_s22 = sadd.s32 1, %s4385_s17  ;;  %p32_p0 = scmp.ge.s32.totalorder %s31_s21, 3 }
   0xd   : > { %s43_s23 = sadd.s32 1, %s4369_s13  ;;  %p50_p1 = scmp.ne.s32.totalorder %s4369_s13, %s4365_s12 }
   0xe   : > { %p51_p2 = scmp.eq.s32.totalorder %s4389_s18, 0  ;;  %s7214_s21 = smov (%p32_p0, %s31_s21), 0 }
   0xf   : > { %6883 = sst [smem:[#allocation8_spill]] %s7214_s21  ;;  %s7216_s22 = smov (!%p32_p0, %s34_s22), %s4385_s17 }
  0x10   : > { %s39_s24 = ssub.s32 %s4381_s16, %s7214_s21  ;;  %p4508_p3 = por %p51_p2, %p50_p1 }
  0x11   : > { %p36_p4 = scmp.ge.s32.totalorder %s7216_s22, 2  ;;  %s237_s26 = sadd.s32 1, %s4361_s11 }
  0x12   : > { %p247_p5 = scmp.ne.s32.totalorder %s4361_s11, %s4357_s10  ;;  %p248_p6 = scmp.eq.s32.totalorder %s3887_s19, 5 }
  0x13   : > { %s7218_s22 = smov (%p36_p4, %s7216_s22), 0  ;;  %p253_p8 = scmp.ne.s32.totalorder %s4357_s10, %s4353_s30 }
  0x14   : > { %6885 = sst [smem:[#allocation9_spill]] %s7218_s22  ;;  %p4517_p7 = por %p248_p6, %p247_p5 }
  0x15   : > { %s38_s28 = ssub.s32 %s4385_s17, %s7218_s22  ;;  %p254_p9 = scmp.eq.s32.totalorder %s3888_s20, 5 }
  0x16   : > { %s40_s29 = sor.u32 %s39_s24, %s38_s28  ;;  %p235_p10 = scmp.eq.s32.totalorder %s38_s28, 0 }
  0x17   : > { %p41_p11 = scmp.eq.s32.totalorder %s40_s29, 0  ;;  %p4525_p12 = por %p254_p9, %p253_p8 }
  0x18   : > { %s4530_s9 = scalar_select %p235_p10, %s4361_s11, %s237_s26  }
  0x19   : > { %s6887_s21 = scalar_select %p4525_p12, 1, 0 }
  0x1a   : > { %s4533_s19 = scalar_select %p41_p11, %s4369_s13, %s43_s23  }
  0x1b   : > { %6888 = sst [smem:[#allocation10_spill]] %s6887_s21  ;;  %p3890_p13 = scmp.ge.s32.totalorder %s4389_s18, 6 }
  0x1c   : > { %6889 = sst [smem:[#allocation11_spill]] %s4533_s19 }
  0x1d   : > { %294 = sbr.rel (%p3890_p13) target bundleno = 52 (0x34), region = 48 }
  0x22   : > { %297 = sbr.rel (!%p4508_p3) target bundleno = 52 (0x34), region = 52  ;;  %s299_s20 = sand.u32 (%p4508_p3), 1, %s4369_s13  }
  0x23   : > { %s3893_s24 = sshll.u32 (%p4508_p3), %s4381_s16, 1  ;;  %s3891_s28 = sshll.u32 (%p4508_p3), %s299_s20, 6 }
  0x24   : > { %s4177_s29 = smul.u32 (%p4508_p3), 48, %s4385_s17  ;;  %s6890_s0 = sld [smem:[#allocation50_spill]] (%p4508_p3) }
  0x25   : > { %s301_s19 = scalar_lea.vmem (%p4508_p3), [#allocation3], %s3891_s28 }
  0x26   : > { %s305_s22 = sadd.s32 (%p4508_p3), %s4177_s29, %s3893_s24 }
  0x27   : > { %s3895_s30 = sshll.u32 %s305_s22, 2 }
  0x2a   : > { %s307_s23 = scalar_lea.vmem %s6890_s0, %s3895_s30 }
  0x2b   : > { %v324_v0 = vld [vmem:[%s307_s23] sm:$0xff]   ;;  %v328_v1 = vld [vmem:[%s307_s23 + $0x18] sm:$0xff]   ;;  %v332_v2 = vld [vmem:[%s307_s23 + $0x30] sm:$0xff]  }
  0x2c   : > { %325 = vst [vmem:[%s301_s19] sm:$0xff] %v324_v0   ;;  %v336_v3 = vld [vmem:[%s307_s23 + $0x48] sm:$0xff]   ;;  %v340_v4 = vld [vmem:[%s307_s23 + $0x60] sm:$0xff]   ;;  %v344_v5 = vld [vmem:[%s307_s23 + $0x78] sm:$0xff]  }
  0x2d   : > { %329 = vst [vmem:[%s301_s19 + $0x8] sm:$0xff] %v328_v1   ;;  %v348_v6 = vld [vmem:[%s307_s23 + $0x90] sm:$0xff]   ;;  %v352_v7 = vld [vmem:[%s307_s23 + $0xa8] sm:$0xff]  }
  0x2e   : > { %333 = vst [vmem:[%s301_s19 + $0x10] sm:$0xff] %v332_v2  }
  0x2f   : > { %337 = vst [vmem:[%s301_s19 + $0x18] sm:$0xff] %v336_v3  }
  0x30   : > { %341 = vst [vmem:[%s301_s19 + $0x20] sm:$0xff] %v340_v4  }
  0x31   : > { %345 = vst [vmem:[%s301_s19 + $0x28] sm:$0xff] %v344_v5  }
  0x32   : > { %349 = vst [vmem:[%s301_s19 + $0x30] sm:$0xff] %v348_v6  }
  0x33   : > { %353 = vst [vmem:[%s301_s19 + $0x38] sm:$0xff] %v352_v7  }
  0x34 PF: > { %p3896_p0 = scmp.ge.s32.totalorder %s4389_s18, 1  ;;  %p410_p1 = scmp.lt.s32.totalorder %s4389_s18, 7 }
  0x36   : > { %p411_p2 = pnand %p3896_p0, %p410_p1 }
  0x38   : > { %414 = sbr.rel (%p411_p2) target bundleno = 1755 (0x6db), region = 93 }
  0x3d   : > { %s417_s30 = sand.u32 1, %s4365_s12   ;;  %s6798_s21 = sand.u32 1, %s4357_s10  }
  0x3e   : > { %s3897_s22 = sshll.u32 %s417_s30, 6  ;;  %s4550_s25 = sshll.u32 %s6798_s21, 3 }
  0x3f   : > { %s4552_s20 = scalar_lea.vmem [#allocation3], %s3897_s22  ;;  %p3899_p3 = scmp.ne.s32.totalorder %s4373_s14, 0 }
  0x41   : > { %457 = sbr.rel (%p3899_p3) target bundleno = 72 (0x48), region = 101 }
  0x46   : > { %vm458_vm0 = vcmask 523264   ;;  %v4391_v8 = vmov 0.0  }
  0x47   : > { %459 = vst.msk [vmem:[#allocation2] sm:$0xff] %vm458_vm0, %v4391_v8 }
  0x48 PF: > { %v514_v9 = vld [vmem:[%s6785_s2 + $0x70] sm:$0xff]  ;;  %v512_v10 = vld [vmem:[%s6785_s2 + $0x60] sm:$0xff]  ;;  %vm746_vm1 = vcmask 1043456   ;;  %vm747_vm2 = vcmask 1044480   ;;  %v4392_v12 = vmov 0   ;;  %v4393_v16 = vmov 65535  }
  0x49   : > { %v510_v11 = vld [vmem:[%s6785_s2 + $0x50] sm:$0xff]  ;;  %4271 = vset.pattern.permute.xlu2 %v4392_v12  ;;  %4270 = vset.pattern.permute.xlu1 %v4392_v12  ;;  %v3950_v13 = vld [vmem:[%s4552_s20] sm:$0xf]  ;;  %v4149_v14 = vld [vmem:[%s4552_s20] sm:$0x10]  ;;  %v748_v17 = vsel %vm746_vm1, 4294967295, %v4393_v16 }
  0x4a   : > { %4269 = vset.pattern.permute.xlu0 %v4392_v12  ;;  %586 = vperm.xlu1 %4270, %v512_v10   ;;  %v3951_v15 = vor.u32 %v4149_v14, %v3950_v13  ;;  %v3966_v18 = vld [vmem:[%s4552_s20 + $0x8] sm:$0xf]  ;;  %v4150_v19 = vld [vmem:[%s4552_s20 + $0x8] sm:$0x10]  ;;  %v4569_v20 = vsel %vm747_vm2, %v748_v17, 0  ;;  %s6891_s1 = sld [smem:[#allocation51_spill]] }
  0x4b   : > { %596 = vperm.xlu0 %4269, %v514_v9   ;;  %576 = vperm.xlu2 %4271, %v510_v11   ;;  %v3967_v21 = vor.u32 %v4150_v19, %v3966_v18  ;;  %v3982_v22 = vld [vmem:[%s4552_s20 + $0x10] sm:$0xf]  ;;  %v4151_v23 = vld [vmem:[%s4552_s20 + $0x10] sm:$0x10]  ;;  %v3998_v26 = vld [vmem:[%s4552_s20 + $0x18] sm:$0xf] }
  0x4c   : > { %v751_v24 = vand.u32 %v3951_v15, %v4569_v20  ;;  %v3983_v25 = vor.u32 %v4151_v23, %v3982_v22  ;;  %v4152_v27 = vld [vmem:[%s4552_s20 + $0x18] sm:$0x10]  ;;  %vm709_vm3 = vcmask 72704   ;;  %v513_v33 = vld [vmem:[%s6785_s2 + $0x68] sm:$0xff]  ;;  %v515_v34 = vld [vmem:[%s6785_s2 + $0x78] sm:$0xff]  ;;  %vm1909_vm4 = vcmask 523264  }
  0x4d   : > { %v828_v28 = vand.u32 %v3967_v21, %v4569_v20  ;;  %v3999_v29 = vor.u32 %v4152_v27, %v3998_v26  ;;  %v511_v35 = vld [vmem:[%s6785_s2 + $0x58] sm:$0xff]  ;;  %v509_v36 = vld [vmem:[%s6785_s2 + $0x48] sm:$0xff]  ;;  %v508_v37 = vld [vmem:[%s6785_s2 + $0x40] sm:$0xff]  ;;  %p4140_p4 = scmp.ge.s32.totalorder %s4373_s14, 2 }
  0x4e   : > { %760 = vmatpush.bf16.msra.mxu0 %v751_v24  ;;  %v905_v31 = vand.u32 %v3983_v25, %v4569_v20  ;;  %v506_v38 = vld [vmem:[%s6785_s2 + $0x30] sm:$0xff]  ;;  %v507_v41 = vld [vmem:[%s6785_s2 + $0x38] sm:$0xff]  ;;  %v505_v43 = vld [vmem:[%s6785_s2 + $0x28] sm:$0xff] }
  0x4f   : > { %837 = vmatpush.bf16.msra.mxu1 %v828_v28  ;;  %v982_v32 = vand.u32 %v3999_v29, %v4569_v20  ;;  %v522_v40 = vld [vmem:[%s6785_s2 + $0xb0] sm:$0xff]  ;;  %v523_v42 = vld [vmem:[%s6785_s2 + $0xb8] sm:$0xff]  ;;  %v504_v44 = vld [vmem:[%s6785_s2 + $0x20] sm:$0xff] }
  0x50   : > { %v4580_v30 = vld [vmem:[%s6891_s1] sm:$0xff]  ;;  %914 = vmatpush.bf16.msra.mxu2 %v905_v31  ;;  %v4613_v39 = vld [vmem:[%s6891_s1 + $0x8] sm:$0xff]  ;;  %v4644_v46 = vld [vmem:[%s6891_s1 + $0x10] sm:$0xff] }
  0x51   : > { %991 = vmatpush.bf16.msra.mxu3 %v982_v32  ;;  %3952 = vmatmul.msk.bf16.vlgmr.msra.gmra.mxu0 %vm709_vm3, %v4580_v30  ;;  %v520_v45 = vld [vmem:[%s6785_s2 + $0xa0] sm:$0xff]  ;;  %v502_v47 = vld [vmem:[%s6785_s2 + $0x10] sm:$0xff]  ;;  %v521_v48 = vld [vmem:[%s6785_s2 + $0xa8] sm:$0xff] }
  0x52   : > { %3968 = vmatmul.msk.bf16.vlgmr.msra.gmra.mxu1 %vm709_vm3, %v4580_v30  ;;  %591 = vperm.xlu1 %4270, %v513_v33   ;;  %v503_v49 = vld [vmem:[%s6785_s2 + $0x18] sm:$0xff]  ;;  %v518_v50 = vld [vmem:[%s6785_s2 + $0x90] sm:$0xff]  ;;  %v500_v51 = vld [vmem:[%s6785_s2] sm:$0xff] }
  0x53   : > { %3984 = vmatmul.msk.bf16.vlgmr.msra.gmra.mxu2 %vm709_vm3, %v4580_v30  ;;  %601 = vperm.xlu0 %4269, %v515_v34   ;;  %v4672_v52 = vld [vmem:[%s6891_s1 + $0x18] sm:$0xff]  ;;  %v501_v53 = vld [vmem:[%s6785_s2 + $0x8] sm:$0xff]  ;;  %v4688_v54 = vld [vmem:[%s6891_s1 + $0x20] sm:$0xff] }
  0x54   : > { %4000 = vmatmul.msk.bf16.vlgmr.msra.gmra.mxu3 %vm709_vm3, %v4580_v30  ;;  %581 = vperm.xlu2 %4271, %v511_v35   ;;  %v4701_v55 = vld [vmem:[%s6891_s1 + $0x28] sm:$0xff]  ;;  %v4030_v56 = vld [vmem:[%s4552_s20 + $0x28] sm:$0xf]  ;;  %v4154_v57 = vld [vmem:[%s4552_s20 + $0x28] sm:$0x10] }
  0x55   : > { %v4031_v58 = vor.u32 %v4154_v57, %v4030_v56  ;;  %v4014_v59 = vld [vmem:[%s4552_s20 + $0x20] sm:$0xf]  ;;  %v4153_v60 = vld [vmem:[%s4552_s20 + $0x20] sm:$0x10]  ;;  %v4722_v1 = vld [vmem:[%s6891_s1 + $0x30] sm:$0xff] }
  0x56   : > { %v4015_v63 = vor.u32 %v4153_v60, %v4014_v59  ;;  %v4046_v2 = vld [vmem:[%s4552_s20 + $0x30] sm:$0xf]  ;;  %v4155_v3 = vld [vmem:[%s4552_s20 + $0x30] sm:$0x10]  ;;  %v4062_v7 = vld [vmem:[%s4552_s20 + $0x38] sm:$0xf] }
  0x57   : > { %v1136_v62 = vand.u32 %v4031_v58, %v4569_v20  ;;  %v4047_v4 = vor.u32 %v4155_v3, %v4046_v2  ;;  %v4156_v8 = vld [vmem:[%s4552_s20 + $0x38] sm:$0x10]  ;;  %v519_v9 = vld [vmem:[%s6785_s2 + $0x98] sm:$0xff]  ;;  %v1754_v26 = vld [vmem:[%s6787_s4 + $0x8] sm:$0xff] }
  0x58   : > { %v1059_v0 = vand.u32 %v4015_v63, %v4569_v20  ;;  %v4063_v10 = vor.u32 %v4156_v8, %v4062_v7  ;;  %v516_v12 = vld [vmem:[%s6785_s2 + $0x80] sm:$0xff]  ;;  %v4164_v16 = vld [vmem:[%s6891_s1 + $0x38] sm:$0xff] }
  0x59   : > { %1145 = vmatpush.bf16.msrb.mxu1 %v1136_v62  ;;  %v1213_v6 = vand.u32 %v4047_v4, %v4569_v20  ;;  %v4165_v22 = vld [vmem:[%s6891_s1 + $0x40] sm:$0xff]  ;;  %v1756_v60 = vld [vmem:[%s6787_s4 + $0x18] sm:$0xff] }
  0x5a   : > { %571 = vperm.xlu1 %4270, %v509_v36   ;;  %1068 = vmatpush.bf16.msrb.mxu0 %v1059_v0  ;;  %v1290_v11 = vand.u32 %v4063_v10, %v4569_v20  ;;  %v1757_v33 = vld [vmem:[%s6787_s4 + $0x20] sm:$0xff] }
  0x5b   : > { %566 = vperm.xlu0 %4269, %v508_v37   ;;  %1222 = vmatpush.bf16.msrb.mxu2 %v1213_v6 }
  0x5c   : > { %556 = vperm.xlu2 %4271, %v506_v38   ;;  %1299 = vmatpush.bf16.msrb.mxu3 %v1290_v11  ;;  %v4166_v38 = vld [vmem:[%s6891_s1 + $0x48] sm:$0xff] }
  0x61   : > { %3953 = vmatmul.msk.bf16.gmra.mxu0 %vm709_vm3, %v4613_v39 }
  0x62   : > { %3969 = vmatmul.msk.bf16.gmra.mxu1 %vm709_vm3, %v4613_v39  ;;  %636 = vperm.xlu1 %4270, %v522_v40  }
  0x63   : > { %3985 = vmatmul.msk.bf16.gmra.mxu2 %vm709_vm3, %v4613_v39  ;;  %561 = vperm.xlu0 %4269, %v507_v41   ;;  %v517_v41 = vld [vmem:[%s6785_s2 + $0x88] sm:$0xff] }
  0x64   : > { %4001 = vmatmul.msk.bf16.gmra.mxu3 %vm709_vm3, %v4613_v39  ;;  %641 = vperm.xlu2 %4271, %v523_v42  }
  0x6a   : > { %551 = vperm.xlu1 %4270, %v505_v43  }
  0x6b   : > { %546 = vperm.xlu0 %4269, %v504_v44   ;;  %v1753_v44 = vld [vmem:[%s6787_s4] sm:$0xff] }
  0x6c   : > { %626 = vperm.xlu2 %4271, %v520_v45   ;;  %v1760_v45 = vld [vmem:[%s6787_s4 + $0x38] sm:$0xff] }
  0x71   : > { %3954 = vmatmul.msk.bf16.gmra.mxu0 %vm709_vm3, %v4644_v46 }
  0x72   : > { %3970 = vmatmul.msk.bf16.gmra.mxu1 %vm709_vm3, %v4644_v46  ;;  %536 = vperm.xlu1 %4270, %v502_v47  }
  0x73   : > { %3986 = vmatmul.msk.bf16.gmra.mxu2 %vm709_vm3, %v4644_v46  ;;  %631 = vperm.xlu0 %4269, %v521_v48  }
  0x74   : > { %4002 = vmatmul.msk.bf16.gmra.mxu3 %vm709_vm3, %v4644_v46  ;;  %541 = vperm.xlu2 %4271, %v503_v49  }
  0x7a   : > { %621 = vperm.xlu1 %4270, %v519_v9  }
  0x7b   : > { %616 = vperm.xlu0 %4269, %v518_v50  }
  0x7c   : > { %526 = vperm.xlu2 %4271, %v500_v51  }
  0x81   : > { %3955 = vmatmul.msk.bf16.gmra.mxu0 %vm709_vm3, %v4672_v52 }
  0x82   : > { %3971 = vmatmul.msk.bf16.gmra.mxu1 %vm709_vm3, %v4672_v52  ;;  %606 = vperm.xlu1 %4270, %v516_v12  }
  0x83   : > { %3987 = vmatmul.msk.bf16.gmra.mxu2 %vm709_vm3, %v4672_v52  ;;  %531 = vperm.xlu0 %4269, %v501_v53  }
  0x84   : > { %4003 = vmatmul.msk.bf16.gmra.mxu3 %vm709_vm3, %v4672_v52  ;;  %611 = vperm.xlu2 %4271, %v517_v41  }
  0x8a   : > { %1768 = vperm.xlu1 %4270, %v1754_v26  }
  0x8b   : > { %1763 = vperm.xlu0 %4269, %v1753_v44  }
  0x91   : > { %3956 = vmatmul.msk.bf16.gmra.mxu0 %vm709_vm3, %v4688_v54 }
  0x92   : > { %3972 = vmatmul.msk.bf16.gmra.mxu1 %vm709_vm3, %v4688_v54  ;;  %1783 = vperm.xlu1 %4270, %v1757_v33  }
  0x93   : > { %3988 = vmatmul.msk.bf16.gmra.mxu2 %vm709_vm3, %v4688_v54  ;;  %1778 = vperm.xlu0 %4269, %v1756_v60   ;;  %v1755_v60 = vld [vmem:[%s6787_s4 + $0x10] sm:$0xff] }
  0x94   : > { %4004 = vmatmul.msk.bf16.gmra.mxu3 %vm709_vm3, %v4688_v54  ;;  %1773 = vperm.xlu2 %4271, %v1755_v60  }
  0x9a   : > { %1798 = vperm.xlu1 %4270, %v1760_v45  }
  0xa1   : > { %3957 = vmatmul.msk.bf16.gmra.mxu0 %vm709_vm3, %v4701_v55 }
  0xa2   : > { %3973 = vmatmul.msk.bf16.gmra.mxu1 %vm709_vm3, %v4701_v55 }
  0xa3   : > { %3989 = vmatmul.msk.bf16.gmra.mxu2 %vm709_vm3, %v4701_v55 }
  0xa4   : > { %4005 = vmatmul.msk.bf16.gmra.mxu3 %vm709_vm3, %v4701_v55 }
  0xa5   : > { %v4715_v61 = vpop.permute.xlu2 %576 }
  0xae   : > { %v4726_v5 = vpop.permute.xlu2 %581 }
  0xb1   : > { %3958 = vmatmul.msk.bf16.gmra.mxu0 %vm709_vm3, %v4722_v1 }
  0xb2   : > { %3974 = vmatmul.msk.bf16.gmra.mxu1 %vm709_vm3, %v4722_v1 }
  0xb3   : > { %3990 = vmatmul.msk.bf16.gmra.mxu2 %vm709_vm3, %v4722_v1 }
  0xb4   : > { %4006 = vmatmul.msk.bf16.gmra.mxu3 %vm709_vm3, %v4722_v1 }
  0xb6   : > { %v4746_v13 = vpop.permute.xlu2 %556 }
  0xb7   : > { %6892 = vst [vmem:[#allocation12_spill] sm:$0xff] %v4746_v13 }
  0xbc   : > { %v4748_v14 = vpop.permute.xlu1 %586 }
  0xbd   : > { %v4750_v15 = vpop.permute.xlu0 %596 }
  0xbe   : > { %v4761_v18 = vpop.permute.xlu2 %641 }
  0xbf   : > { %6893 = vst [vmem:[#allocation13_spill] sm:$0xff] %v4761_v18 }
  0xc1   : > { %3959 = vmatmul.msk.bf16.gmra.mxu0 %vm709_vm3, %v4164_v16 }
  0xc2   : > { %3975 = vmatmul.msk.bf16.gmra.mxu1 %vm709_vm3, %v4164_v16 }
  0xc3   : > { %3991 = vmatmul.msk.bf16.gmra.mxu2 %vm709_vm3, %v4164_v16 }
  0xc4   : > { %4007 = vmatmul.msk.bf16.gmra.mxu3 %vm709_vm3, %v4164_v16  ;;  %v4759_v17 = vpop.permute.xlu1 %591 }
  0xc5   : > { %v4763_v19 = vpop.permute.xlu0 %601 }
  0xc6   : > { %v4772_v24 = vpop.permute.xlu2 %626 }
  0xc7   : > { %6895 = vst [vmem:[#allocation15_spill] sm:$0xff] %v4772_v24 }
  0xcc   : > { %v4765_v20 = vpop.permute.xlu1 %571 }
  0xcd   : > { %v4767_v21 = vpop.permute.xlu0 %566 }
  0xce   : > { %6894 = vst [vmem:[#allocation14_spill] sm:$0xff] %v4767_v21  ;;  %v762_v23 = vpop.f32.mrf.mxu0  ;;  %v4792_v35 = vpop.permute.xlu2 %541 }
  0xcf   : > { %v839_v25 = vpop.f32.mrf.mxu1  ;;  %6898 = vst [vmem:[#allocation18_spill] sm:$0xff] %v4792_v35 }
  0xd1   : > { %3960 = vmatmul.msk.bf16.gmra.mxu0 %vm709_vm3, %v4165_v22 }
  0xd2   : > { %3976 = vmatmul.msk.bf16.gmra.mxu1 %vm709_vm3, %v4165_v22 }
  0xd3   : > { %3992 = vmatmul.msk.bf16.gmra.mxu2 %vm709_vm3, %v4165_v22 }
  0xd4   : > { %4008 = vmatmul.msk.bf16.gmra.mxu3 %vm709_vm3, %v4165_v22  ;;  %v4781_v27 = vpop.permute.xlu1 %636 }
  0xd5   : > { %6896 = vst [vmem:[#allocation16_spill] sm:$0xff] %v4781_v27  ;;  %v4783_v28 = vpop.permute.xlu0 %561 }
  0xd6   : > { %6897 = vst [vmem:[#allocation17_spill] sm:$0xff] %v4783_v28  ;;  %v916_v29 = vpop.f32.mrf.mxu2  ;;  %v4785_v32 = vpop.f32.mrf.mxu0 }
  0xd7   : > { %v993_v31 = vpop.f32.mrf.mxu3  ;;  %v4790_v34 = vpop.f32.mrf.mxu1 }
  0xd8   : > { %v4816_v48 = vpop.permute.xlu2 %526 }
  0xd9   : > { %6901 = vst [vmem:[#allocation21_spill] sm:$0xff] %v4816_v48  ;;  %v763_v57 = vadd.f32 %v762_v23, %v4816_v48  ;;  %v840_v0 = vadd.f32 %v839_v25, %v4816_v48  ;;  %v917_v12 = vadd.f32 %v916_v29, %v4816_v48  ;;  %v994_v33 = vadd.f32 %v993_v31, %v4816_v48  ;;  %v1759_v31 = vld [vmem:[%s6787_s4 + $0x30] sm:$0xff] }
  0xda   : > { %1793 = vperm.xlu0 %4269, %v1759_v31  }
  0xdb   : > { %v1361_v11 = vmax.f32 %v763_v57, 0.0  ;;  %v1385_v22 = vmax.f32 %v840_v0, 0.0  ;;  %v1409_v29 = vmax.f32 %v917_v12, 0.0 }
  0xdc   : > { %v4794_v36 = vpop.permute.xlu1 %551 }
  0xdd   : > { %6899 = vst [vmem:[#allocation19_spill] sm:$0xff] %v4794_v36  ;;  %v4796_v37 = vpop.permute.xlu0 %546  ;;  %v4862_v12 = vpack.c.bf16 %v1409_v29, %v1409_v29 }
  0xde   : > { %6900 = vst [vmem:[#allocation20_spill] sm:$0xff] %v4796_v37  ;;  %v4801_v40 = vpop.f32.mrf.mxu2  ;;  %v767_v43 = vpop.f32.mrf.mxu0 }
  0xdf   : > { %v4806_v42 = vpop.f32.mrf.mxu3  ;;  %v844_v47 = vpop.f32.mrf.mxu1 }
  0xe1   : > { %3961 = vmatmul.msk.bf16.gmra.mxu0 %vm709_vm3, %v4166_v38 }
  0xe2   : > { %3977 = vmatmul.msk.bf16.gmra.mxu1 %vm709_vm3, %v4166_v38 }
  0xe3   : > { %3993 = vmatmul.msk.bf16.gmra.mxu2 %vm709_vm3, %v4166_v38 }
  0xe4   : > { %4009 = vmatmul.msk.bf16.gmra.mxu3 %vm709_vm3, %v4166_v38  ;;  %v4820_v49 = vpop.permute.xlu1 %536 }
  0xe5   : > { %6902 = vst [vmem:[#allocation22_spill] sm:$0xff] %v4820_v49  ;;  %v4822_v50 = vpop.permute.xlu0 %631  ;;  %v768_v51 = vadd.f32 %v767_v43, %v4820_v49  ;;  %v845_v53 = vadd.f32 %v844_v47, %v4820_v49  ;;  %v4167_v43 = vld [vmem:[%s6891_s1 + $0x50] sm:$0xff] }
  0xe6   : > { %6903 = vst [vmem:[#allocation23_spill] sm:$0xff] %v4822_v50  ;;  %v921_v56 = vpop.f32.mrf.mxu2  ;;  %v769_v59 = vpop.f32.mrf.mxu0 }
  0xe7   : > { %v998_v58 = vpop.f32.mrf.mxu3  ;;  %v1363_v62 = vmax.f32 %v768_v51, 0.0  ;;  %v1387_v63 = vmax.f32 %v845_v53, 0.0  ;;  %v922_v2 = vadd.f32 %v921_v56, %v4820_v49  ;;  %v770_v3 = vadd.f32 %v769_v59, %v4792_v35  ;;  %v846_v4 = vpop.f32.mrf.mxu1 }
  0xe8   : > { %v847_v6 = vadd.f32 %v846_v4, %v4792_v35  ;;  %v999_v9 = vadd.f32 %v998_v58, %v4820_v49  ;;  %v4842_v53 = vpack.c.bf16 %v1361_v11, %v1361_v11 }
  0xe9   : > { %v1555_v7 = vpack.c.bf16 %v1363_v62, %v1363_v62  ;;  %v1579_v8 = vpack.c.bf16 %v1387_v63, %v1387_v63  ;;  %v1364_v10 = vmax.f32 %v770_v3, 0.0  ;;  %v1411_v23 = vmax.f32 %v922_v2, 0.0 }
  0xea   : > { %v1388_v16 = vmax.f32 %v847_v6, 0.0  ;;  %v1435_v45 = vmax.f32 %v999_v9, 0.0  ;;  %v4851_v62 = vpack.c.bf16 %v1385_v22, %v1385_v22  ;;  %v1433_v6 = vmax.f32 %v994_v33, 0.0 }
  0xeb   : > { %v1556_v25 = vpack.c.bf16 %v1364_v10, %v1364_v10  ;;  %v1863_v26 = vunpack.c.l.b16 %v1555_v7  ;;  %v2006_v44 = vunpack.c.l.b16 %v1579_v8  ;;  %v1603_v63 = vpack.c.bf16 %v1411_v23, %v1411_v23 }
  0xec   : > { %v1580_v38 = vpack.c.bf16 %v1388_v16, %v1388_v16  ;;  %v1627_v10 = vpack.c.bf16 %v1435_v45, %v1435_v45  ;;  %v4867_v33 = vpack.c.bf16 %v1433_v6, %v1433_v6 }
  0xed   : > { %v4837_v41 = vpop.permute.xlu0 %616  ;;  %v1864_v47 = vunpack.c.l.b16 %v1556_v25  ;;  %v2136_v23 = vunpack.c.l.b16 %v1603_v63 }
  0xee   : > { %6904 = vst [vmem:[#allocation24_spill] sm:$0xff] %v4837_v41  ;;  %v923_v51 = vpop.f32.mrf.mxu2  ;;  %v2007_v56 = vunpack.c.l.b16 %v1580_v38  ;;  %v772_v59 = vpop.f32.mrf.mxu0 }
  0xef   : > { %v924_v57 = vadd.f32 %v923_v51, %v4792_v35  ;;  %v1000_v58 = vpop.f32.mrf.mxu3  ;;  %v773_v2 = vadd.f32 %v772_v59, %v4796_v37  ;;  %v849_v3 = vpop.f32.mrf.mxu1  ;;  %v4855_v4 = vpack.c.b16 %v1864_v47, %v1863_v26  ;;  %v1861_v26 = vunpack.c.l.b16 %v4842_v53 }
  0xf0   : > { %v1001_v0 = vadd.f32 %v1000_v58, %v4792_v35  ;;  %v850_v8 = vadd.f32 %v849_v3, %v4796_v37  ;;  %v4859_v9 = vpack.c.b16 %v2007_v56, %v2006_v44  ;;  %v2004_v47 = vunpack.c.l.b16 %v4851_v62  ;;  %v1758_v62 = vld [vmem:[%s6787_s4 + $0x28] sm:$0xff] }
  0xf1   : > { %v1412_v7 = vmax.f32 %v924_v57, 0.0  ;;  %3962 = vmatmul.msk.bf16.gmra.mxu0 %vm709_vm3, %v4167_v43  ;;  %v1365_v22 = vmax.f32 %v773_v2, 0.0  ;;  %v2266_v51 = vunpack.c.l.b16 %v1627_v10  ;;  %1788 = vperm.xlu2 %4271, %v1758_v62  }
  0xf2   : > { %v1436_v11 = vmax.f32 %v1001_v0, 0.0  ;;  %3978 = vmatmul.msk.bf16.gmra.mxu1 %vm709_vm3, %v4167_v43  ;;  %v1389_v44 = vmax.f32 %v850_v8, 0.0 }
  0xf3   : > { %v1604_v16 = vpack.c.bf16 %v1412_v7, %v1412_v7  ;;  %3994 = vmatmul.msk.bf16.gmra.mxu2 %vm709_vm3, %v4167_v43  ;;  %v1557_v53 = vpack.c.bf16 %v1365_v22, %v1365_v22 }
  0xf4   : > { %v1628_v25 = vpack.c.bf16 %v1436_v11, %v1436_v11  ;;  %4010 = vmatmul.msk.bf16.gmra.mxu3 %vm709_vm3, %v4167_v43  ;;  %v2134_v43 = vunpack.c.l.b16 %v4862_v12  ;;  %v1581_v7 = vpack.c.bf16 %v1389_v44, %v1389_v44 }
  0xf5   : > { %v2137_v38 = vunpack.c.l.b16 %v1604_v16  ;;  %v4869_v45 = vpop.permute.xlu0 %531 }
  0xf6   : > { %6905 = vst [vmem:[#allocation25_spill] sm:$0xff] %v4869_v45  ;;  %v2267_v29 = vunpack.c.l.b16 %v1628_v25  ;;  %v926_v56 = vpop.f32.mrf.mxu2  ;;  %v765_v57 = vadd.f32 %v4785_v32, %v4869_v45  ;;  %v842_v58 = vadd.f32 %v4790_v34, %v4869_v45  ;;  %v774_v60 = vpop.f32.mrf.mxu0  ;;  %v919_v0 = vadd.f32 %v4801_v40, %v4869_v45 }
  0xf7   : > { %v927_v59 = vadd.f32 %v926_v56, %v4796_v37  ;;  %v1003_v31 = vpop.f32.mrf.mxu3  ;;  %v4881_v63 = vpack.c.b16 %v2137_v38, %v2136_v23  ;;  %v775_v34 = vadd.f32 %v774_v60, %v4794_v36  ;;  %v851_v2 = vpop.f32.mrf.mxu1  ;;  %v1865_v25 = vunpack.c.l.b16 %v1557_v53 }
  0xf8   : > { %v1004_v32 = vadd.f32 %v1003_v31, %v4796_v37  ;;  %v1362_v3 = vmax.f32 %v765_v57, 0.0  ;;  %v1386_v6 = vmax.f32 %v842_v58, 0.0  ;;  %v852_v8 = vadd.f32 %v851_v2, %v4794_v36 }
  0xf9   : > { %6906 = vst [vmem:[#allocation26_spill] sm:$0xff] %v4881_v63  ;;  %v4888_v10 = vpack.c.b16 %v2267_v29, %v2266_v51  ;;  %v1410_v11 = vmax.f32 %v919_v0, 0.0  ;;  %v1413_v12 = vmax.f32 %v927_v59, 0.0  ;;  %v1366_v16 = vmax.f32 %v775_v34, 0.0  ;;  %v4168_v51 = vld [vmem:[%s6891_s1 + $0x58] sm:$0xff] }
  0xfa   : > { %v1554_v22 = vpack.c.bf16 %v1362_v3, %v1362_v3  ;;  %v1578_v23 = vpack.c.bf16 %v1386_v6, %v1386_v6  ;;  %v1390_v40 = vmax.f32 %v852_v8, 0.0  ;;  %v996_v56 = vadd.f32 %v4806_v42, %v4869_v45 }
  0xfb   : > { %6907 = vst [vmem:[#allocation27_spill] sm:$0xff] %v4888_v10  ;;  %v1602_v38 = vpack.c.bf16 %v1410_v11, %v1410_v11  ;;  %v1437_v31 = vmax.f32 %v1004_v32, 0.0  ;;  %v1558_v60 = vpack.c.bf16 %v1366_v16, %v1366_v16  ;;  %v2008_v44 = vunpack.c.l.b16 %v1581_v7 }
  0xfc   : > { %v1862_v57 = vunpack.c.l.b16 %v1554_v22  ;;  %v2005_v58 = vunpack.c.l.b16 %v1578_v23  ;;  %v1582_v62 = vpack.c.bf16 %v1390_v40, %v1390_v40  ;;  %v1434_v59 = vmax.f32 %v996_v56, 0.0 }
  0xfd   : > { %v2135_v29 = vunpack.c.l.b16 %v1602_v38  ;;  %v1605_v0 = vpack.c.bf16 %v1413_v12, %v1413_v12  ;;  %v1866_v34 = vunpack.c.l.b16 %v1558_v60  ;;  %v1629_v16 = vpack.c.bf16 %v1437_v31, %v1437_v31 }
  0xfe   : > { %v928_v53 = vpop.f32.mrf.mxu2  ;;  %v4895_v2 = vpack.c.b16 %v1862_v57, %v1861_v26  ;;  %v4897_v3 = vpack.c.b16 %v2005_v58, %v2004_v47  ;;  %v2009_v42 = vunpack.c.l.b16 %v1582_v62  ;;  %v777_v8 = vpop.f32.mrf.mxu0  ;;  %v1626_v11 = vpack.c.bf16 %v1434_v59, %v1434_v59 }
  0xff   : > { %v929_v32 = vadd.f32 %v928_v53, %v4794_v36  ;;  %v1005_v6 = vpop.f32.mrf.mxu3  ;;  %v4900_v7 = vpack.c.b16 %v2135_v29, %v2134_v43  ;;  %v854_v23 = vpop.f32.mrf.mxu1  ;;  %v4903_v40 = vpack.c.b16 %v1866_v34, %v1865_v25  ;;  %v2264_v47 = vunpack.c.l.b16 %v4867_v33 }
 0x100   : > { %v1006_v22 = vadd.f32 %v1005_v6, %v4794_v36  ;;  %v4906_v26 = vpack.c.b16 %v2009_v42, %v2008_v44  ;;  %v2265_v38 = vunpack.c.l.b16 %v1626_v11  ;;  %v778_v60 = vadd.f32 %v777_v8, %v4746_v13 }
 0x101   : > { %6908 = vst [vmem:[#allocation28_spill] sm:$0xff] %v4900_v7  ;;  %v1414_v12 = vmax.f32 %v929_v32, 0.0  ;;  %3963 = vmatmul.msk.bf16.gmra.mxu0 %vm709_vm3, %v4168_v51  ;;  %v2138_v43 = vunpack.c.l.b16 %v1605_v0  ;;  %v855_v57 = vadd.f32 %v854_v23, %v4746_v13  ;;  %v2268_v58 = vunpack.c.l.b16 %v1629_v16 }
 0x102   : > { %v1438_v56 = vmax.f32 %v1006_v22, 0.0  ;;  %3979 = vmatmul.msk.bf16.gmra.mxu1 %vm709_vm3, %v4168_v51  ;;  %v4913_v25 = vpack.c.b16 %v2265_v38, %v2264_v47  ;;  %v1367_v29 = vmax.f32 %v778_v60, 0.0 }
 0x103   : > { %v1606_v31 = vpack.c.bf16 %v1414_v12, %v1414_v12  ;;  %3995 = vmatmul.msk.bf16.gmra.mxu2 %vm709_vm3, %v4168_v51  ;;  %v1391_v34 = vmax.f32 %v855_v57, 0.0 }
 0x104   : > { %6909 = vst [vmem:[#allocation29_spill] sm:$0xff] %v4913_v25  ;;  %v1630_v62 = vpack.c.bf16 %v1438_v56, %v1438_v56  ;;  %4011 = vmatmul.msk.bf16.gmra.mxu3 %vm709_vm3, %v4168_v51  ;;  %v1559_v22 = vpack.c.bf16 %v1367_v29, %v1367_v29 }
 0x105   : > { %v2139_v44 = vunpack.c.l.b16 %v1606_v31  ;;  %v1583_v12 = vpack.c.bf16 %v1391_v34, %v1391_v34 }
 0x106   : > { %v2269_v33 = vunpack.c.l.b16 %v1630_v62  ;;  %v931_v59 = vpop.f32.mrf.mxu2  ;;  %v779_v0 = vpop.f32.mrf.mxu0  ;;  %v1867_v57 = vunpack.c.l.b16 %v1559_v22 }
 0x107   : > { %v932_v53 = vadd.f32 %v931_v59, %v4746_v13  ;;  %v1008_v42 = vpop.f32.mrf.mxu3  ;;  %v4917_v32 = vpack.c.b16 %v2139_v44, %v2138_v43  ;;  %v780_v8 = vadd.f32 %v779_v0, %v4783_v28  ;;  %v856_v11 = vpop.f32.mrf.mxu1  ;;  %v2010_v44 = vunpack.c.l.b16 %v1583_v12 }
 0x108   : > { %v1009_v6 = vadd.f32 %v1008_v42, %v4746_v13  ;;  %v4921_v16 = vpack.c.b16 %v2269_v33, %v2268_v58  ;;  %v857_v51 = vadd.f32 %v856_v11, %v4783_v28 }
 0x109   : > { %6910 = vst [vmem:[#allocation30_spill] sm:$0xff] %v4917_v32  ;;  %v1368_v23 = vmax.f32 %v780_v8, 0.0  ;;  %v1415_v47 = vmax.f32 %v932_v53, 0.0 }
 0x10a   : > { %6911 = vst [vmem:[#allocation31_spill] sm:$0xff] %v4921_v16  ;;  %v1392_v38 = vmax.f32 %v857_v51, 0.0  ;;  %v1439_v56 = vmax.f32 %v1009_v6, 0.0 }
 0x10b   : > { %v1560_v60 = vpack.c.bf16 %v1368_v23, %v1368_v23  ;;  %v1607_v59 = vpack.c.bf16 %v1415_v47, %v1415_v47 }
 0x10c   : > { %v1584_v31 = vpack.c.bf16 %v1392_v38, %v1392_v38  ;;  %v1631_v11 = vpack.c.bf16 %v1439_v56, %v1439_v56 }
 0x10d   : > { %v1868_v43 = vunpack.c.l.b16 %v1560_v60  ;;  %v2140_v22 = vunpack.c.l.b16 %v1607_v59 }
 0x10e   : > { %v933_v62 = vpop.f32.mrf.mxu2  ;;  %v2011_v42 = vunpack.c.l.b16 %v1584_v31  ;;  %v4925_v33 = vpop.f32.mrf.mxu0  ;;  %v2270_v12 = vunpack.c.l.b16 %v1631_v11 }
 0x10f   : > { %v934_v0 = vadd.f32 %v933_v62, %v4783_v28  ;;  %v1010_v58 = vpop.f32.mrf.mxu3  ;;  %v4928_v34 = vpop.f32.mrf.mxu1  ;;  %v4930_v53 = vpack.c.b16 %v1868_v43, %v1867_v57 }
 0x110   : > { %v1011_v29 = vadd.f32 %v1010_v58, %v4783_v28  ;;  %v4934_v8 = vpack.c.b16 %v2011_v42, %v2010_v44 }
 0x111   : > { %v1416_v6 = vmax.f32 %v934_v0, 0.0  ;;  %4016 = vmatmul.msk.bf16.vlgmr.msrb.gmra.mxu0 %vm709_vm3, %v4580_v30 }
 0x112   : > { %v1440_v51 = vmax.f32 %v1011_v29, 0.0  ;;  %4032 = vmatmul.msk.bf16.vlgmr.msrb.gmra.mxu1 %vm709_vm3, %v4580_v30 }
 0x113   : > { %v1608_v23 = vpack.c.bf16 %v1416_v6, %v1416_v6  ;;  %4048 = vmatmul.msk.bf16.vlgmr.msrb.gmra.mxu2 %vm709_vm3, %v4580_v30 }
 0x114   : > { %v1632_v47 = vpack.c.bf16 %v1440_v51, %v1440_v51  ;;  %4064 = vmatmul.msk.bf16.vlgmr.msrb.gmra.mxu3 %vm709_vm3, %v4580_v30 }
 0x115   : > { %v2141_v38 = vunpack.c.l.b16 %v1608_v23 }
 0x116   : > { %v2271_v56 = vunpack.c.l.b16 %v1632_v47  ;;  %v936_v60 = vpop.f32.mrf.mxu2  ;;  %v4943_v43 = vpop.f32.mrf.mxu0 }
 0x117   : > { %v937_v31 = vadd.f32 %v936_v60, %v4767_v21  ;;  %v1013_v57 = vpop.f32.mrf.mxu3  ;;  %v4945_v62 = vpack.c.b16 %v2141_v38, %v2140_v22  ;;  %v4948_v59 = vpop.f32.mrf.mxu1 }
 0x118   : > { %v1014_v44 = vadd.f32 %v1013_v57, %v4767_v21  ;;  %v4950_v42 = vpack.c.b16 %v2271_v56, %v2270_v12 }
 0x119   : > { %6912 = vst [vmem:[#allocation32_spill] sm:$0xff] %v4945_v62  ;;  %v1417_v0 = vmax.f32 %v937_v31, 0.0 }
 0x11a   : > { %6913 = vst [vmem:[#allocation33_spill] sm:$0xff] %v4950_v42  ;;  %v1441_v58 = vmax.f32 %v1014_v44, 0.0 }
 0x11b   : > { %v1609_v30 = vpack.c.bf16 %v1417_v0, %v1417_v0 }
 0x11c   : > { %v1633_v23 = vpack.c.bf16 %v1441_v58, %v1441_v58 }
 0x11d   : > { %v2142_v12 = vunpack.c.l.b16 %v1609_v30 }
 0x11e   : > { %v938_v11 = vpop.f32.mrf.mxu2  ;;  %v787_v51 = vpop.f32.mrf.mxu0  ;;  %v2272_v31 = vunpack.c.l.b16 %v1633_v23 }
 0x11f   : > { %v939_v29 = vadd.f32 %v938_v11, %v4765_v20  ;;  %v1015_v6 = vpop.f32.mrf.mxu3  ;;  %v4954_v60 = vpop.f32.mrf.mxu1 }
 0x120   : > { %v1016_v47 = vadd.f32 %v1015_v6, %v4765_v20 }
 0x121   : > { %v1418_v22 = vmax.f32 %v939_v29, 0.0  ;;  %4017 = vmatmul.msk.bf16.gmra.mxu0 %vm709_vm3, %v4613_v39 }
 0x122   : > { %v1442_v38 = vmax.f32 %v1016_v47, 0.0  ;;  %4033 = vmatmul.msk.bf16.gmra.mxu1 %vm709_vm3, %v4613_v39 }
 0x123   : > { %v1610_v56 = vpack.c.bf16 %v1418_v22, %v1418_v22  ;;  %4049 = vmatmul.msk.bf16.gmra.mxu2 %vm709_vm3, %v4613_v39 }
 0x124   : > { %v1634_v57 = vpack.c.bf16 %v1442_v38, %v1442_v38  ;;  %4065 = vmatmul.msk.bf16.gmra.mxu3 %vm709_vm3, %v4613_v39 }
 0x125   : > { %v2143_v44 = vunpack.c.l.b16 %v1610_v56 }
 0x126   : > { %v2273_v0 = vunpack.c.l.b16 %v1634_v57  ;;  %v4964_v58 = vpop.f32.mrf.mxu2  ;;  %v789_v29 = vpop.f32.mrf.mxu0 }
 0x127   : > { %v4966_v11 = vpop.f32.mrf.mxu3  ;;  %v4968_v6 = vpack.c.b16 %v2143_v44, %v2142_v12  ;;  %v866_v47 = vpop.f32.mrf.mxu1 }
 0x128   : > { %v4970_v30 = vpack.c.b16 %v2273_v0, %v2272_v31 }
 0x12a   : > { %6914 = vst [vmem:[#allocation34_spill] sm:$0xff] %v4970_v30 }
 0x12e   : > { %v4972_v22 = vpop.f32.mrf.mxu2  ;;  %v792_v23 = vpop.f32.mrf.mxu0 }
 0x12f   : > { %v4974_v28 = vpop.f32.mrf.mxu3  ;;  %v869_v38 = vpop.f32.mrf.mxu1  ;;  %v793_v35 = vadd.f32 %v792_v23, %v4748_v14 }
 0x130   : > { %v870_v10 = vadd.f32 %v869_v38, %v4748_v14 }
 0x131   : > { %4018 = vmatmul.msk.bf16.gmra.mxu0 %vm709_vm3, %v4644_v46  ;;  %v1373_v63 = vmax.f32 %v793_v35, 0.0 }
 0x132   : > { %4034 = vmatmul.msk.bf16.gmra.mxu1 %vm709_vm3, %v4644_v46 }
 0x133   : > { %4050 = vmatmul.msk.bf16.gmra.mxu2 %vm709_vm3, %v4644_v46 }
 0x134   : > { %4066 = vmatmul.msk.bf16.gmra.mxu3 %vm709_vm3, %v4644_v46 }
 0x136   : > { %v4984_v39 = vpop.f32.mrf.mxu2  ;;  %v794_v56 = vpop.f32.mrf.mxu0 }
 0x137   : > { %v4986_v12 = vpop.f32.mrf.mxu3  ;;  %v871_v31 = vpop.f32.mrf.mxu1  ;;  %v795_v37 = vadd.f32 %v794_v56, %v4759_v17  ;;  %v790_v56 = vadd.f32 %v789_v29, %v4726_v5 }
 0x138   : > { %v872_v49 = vadd.f32 %v871_v31, %v4759_v17  ;;  %v788_v31 = vadd.f32 %v787_v51, %v4715_v61 }
 0x13a   : > { %v1398_v16 = vmax.f32 %v872_v49, 0.0 }
 0x13e   : > { %v4988_v57 = vpop.f32.mrf.mxu2  ;;  %v797_v0 = vpop.f32.mrf.mxu0 }
 0x13f   : > { %v4990_v44 = vpop.f32.mrf.mxu3  ;;  %v874_v13 = vpop.f32.mrf.mxu1  ;;  %v798_v36 = vadd.f32 %v797_v0, %v4750_v15  ;;  %v5009_v0 = vadd.f32 %v4925_v33, %v4767_v21  ;;  %v867_v33 = vadd.f32 %v866_v47, %v4726_v5  ;;  %v862_v47 = vadd.f32 %v4948_v59, %v4765_v20 }
 0x140   : > { %v875_v46 = vadd.f32 %v874_v13, %v4750_v15 }
 0x141   : > { %4019 = vmatmul.msk.bf16.gmra.mxu0 %vm709_vm3, %v4672_v52  ;;  %v1375_v45 = vmax.f32 %v798_v36, 0.0  ;;  %v5018_v36 = vadd.f32 %v4928_v34, %v4767_v21  ;;  %v1372_v34 = vmax.f32 %v790_v56, 0.0  ;;  %v1397_v21 = vmax.f32 %v870_v10, 0.0 }
 0x142   : > { %4035 = vmatmul.msk.bf16.gmra.mxu1 %vm709_vm3, %v4672_v52  ;;  %v1399_v13 = vmax.f32 %v875_v46, 0.0  ;;  %v1396_v35 = vmax.f32 %v867_v33, 0.0 }
 0x143   : > { %4051 = vmatmul.msk.bf16.gmra.mxu2 %vm709_vm3, %v4672_v52  ;;  %v1567_v50 = vpack.c.bf16 %v1375_v45, %v1375_v45  ;;  %v1565_v45 = vpack.c.bf16 %v1373_v63, %v1373_v63  ;;  %v1564_v10 = vpack.c.bf16 %v1372_v34, %v1372_v34  ;;  %v1394_v63 = vmax.f32 %v862_v47, 0.0 }
 0x144   : > { %4067 = vmatmul.msk.bf16.gmra.mxu3 %vm709_vm3, %v4672_v52  ;;  %v1374_v52 = vmax.f32 %v795_v37, 0.0  ;;  %v785_v37 = vadd.f32 %v4943_v43, %v4765_v20  ;;  %v1591_v38 = vpack.c.bf16 %v1399_v13, %v1399_v13 }
 0x145   : > { %v1875_v27 = vunpack.c.l.b16 %v1567_v50  ;;  %v1873_v33 = vunpack.c.l.b16 %v1565_v45  ;;  %v1586_v34 = vpack.c.bf16 %v1394_v63, %v1394_v63 }
 0x146   : > { %v5005_v48 = vpop.f32.mrf.mxu2  ;;  %v799_v7 = vpop.f32.mrf.mxu0  ;;  %v1566_v32 = vpack.c.bf16 %v1374_v52, %v1374_v52  ;;  %v1370_v62 = vmax.f32 %v785_v37, 0.0  ;;  %v1589_v52 = vpack.c.bf16 %v1397_v21, %v1397_v21  ;;  %v1393_v21 = vmax.f32 %v5018_v36, 0.0 }
 0x147   : > { %v5011_v25 = vpop.f32.mrf.mxu3  ;;  %v800_v23 = vadd.f32 %v799_v7, %v4763_v19  ;;  %v876_v18 = vpop.f32.mrf.mxu1  ;;  %v865_v7 = vadd.f32 %v4954_v60, %v4715_v61  ;;  %v2018_v60 = vunpack.c.l.b16 %v1591_v38 }
 0x148   : > { %v877_v46 = vadd.f32 %v876_v18, %v4763_v19  ;;  %v1371_v18 = vmax.f32 %v788_v31, 0.0  ;;  %v1588_v31 = vpack.c.bf16 %v1396_v35, %v1396_v35 }
 0x149   : > { %v1376_v29 = vmax.f32 %v800_v23, 0.0  ;;  %v1590_v23 = vpack.c.bf16 %v1398_v16, %v1398_v16  ;;  %v1395_v30 = vmax.f32 %v865_v7, 0.0 }
 0x14a   : > { %v1400_v24 = vmax.f32 %v877_v46, 0.0  ;;  %v1563_v50 = vpack.c.bf16 %v1371_v18, %v1371_v18  ;;  %v2015_v47 = vunpack.c.l.b16 %v1588_v31 }
 0x14b   : > { %v1568_v51 = vpack.c.bf16 %v1376_v29, %v1376_v29  ;;  %v1874_v29 = vunpack.c.l.b16 %v1566_v32  ;;  %v2017_v37 = vunpack.c.l.b16 %v1590_v23  ;;  %v1587_v32 = vpack.c.bf16 %v1395_v30, %v1395_v30 }
 0x14c   : > { %v1592_v49 = vpack.c.bf16 %v1400_v24, %v1400_v24  ;;  %v1369_v24 = vmax.f32 %v5009_v0, 0.0  ;;  %v2016_v0 = vunpack.c.l.b16 %v1589_v52  ;;  %v1585_v30 = vpack.c.bf16 %v1393_v21, %v1393_v21 }
 0x14d   : > { %v1876_v42 = vunpack.c.l.b16 %v1568_v51  ;;  %v1891_v7 = vpack.c.b16 %v1874_v29, %v1873_v33  ;;  %v1871_v51 = vunpack.c.l.b16 %v1563_v50  ;;  %v952_v29 = vadd.f32 %v5005_v48, %v4750_v15 }
 0x14e   : > { %v953_v43 = vpop.f32.mrf.mxu2  ;;  %v2019_v13 = vunpack.c.l.b16 %v1592_v49  ;;  %v5029_v56 = vpop.f32.mrf.mxu0  ;;  %v1561_v38 = vpack.c.bf16 %v1369_v24, %v1369_v24  ;;  %v2014_v49 = vunpack.c.l.b16 %v1587_v32  ;;  %v1029_v50 = vadd.f32 %v5011_v25, %v4750_v15 }
 0x14f   : > { %v1030_v46 = vpop.f32.mrf.mxu3  ;;  %v1892_v41 = vpack.c.b16 %v1876_v42, %v1875_v27  ;;  %v5031_v59 = vpop.f32.mrf.mxu1  ;;  %v1562_v27 = vpack.c.bf16 %v1370_v62, %v1370_v62  ;;  %v1872_v42 = vunpack.c.l.b16 %v1564_v10  ;;  %v2012_v10 = vunpack.c.l.b16 %v1585_v30 }
 0x150   : > { %v2035_v16 = vpack.c.b16 %v2019_v13, %v2018_v60  ;;  %v1869_v23 = vunpack.c.l.b16 %v1561_v38  ;;  %v2013_v60 = vunpack.c.l.b16 %v1586_v34  ;;  %v2033_v13 = vpack.c.b16 %v2015_v47, %v2014_v49  ;;  %v5098_v49 = vpop.permute.xlu1 %621 }
 0x151   : > { %4020 = vmatmul.msk.bf16.gmra.mxu0 %vm709_vm3, %v4688_v54  ;;  %v1870_v35 = vunpack.c.l.b16 %v1562_v27  ;;  %v954_v24 = vadd.f32 %v953_v43, %v4763_v19  ;;  %v1031_v31 = vadd.f32 %v1030_v46, %v4763_v19  ;;  %v947_v48 = vadd.f32 %v4984_v39, %v4748_v14  ;;  %6915 = vst [vmem:[#allocation35_spill] sm:$0xff] %v5098_v49 }
 0x152   : > { %4036 = vmatmul.msk.bf16.gmra.mxu1 %vm709_vm3, %v4688_v54  ;;  %1922 = vmatpush.bf16.msra.mxu0 %v1892_v41  ;;  %v2034_v41 = vpack.c.b16 %v2017_v37, %v2016_v0  ;;  %v949_v43 = vadd.f32 %v4988_v57, %v4759_v17  ;;  %v1423_v27 = vmax.f32 %v952_v29, 0.0  ;;  %v1024_v25 = vadd.f32 %v4986_v12, %v4748_v14 }
 0x153   : > { %4052 = vmatmul.msk.bf16.gmra.mxu2 %vm709_vm3, %v4688_v54  ;;  %v1889_v52 = vpack.c.b16 %v1870_v35, %v1869_v23  ;;  %v1424_v32 = vmax.f32 %v954_v24, 0.0  ;;  %v1026_v46 = vadd.f32 %v4990_v44, %v4759_v17  ;;  %v1447_v39 = vmax.f32 %v1029_v50, 0.0 }
 0x154   : > { %4068 = vmatmul.msk.bf16.gmra.mxu3 %vm709_vm3, %v4688_v54  ;;  %2052 = vmatpush.bf16.msra.mxu2 %v2035_v16  ;;  %v1890_v54 = vpack.c.b16 %v1872_v42, %v1871_v51  ;;  %v2032_v16 = vpack.c.b16 %v2013_v60, %v2012_v10  ;;  %v1448_v42 = vmax.f32 %v1031_v31, 0.0  ;;  %v942_v57 = vadd.f32 %v4964_v58, %v4715_v61 }
 0x155   : > { %v944_v0 = vadd.f32 %v4972_v22, %v4726_v5  ;;  %v1422_v12 = vmax.f32 %v949_v43, 0.0  ;;  %v1616_v44 = vpack.c.bf16 %v1424_v32, %v1424_v32  ;;  %v1019_v38 = vadd.f32 %v4966_v11, %v4715_v61 }
 0x156   : > { %v5043_v18 = vpop.f32.mrf.mxu2  ;;  %1923 = vmatpush.bf16.msra.mxu0 %v1891_v7  ;;  %v5047_v36 = vpop.f32.mrf.mxu0  ;;  %v1615_v7 = vpack.c.bf16 %v1423_v27, %v1423_v27  ;;  %v1021_v34 = vadd.f32 %v4974_v28, %v4726_v5  ;;  %v1445_v58 = vmax.f32 %v1024_v25, 0.0  ;;  %v1446_v22 = vmax.f32 %v1026_v46, 0.0 }
 0x157   : > { %v5045_v62 = vpop.f32.mrf.mxu3  ;;  %v5049_v45 = vpop.f32.mrf.mxu1  ;;  %v1639_v47 = vpack.c.bf16 %v1447_v39, %v1447_v39  ;;  %v1419_v30 = vmax.f32 %v942_v57, 0.0  ;;  %v1420_v35 = vmax.f32 %v944_v0, 0.0  ;;  %v1443_v60 = vmax.f32 %v1019_v38, 0.0 }
 0x158   : > { %2053 = vmatpush.bf16.msra.mxu2 %v2034_v41  ;;  %v2148_v23 = vunpack.c.l.b16 %v1615_v7  ;;  %v1637_v10 = vpack.c.bf16 %v1445_v58, %v1445_v58 }
 0x159   : > { %v2278_v29 = vunpack.c.l.b16 %v1639_v47  ;;  %v1612_v50 = vpack.c.bf16 %v1420_v35, %v1420_v35  ;;  %v1635_v43 = vpack.c.bf16 %v1443_v60, %v1443_v60 }
 0x15a   : > { %1924 = vmatpush.bf16.msra.mxu0 %v1890_v54  ;;  %v1614_v54 = vpack.c.bf16 %v1422_v12, %v1422_v12  ;;  %v2276_v25 = vunpack.c.l.b16 %v1637_v10  ;;  %v5119_v12 = vpop.permute.xlu1 %606 }
 0x15b   : > { %v2145_v0 = vunpack.c.l.b16 %v1612_v50  ;;  %6917 = vst [vmem:[#allocation37_spill] sm:$0xff] %v5119_v12  ;;  %v2274_v7 = vunpack.c.l.b16 %v1635_v43  ;;  %v880_v58 = vadd.f32 %v5031_v59, %v5119_v12  ;;  %v957_v59 = vadd.f32 %v5043_v18, %v5119_v12 }
 0x15c   : > { %2054 = vmatpush.bf16.msra.mxu2 %v2033_v13  ;;  %v1444_v13 = vmax.f32 %v1021_v34, 0.0  ;;  %v803_v34 = vadd.f32 %v5029_v56, %v5119_v12 }
 0x15d   : > { %v1401_v56 = vmax.f32 %v880_v58, 0.0  ;;  %v1425_v50 = vmax.f32 %v957_v59, 0.0  ;;  %v6925_v59 = vld [vmem:[#allocation23_spill] sm:$0xff] }
 0x15e   : > { %v5054_v63 = vpop.f32.mrf.mxu2  ;;  %1925 = vmatpush.bf16.msra.mxu0 %v1889_v52  ;;  %v5061_v37 = vpop.f32.mrf.mxu0  ;;  %v1638_v52 = vpack.c.bf16 %v1446_v22, %v1446_v22  ;;  %v1636_v32 = vpack.c.bf16 %v1444_v13, %v1444_v13 }
 0x15f   : > { %v5059_v33 = vpop.f32.mrf.mxu3  ;;  %v5063_v21 = vpop.f32.mrf.mxu1 }
 0x160   : > { %2055 = vmatpush.bf16.msra.mxu2 %v2032_v16  ;;  %v1611_v16 = vpack.c.bf16 %v1419_v30, %v1419_v30  ;;  %v2277_v46 = vunpack.c.l.b16 %v1638_v52  ;;  %v1593_v52 = vpack.c.bf16 %v1401_v56, %v1401_v56  ;;  %v6924_v56 = vld [vmem:[#allocation15_spill] sm:$0xff] }
 0x161   : > { %4021 = vmatmul.msk.bf16.gmra.mxu0 %vm709_vm3, %v4701_v55 }
 0x162   : > { %4037 = vmatmul.msk.bf16.gmra.mxu1 %vm709_vm3, %v4701_v55  ;;  %1926 = vmatpush.bf16.msra.mxu0 %v4930_v53  ;;  %v1421_v53 = vmax.f32 %v947_v48, 0.0  ;;  %v2144_v57 = vunpack.c.l.b16 %v1611_v16  ;;  %v5151_v16 = vadd.f32 %v5045_v62, %v5119_v12 }
 0x163   : > { %4053 = vmatmul.msk.bf16.gmra.mxu2 %vm709_vm3, %v4701_v55 }
 0x164   : > { %4069 = vmatmul.msk.bf16.gmra.mxu3 %vm709_vm3, %v4701_v55  ;;  %2056 = vmatpush.bf16.msra.mxu2 %v4934_v8  ;;  %v1640_v55 = vpack.c.bf16 %v1448_v42, %v1448_v42  ;;  %v1613_v28 = vpack.c.bf16 %v1421_v53, %v1421_v53  ;;  %v5115_v53 = vpop.permute.xlu2 %611  ;;  %v2163_v47 = vpack.c.b16 %v2145_v0, %v2144_v57  ;;  %v6921_v0 = vld [vmem:[#allocation33_spill] sm:$0xff] }
 0x165   : > { %6916 = vst [vmem:[#allocation36_spill] sm:$0xff] %v5115_v53  ;;  %v805_v38 = vadd.f32 %v5047_v36, %v5115_v53  ;;  %v882_v22 = vadd.f32 %v5049_v45, %v5115_v53 }
 0x166   : > { %v5091_v51 = vpop.f32.mrf.mxu2  ;;  %1927 = vmatpush.bf16.msra.mxu0 %v4903_v40  ;;  %v5096_v8 = vpop.f32.mrf.mxu0  ;;  %v2149_v40 = vunpack.c.l.b16 %v1616_v44  ;;  %v2279_v24 = vunpack.c.l.b16 %v1640_v55  ;;  %v2146_v31 = vunpack.c.l.b16 %v1613_v28  ;;  %v2275_v44 = vunpack.c.l.b16 %v1636_v32 }
 0x167   : > { %v5094_v41 = vpop.f32.mrf.mxu3  ;;  %v5101_v11 = vpop.f32.mrf.mxu1  ;;  %v1378_v28 = vmax.f32 %v805_v38, 0.0 }
 0x168   : > { %2057 = vmatpush.bf16.msra.mxu2 %v4906_v26  ;;  %v2147_v26 = vunpack.c.l.b16 %v1614_v54  ;;  %v2165_v48 = vpack.c.b16 %v2149_v40, %v2148_v23  ;;  %v2293_v36 = vpack.c.b16 %v2275_v44, %v2274_v7  ;;  %v1377_v54 = vmax.f32 %v803_v34, 0.0  ;;  %v6918_v40 = vld [vmem:[#allocation24_spill] sm:$0xff] }
 0x169   : > { %v1402_v23 = vmax.f32 %v882_v22, 0.0  ;;  %v1570_v45 = vpack.c.bf16 %v1378_v28, %v1378_v28  ;;  %v808_v60 = vadd.f32 %v5061_v37, %v6918_v40  ;;  %v885_v13 = vadd.f32 %v5063_v21, %v6918_v40  ;;  %v6922_v44 = vld [vmem:[#allocation16_spill] sm:$0xff]  ;;  %v6923_v22 = vld [vmem:[#allocation30_spill] sm:$0xff] }
 0x16a   : > { %1928 = vmatpush.bf16.msra.mxu0 %v4855_v4  ;;  %v2295_v4 = vpack.c.b16 %v2279_v24, %v2278_v29  ;;  %v1569_v10 = vpack.c.bf16 %v1377_v54, %v1377_v54  ;;  %v6919_v24 = vld [vmem:[#allocation34_spill] sm:$0xff]  ;;  %v962_v18 = vadd.f32 %v5091_v51, %v6918_v40  ;;  %v959_v37 = vadd.f32 %v5054_v63, %v5115_v53 }
 0x16b   : > { %v1594_v29 = vpack.c.bf16 %v1402_v23, %v1402_v23  ;;  %v810_v21 = vadd.f32 %v5096_v8, %v5098_v49  ;;  %v1878_v43 = vunpack.c.l.b16 %v1570_v45  ;;  %v1379_v62 = vmax.f32 %v808_v60, 0.0  ;;  %v4272_v8 = vld [vmem:[%s6891_s1 + $0x38] sm:$0xff]  ;;  %v6926_v60 = vld [vmem:[#allocation31_spill] sm:$0xff] }
 0x16c   : > { %2058 = vmatpush.bf16.msra.mxu2 %v4859_v9  ;;  %v1403_v32 = vmax.f32 %v885_v13, 0.0  ;;  %v887_v51 = vadd.f32 %v5101_v11, %v5098_v49  ;;  %v1039_v63 = vadd.f32 %v5094_v41, %v6918_v40  ;;  %v5176_v11 = vadd.f32 %v5059_v33, %v5115_v53 }
 0x16d   : > { %v2021_v57 = vunpack.c.l.b16 %v1594_v29  ;;  %v1427_v7 = vmax.f32 %v962_v18, 0.0  ;;  %v5180_v41 = vpack.c.bf16 %v1425_v50, %v1425_v50  ;;  %v1426_v38 = vmax.f32 %v959_v37, 0.0 }
 0x16e   : > { %v5105_v27 = vpop.f32.mrf.mxu2  ;;  %1929 = vmatpush.bf16.msra.mxu0 %v4895_v2  ;;  %v5110_v42 = vpop.f32.mrf.mxu0  ;;  %v2164_v2 = vpack.c.b16 %v2147_v26, %v2146_v31  ;;  %v1380_v34 = vmax.f32 %v810_v21, 0.0  ;;  %v1404_v33 = vmax.f32 %v887_v51, 0.0  ;;  %v1451_v54 = vmax.f32 %v1039_v63, 0.0  ;;  %v6929_v63 = vld [vmem:[#allocation27_spill] sm:$0xff] }
 0x16f   : > { %v5108_v39 = vpop.f32.mrf.mxu3  ;;  %v5113_v9 = vpop.f32.mrf.mxu1  ;;  %v813_v23 = vadd.f32 %v5110_v42, %v6924_v56  ;;  %v5203_v50 = vpack.c.bf16 %v1426_v38, %v1426_v38 }
 0x170   : > { %2059 = vmatpush.bf16.msra.mxu2 %v4897_v3  ;;  %v2294_v3 = vpack.c.b16 %v2277_v46, %v2276_v25  ;;  %v1877_v46 = vunpack.c.l.b16 %v1569_v10  ;;  %v1450_v10 = vmax.f32 %v5176_v11, 0.0  ;;  %v890_v29 = vadd.f32 %v5113_v9, %v6924_v56  ;;  %v6928_v9 = vld [vmem:[#allocation13_spill] sm:$0xff] }
 0x171   : > { %4022 = vmatmul.msk.bf16.gmra.mxu0 %vm709_vm3, %v4722_v1  ;;  %v5205_v37 = vpack.c.bf16 %v1380_v34, %v1380_v34 }
 0x172   : > { %2182 = vmatpush.bf16.msrb.mxu0 %v2165_v48  ;;  %4038 = vmatmul.msk.bf16.gmra.mxu1 %vm709_vm3, %v4722_v1  ;;  %v6920_v48 = vld [vmem:[#allocation32_spill] sm:$0xff]  ;;  %v5190_v28 = vpack.c.b16 %v1878_v43, %v1877_v46  ;;  %v5215_v46 = vpack.c.bf16 %v1451_v54, %v1451_v54 }
 0x173   : > { %4054 = vmatmul.msk.bf16.gmra.mxu2 %vm709_vm3, %v4722_v1  ;;  %v1880_v38 = vunpack.c.l.b16 %v5205_v37  ;;  %v6931_v37 = vld [vmem:[#allocation29_spill] sm:$0xff] }
 0x174   : > { %2312 = vmatpush.bf16.msrb.mxu2 %v2295_v4  ;;  %4070 = vmatmul.msk.bf16.gmra.mxu3 %vm709_vm3, %v4722_v1  ;;  %v2020_v4 = vunpack.c.l.b16 %v1593_v52  ;;  %v5199_v52 = vpack.c.bf16 %v1427_v7, %v1427_v7 }
 0x176   : > { %2183 = vmatpush.bf16.msrb.mxu0 %v2164_v2  ;;  %v5135_v55 = vpop.f32.mrf.mxu2  ;;  %v814_v35 = vpop.f32.mrf.mxu0  ;;  %v1449_v2 = vmax.f32 %v5151_v16, 0.0  ;;  %v5196_v13 = vpack.c.b16 %v2021_v57, %v2020_v4  ;;  %v1381_v4 = vmax.f32 %v813_v23, 0.0  ;;  %v5225_v23 = vadd.f32 %v5105_v27, %v5098_v49 }
 0x177   : > { %v5137_v30 = vpop.f32.mrf.mxu3  ;;  %v5139_v1 = vpop.f32.mrf.mxu1  ;;  %v815_v45 = vadd.f32 %v814_v35, %v6925_v59  ;;  %v2150_v16 = vunpack.c.l.b16 %v5180_v41  ;;  %v6937_v41 = vld [vmem:[#allocation18_spill] sm:$0xff] }
 0x178   : > { %2313 = vmatpush.bf16.msrb.mxu2 %v2294_v3  ;;  %v892_v42 = vadd.f32 %v5139_v1, %v6925_v59 }
 0x179   : > { %v1382_v57 = vmax.f32 %v815_v45, 0.0 }
 0x17a   : > { %2184 = vmatpush.bf16.msrb.mxu0 %v2163_v47  ;;  %v5185_v47 = vpack.c.bf16 %v1379_v62, %v1379_v62  ;;  %v1406_v34 = vmax.f32 %v892_v42, 0.0 }
 0x17c   : > { %2314 = vmatpush.bf16.msrb.mxu2 %v2293_v36  ;;  %v5187_v36 = vpack.c.bf16 %v1403_v32, %v1403_v32  ;;  %v1879_v43 = vunpack.c.l.b16 %v5185_v47  ;;  %v5212_v32 = vpack.c.bf16 %v1404_v33, %v1404_v33  ;;  %v6930_v33 = vld [vmem:[#allocation28_spill] sm:$0xff] }
 0x17e   : > { %2185 = vmatpush.bf16.msrb.mxu0 %v4968_v6  ;;  %v5155_v6 = vpop.f32.mrf.mxu2  ;;  %v817_v26 = vpop.f32.mrf.mxu0  ;;  %v2022_v62 = vunpack.c.l.b16 %v5187_v36  ;;  %v2023_v54 = vunpack.c.l.b16 %v5212_v32 }
 0x17f   : > { %v5161_v31 = vpop.f32.mrf.mxu3  ;;  %v894_v25 = vpop.f32.mrf.mxu1  ;;  %v818_v3 = vadd.f32 %v817_v26, %v6922_v44 }
 0x180   : > { %2315 = vmatpush.bf16.msrb.mxu2 %v6919_v24  ;;  %v895_v58 = vadd.f32 %v894_v25, %v6922_v44 }
 0x181   : > { %4023 = vmatmul.msk.bf16.gmra.mxu0 %vm709_vm3, %v4272_v8  ;;  %v1383_v24 = vmax.f32 %v818_v3, 0.0 }
 0x182   : > { %2186 = vmatpush.bf16.msrb.mxu0 %v6920_v48  ;;  %4039 = vmatmul.msk.bf16.gmra.mxu1 %vm709_vm3, %v4272_v8  ;;  %v1407_v35 = vmax.f32 %v895_v58, 0.0  ;;  %v6927_v48 = vld [vmem:[#allocation26_spill] sm:$0xff] }
 0x183   : > { %4055 = vmatmul.msk.bf16.gmra.mxu2 %vm709_vm3, %v4272_v8  ;;  %v1575_v7 = vpack.c.bf16 %v1383_v24, %v1383_v24 }
 0x184   : > { %2316 = vmatpush.bf16.msrb.mxu2 %v6921_v0  ;;  %4071 = vmatmul.msk.bf16.gmra.mxu3 %vm709_vm3, %v4272_v8  ;;  %v1405_v8 = vmax.f32 %v890_v29, 0.0  ;;  %v1599_v58 = vpack.c.bf16 %v1407_v35, %v1407_v35  ;;  %v1574_v29 = vpack.c.bf16 %v1382_v57, %v1382_v57  ;;  %v967_v35 = vadd.f32 %v5135_v55, %v6924_v56 }
 0x186   : > { %2187 = vmatpush.bf16.msrb.mxu0 %v6923_v22  ;;  %v971_v18 = vpop.f32.mrf.mxu2  ;;  %v819_v26 = vpop.f32.mrf.mxu0  ;;  %v1597_v42 = vpack.c.bf16 %v1405_v8, %v1405_v8  ;;  %v2026_v27 = vunpack.c.l.b16 %v1599_v58  ;;  %v5243_v58 = vadd.f32 %v5108_v39, %v5098_v49  ;;  %v1046_v39 = vadd.f32 %v5161_v31, %v6925_v59 }
 0x187   : > { %v1048_v21 = vpop.f32.mrf.mxu3  ;;  %v820_v51 = vadd.f32 %v819_v26, %v6928_v9  ;;  %v896_v25 = vpop.f32.mrf.mxu1  ;;  %v972_v45 = vadd.f32 %v971_v18, %v6922_v44  ;;  %v1573_v26 = vpack.c.bf16 %v1381_v4, %v1381_v4 }
 0x188   : > { %2317 = vmatpush.bf16.msrb.mxu2 %v6926_v60  ;;  %v897_v1 = vadd.f32 %v896_v25, %v6928_v9  ;;  %v1049_v24 = vadd.f32 %v1048_v21, %v6922_v44  ;;  %v969_v21 = vadd.f32 %v5155_v6, %v6925_v59 }
 0x189   : > { %v1384_v3 = vmax.f32 %v820_v51, 0.0  ;;  %v1883_v51 = vunpack.c.l.b16 %v1575_v7  ;;  %v1431_v57 = vmax.f32 %v972_v45, 0.0  ;;  %v1881_v6 = vunpack.c.l.b16 %v1573_v26 }
 0x18a   : > { %2188 = vmatpush.bf16.msrb.mxu0 %v6927_v48  ;;  %v1408_v22 = vmax.f32 %v897_v1, 0.0  ;;  %v1598_v1 = vpack.c.bf16 %v1406_v34, %v1406_v34  ;;  %v1455_v55 = vmax.f32 %v1049_v24, 0.0  ;;  %v4273_v34 = vld [vmem:[%s6891_s1 + $0x40] sm:$0xff]  ;;  %v1044_v24 = vadd.f32 %v5137_v30, %v6924_v56 }
 0x18b   : > { %v1576_v60 = vpack.c.bf16 %v1384_v3, %v1384_v3  ;;  %v1894_v26 = vpack.c.b16 %v1880_v38, %v1879_v43 }
 0x18c   : > { %2318 = vmatpush.bf16.msrb.mxu2 %v6929_v63  ;;  %v1600_v48 = vpack.c.bf16 %v1408_v22, %v1408_v22 }
 0x18d   : > { %v1884_v32 = vunpack.c.l.b16 %v1576_v60  ;;  %v6932_v60 = vld [vmem:[#allocation21_spill] sm:$0xff] }
 0x18e   : > { %2189 = vmatpush.bf16.msrb.mxu0 %v6930_v33  ;;  %v973_v25 = vpop.f32.mrf.mxu2  ;;  %v2027_v63 = vunpack.c.l.b16 %v1600_v48  ;;  %v1070_v4 = vpop.f32.mrf.mxu0 }
 0x18f   : > { %v974_v18 = vadd.f32 %v973_v25, %v6928_v9  ;;  %v1050_v3 = vpop.f32.mrf.mxu3  ;;  %v1896_v22 = vpack.c.b16 %v1884_v32, %v1883_v51  ;;  %v1147_v33 = vpop.f32.mrf.mxu1  ;;  %v1071_v0 = vadd.f32 %v1070_v4, %v6932_v60  ;;  %v2025_v51 = vunpack.c.l.b16 %v1598_v1 }
 0x190   : > { %2319 = vmatpush.bf16.msrb.mxu2 %v6931_v37  ;;  %v1051_v8 = vadd.f32 %v1050_v3, %v6928_v9  ;;  %v1882_v37 = vunpack.c.l.b16 %v1574_v29  ;;  %v2039_v7 = vpack.c.b16 %v2027_v63, %v2026_v27  ;;  %v1429_v29 = vmax.f32 %v967_v35, 0.0 }
 0x191   : > { %4024 = vmatmul.msk.bf16.gmra.mxu0 %vm709_vm3, %v4273_v34  ;;  %v1432_v45 = vmax.f32 %v974_v18, 0.0  ;;  %v1148_v32 = vadd.f32 %v1147_v33, %v6932_v60  ;;  %1955 = vmatpush.bf16.msra.mxu1 %v1896_v22  ;;  %v1430_v25 = vmax.f32 %v969_v21, 0.0  ;;  %v1623_v27 = vpack.c.bf16 %v1431_v57, %v1431_v57 }
 0x192   : > { %v1456_v48 = vmax.f32 %v1051_v8, 0.0  ;;  %4040 = vmatmul.msk.bf16.gmra.mxu1 %vm709_vm3, %v4273_v34  ;;  %v2024_v35 = vunpack.c.l.b16 %v1597_v42  ;;  %v1647_v63 = vpack.c.bf16 %v1455_v55, %v1455_v55  ;;  %v1457_v18 = vmax.f32 %v1071_v0, 0.0  ;;  %2085 = vmatpush.bf16.msra.mxu3 %v2039_v7 }
 0x193   : > { %4056 = vmatmul.msk.bf16.gmra.mxu2 %vm709_vm3, %v4273_v34  ;;  %v1895_v30 = vpack.c.b16 %v1882_v37, %v1881_v6  ;;  %v1428_v1 = vmax.f32 %v5225_v23, 0.0  ;;  %v1624_v3 = vpack.c.bf16 %v1432_v45, %v1432_v45  ;;  %v2037_v21 = vpack.c.b16 %v2023_v54, %v2022_v62  ;;  %v6933_v37 = vld [vmem:[#allocation25_spill] sm:$0xff] }
 0x194   : > { %4072 = vmatmul.msk.bf16.gmra.mxu3 %vm709_vm3, %v4273_v34  ;;  %v1648_v4 = vpack.c.bf16 %v1456_v48, %v1456_v48  ;;  %v5258_v31 = vpack.c.bf16 %v1429_v29, %v1429_v29  ;;  %v1453_v57 = vmax.f32 %v1044_v24, 0.0  ;;  %v1481_v8 = vmax.f32 %v1148_v32, 0.0 }
 0x195   : > { %1956 = vmatpush.bf16.msra.mxu1 %v1895_v30  ;;  %v2038_v47 = vpack.c.b16 %v2025_v51, %v2024_v35  ;;  %v1622_v38 = vpack.c.bf16 %v1430_v25, %v1430_v25  ;;  %v1454_v0 = vmax.f32 %v1046_v39, 0.0  ;;  %v2156_v42 = vunpack.c.l.b16 %v1623_v27 }
 0x196   : > { %v1224_v22 = vpop.f32.mrf.mxu2  ;;  %v1072_v43 = vpop.f32.mrf.mxu0  ;;  %v2286_v7 = vunpack.c.l.b16 %v1647_v63  ;;  %v1649_v34 = vpack.c.bf16 %v1457_v18, %v1457_v18  ;;  %v2157_v62 = vunpack.c.l.b16 %v1624_v3  ;;  %v2287_v54 = vunpack.c.l.b16 %v1648_v4 }
 0x197   : > { %v1301_v33 = vpop.f32.mrf.mxu3  ;;  %v1073_v55 = vadd.f32 %v1072_v43, %v6933_v37  ;;  %v1149_v23 = vpop.f32.mrf.mxu1  ;;  %v1225_v6 = vadd.f32 %v1224_v22, %v6932_v60  ;;  %2086 = vmatpush.bf16.msra.mxu3 %v2038_v47  ;;  %v5264_v29 = vpack.c.bf16 %v1428_v1, %v1428_v1  ;;  %v1452_v24 = vmax.f32 %v5243_v58, 0.0 }
 0x198   : > { %v1150_v36 = vadd.f32 %v1149_v23, %v6933_v37  ;;  %v1302_v45 = vadd.f32 %v1301_v33, %v6932_v60  ;;  %v1673_v51 = vpack.c.bf16 %v1481_v8, %v1481_v8  ;;  %v2154_v25 = vunpack.c.l.b16 %v5258_v31 }
 0x199   : > { %v1458_v48 = vmax.f32 %v1073_v55, 0.0  ;;  %1957 = vmatpush.bf16.msra.mxu1 %v1894_v26  ;;  %v1645_v39 = vpack.c.bf16 %v1453_v57, %v1453_v57  ;;  %v1646_v27 = vpack.c.bf16 %v1454_v0, %v1454_v0  ;;  %v2155_v63 = vunpack.c.l.b16 %v1622_v38 }
 0x19a   : > { %v1482_v32 = vmax.f32 %v1150_v36, 0.0  ;;  %v2394_v18 = vunpack.c.l.b16 %v1649_v34  ;;  %v1505_v30 = vmax.f32 %v1225_v6, 0.0  ;;  %v2169_v4 = vpack.c.b16 %v2157_v62, %v2156_v42  ;;  %v4274_v34 = vld [vmem:[%s6891_s1 + $0x48] sm:$0xff] }
 0x19b   : > { %v1650_v35 = vpack.c.bf16 %v1458_v48, %v1458_v48  ;;  %2087 = vmatpush.bf16.msra.mxu3 %v2037_v21  ;;  %v2299_v60 = vpack.c.b16 %v2287_v54, %v2286_v7  ;;  %v1529_v22 = vmax.f32 %v1302_v45, 0.0  ;;  %v1644_v47 = vpack.c.bf16 %v1452_v24, %v1452_v24  ;;  %v6934_v36 = vld [vmem:[#allocation22_spill] sm:$0xff] }
 0x19c   : > { %v1674_v3 = vpack.c.bf16 %v1482_v32, %v1482_v32  ;;  %v2524_v58 = vunpack.c.l.b16 %v1673_v51  ;;  %v2284_v57 = vunpack.c.l.b16 %v1645_v39  ;;  %v2285_v38 = vunpack.c.l.b16 %v1646_v27 }
 0x19d   : > { %v2395_v1 = vunpack.c.l.b16 %v1650_v35  ;;  %1958 = vmatpush.bf16.msra.mxu1 %v5190_v28  ;;  %v2153_v42 = vunpack.c.l.b16 %v5264_v29  ;;  %v1697_v23 = vpack.c.bf16 %v1505_v30, %v1505_v30  ;;  %v1721_v6 = vpack.c.bf16 %v1529_v22, %v1529_v22 }
 0x19e   : > { %v1226_v33 = vpop.f32.mrf.mxu2  ;;  %v2525_v8 = vunpack.c.l.b16 %v1674_v3  ;;  %v1075_v31 = vpop.f32.mrf.mxu0  ;;  %v2168_v54 = vpack.c.b16 %v2155_v63, %v2154_v25  ;;  %v1642_v45 = vpack.c.bf16 %v1450_v10, %v1450_v10  ;;  %v2282_v24 = vunpack.c.l.b16 %v5215_v46 }
 0x19f   : > { %v1227_v26 = vadd.f32 %v1226_v33, %v6933_v37  ;;  %v1303_v43 = vpop.f32.mrf.mxu3  ;;  %v1152_v55 = vpop.f32.mrf.mxu1  ;;  %v5271_v21 = vpack.c.b16 %v2395_v1, %v2394_v18  ;;  %2088 = vmatpush.bf16.msra.mxu3 %v5196_v13  ;;  %v1076_v62 = vadd.f32 %v1075_v31, %v6934_v36  ;;  %v1641_v13 = vpack.c.bf16 %v1449_v2, %v1449_v2 }
 0x1a0   : > { %v1304_v0 = vadd.f32 %v1303_v43, %v6933_v37  ;;  %v5279_v28 = vpack.c.b16 %v2525_v8, %v2524_v58  ;;  %v1153_v29 = vadd.f32 %v1152_v55, %v6934_v36  ;;  %v2283_v51 = vunpack.c.l.b16 %v1644_v47 }
 0x1a1   : > { %2215 = vmatpush.bf16.msrb.mxu1 %v2169_v4  ;;  %v1506_v7 = vmax.f32 %v1227_v26, 0.0  ;;  %4025 = vmatmul.msk.bf16.gmra.mxu0 %vm709_vm3, %v4274_v34  ;;  %v2298_v25 = vpack.c.b16 %v2285_v38, %v2284_v57  ;;  %v2151_v2 = vunpack.c.l.b16 %v5203_v50  ;;  %v2654_v11 = vunpack.c.l.b16 %v1697_v23 }
 0x1a2   : > { %v1530_v37 = vmax.f32 %v1304_v0, 0.0  ;;  %4041 = vmatmul.msk.bf16.gmra.mxu1 %vm709_vm3, %v4274_v34  ;;  %v2784_v10 = vunpack.c.l.b16 %v1721_v6  ;;  %v1459_v35 = vmax.f32 %v1076_v62, 0.0  ;;  %v6935_v18 = vunpack.c.l.b16 %v5199_v52 }
 0x1a3   : > { %2345 = vmatpush.bf16.msrb.mxu3 %v2299_v60  ;;  %v1698_v48 = vpack.c.bf16 %v1506_v7, %v1506_v7  ;;  %4057 = vmatmul.msk.bf16.gmra.mxu2 %vm709_vm3, %v4274_v34  ;;  %v2280_v30 = vunpack.c.l.b16 %v1641_v13  ;;  %v1483_v3 = vmax.f32 %v1153_v29, 0.0  ;;  %v2281_v1 = vunpack.c.l.b16 %v1642_v45 }
 0x1a4   : > { %v1722_v32 = vpack.c.bf16 %v1530_v37, %v1530_v37  ;;  %4073 = vmatmul.msk.bf16.gmra.mxu3 %vm709_vm3, %v4274_v34  ;;  %v2167_v46 = vpack.c.b16 %v2153_v42, %v6935_v18  ;;  %v2297_v47 = vpack.c.b16 %v2283_v51, %v2282_v24  ;;  %v1651_v52 = vpack.c.bf16 %v1459_v35, %v1459_v35 }
 0x1a5   : > { %2216 = vmatpush.bf16.msrb.mxu1 %v2168_v54  ;;  %v2655_v39 = vunpack.c.l.b16 %v1698_v48  ;;  %v2166_v57 = vpack.c.b16 %v2151_v2, %v2150_v16  ;;  %v1675_v38 = vpack.c.bf16 %v1483_v3, %v1483_v3  ;;  %v2296_v42 = vpack.c.b16 %v2281_v1, %v2280_v30  ;;  %v4275_v16 = vld [vmem:[%s6891_s1 + $0x50] sm:$0xff] }
 0x1a6   : > { %v2785_v27 = vunpack.c.l.b16 %v1722_v32  ;;  %v1229_v63 = vpop.f32.mrf.mxu2  ;;  %v1077_v60 = vpop.f32.mrf.mxu0  ;;  %v2396_v34 = vunpack.c.l.b16 %v1651_v52 }
 0x1a7   : > { %2346 = vmatpush.bf16.msrb.mxu3 %v2298_v25  ;;  %v1306_v4 = vpop.f32.mrf.mxu3  ;;  %v5297_v22 = vpack.c.b16 %v2655_v39, %v2654_v11  ;;  %v1078_v33 = vadd.f32 %v1077_v60, %v6937_v41  ;;  %v1154_v50 = vpop.f32.mrf.mxu1  ;;  %v1230_v8 = vadd.f32 %v1229_v63, %v6934_v36  ;;  %v2526_v54 = vunpack.c.l.b16 %v1675_v38 }
 0x1a8   : > { %v5300_v58 = vpack.c.b16 %v2785_v27, %v2784_v10  ;;  %v1155_v26 = vadd.f32 %v1154_v50, %v6937_v41  ;;  %v1307_v43 = vadd.f32 %v1306_v4, %v6934_v36  ;;  %v6939_v10 = vld [vmem:[#allocation20_spill] sm:$0xff] }
 0x1a9   : > { %6936 = vst [vmem:[#allocation34_spill] sm:$0xff] %v5297_v22  ;;  %2217 = vmatpush.bf16.msrb.mxu1 %v2167_v46  ;;  %v1460_v31 = vmax.f32 %v1078_v33, 0.0  ;;  %v1507_v23 = vmax.f32 %v1230_v8, 0.0  ;;  %v6941_v8 = vld [vmem:[#allocation19_spill] sm:$0xff] }
 0x1aa   : > { %6938 = vst [vmem:[#allocation32_spill] sm:$0xff] %v5300_v58  ;;  %v1484_v0 = vmax.f32 %v1155_v26, 0.0  ;;  %v1531_v6 = vmax.f32 %v1307_v43, 0.0 }
 0x1ab   : > { %2347 = vmatpush.bf16.msrb.mxu3 %v2297_v47  ;;  %v1652_v55 = vpack.c.bf16 %v1460_v31, %v1460_v31  ;;  %v1699_v32 = vpack.c.bf16 %v1507_v23, %v1507_v23 }
 0x1ac   : > { %v1676_v7 = vpack.c.bf16 %v1484_v0, %v1484_v0  ;;  %v1723_v11 = vpack.c.bf16 %v1531_v6, %v1531_v6 }
 0x1ad   : > { %2218 = vmatpush.bf16.msrb.mxu1 %v2166_v57  ;;  %v2397_v37 = vunpack.c.l.b16 %v1652_v55  ;;  %v2656_v46 = vunpack.c.l.b16 %v1699_v32 }
 0x1ae   : > { %v1231_v62 = vpop.f32.mrf.mxu2  ;;  %v2527_v13 = vunpack.c.l.b16 %v1676_v7  ;;  %v1080_v48 = vpop.f32.mrf.mxu0  ;;  %v2786_v3 = vunpack.c.l.b16 %v1723_v11 }
 0x1af   : > { %2348 = vmatpush.bf16.msrb.mxu3 %v2296_v42  ;;  %v1232_v45 = vadd.f32 %v1231_v62, %v6937_v41  ;;  %v1308_v36 = vpop.f32.mrf.mxu3  ;;  %v1157_v24 = vpop.f32.mrf.mxu1  ;;  %v5307_v51 = vpack.c.b16 %v2397_v37, %v2396_v34  ;;  %v1081_v27 = vadd.f32 %v1080_v48, %v6939_v10 }
 0x1b0   : > { %v1309_v29 = vadd.f32 %v1308_v36, %v6937_v41  ;;  %v5313_v2 = vpack.c.b16 %v2527_v13, %v2526_v54  ;;  %v1158_v63 = vadd.f32 %v1157_v24, %v6939_v10 }
 0x1b1   : > { %v1508_v25 = vmax.f32 %v1232_v45, 0.0  ;;  %4026 = vmatmul.msk.bf16.gmra.mxu0 %vm709_vm3, %v4275_v16  ;;  %v1461_v60 = vmax.f32 %v1081_v27, 0.0 }
 0x1b2   : > { %v1532_v39 = vmax.f32 %v1309_v29, 0.0  ;;  %4042 = vmatmul.msk.bf16.gmra.mxu1 %vm709_vm3, %v4275_v16  ;;  %v1485_v41 = vmax.f32 %v1158_v63, 0.0 }
 0x1b3   : > { %v1700_v35 = vpack.c.bf16 %v1508_v25, %v1508_v25  ;;  %4058 = vmatmul.msk.bf16.gmra.mxu2 %vm709_vm3, %v4275_v16  ;;  %v1653_v38 = vpack.c.bf16 %v1461_v60, %v1461_v60 }
 0x1b4   : > { %v1724_v18 = vpack.c.bf16 %v1532_v39, %v1532_v39  ;;  %4074 = vmatmul.msk.bf16.gmra.mxu3 %vm709_vm3, %v4275_v16  ;;  %v1677_v42 = vpack.c.bf16 %v1485_v41, %v1485_v41 }
 0x1b5   : > { %v2657_v30 = vunpack.c.l.b16 %v1700_v35  ;;  %v2398_v37 = vunpack.c.l.b16 %v1653_v38  ;;  %v6945_v38 = vld [vmem:[#allocation17_spill] sm:$0xff] }
 0x1b6   : > { %v2787_v4 = vunpack.c.l.b16 %v1724_v18  ;;  %v1234_v1 = vpop.f32.mrf.mxu2  ;;  %v1082_v50 = vpop.f32.mrf.mxu0  ;;  %v2528_v45 = vunpack.c.l.b16 %v1677_v42  ;;  %v6943_v18 = vld [vmem:[#allocation12_spill] sm:$0xff] }
 0x1b7   : > { %v1311_v33 = vpop.f32.mrf.mxu3  ;;  %v5320_v47 = vpack.c.b16 %v2657_v30, %v2656_v46  ;;  %v1083_v26 = vadd.f32 %v1082_v50, %v6941_v8  ;;  %v1159_v52 = vpop.f32.mrf.mxu1  ;;  %v1235_v31 = vadd.f32 %v1234_v1, %v6939_v10 }
 0x1b8   : > { %v5323_v43 = vpack.c.b16 %v2787_v4, %v2786_v3  ;;  %v1160_v57 = vadd.f32 %v1159_v52, %v6941_v8  ;;  %v1312_v0 = vadd.f32 %v1311_v33, %v6939_v10  ;;  %v4276_v10 = vld [vmem:[%s6891_s1 + $0x58] sm:$0xff] }
 0x1b9   : > { %6940 = vst [vmem:[#allocation33_spill] sm:$0xff] %v5320_v47  ;;  %v1462_v55 = vmax.f32 %v1083_v26, 0.0  ;;  %v1509_v34 = vmax.f32 %v1235_v31, 0.0 }
 0x1ba   : > { %6942 = vst [vmem:[#allocation30_spill] sm:$0xff] %v5323_v43  ;;  %v1486_v23 = vmax.f32 %v1160_v57, 0.0  ;;  %v1533_v62 = vmax.f32 %v1312_v0, 0.0 }
 0x1bb   : > { %v1654_v7 = vpack.c.bf16 %v1462_v55, %v1462_v55  ;;  %v1701_v11 = vpack.c.bf16 %v1509_v34, %v1509_v34 }
 0x1bc   : > { %v1678_v6 = vpack.c.bf16 %v1486_v23, %v1486_v23  ;;  %v1725_v35 = vpack.c.bf16 %v1533_v62, %v1533_v62  ;;  %v4078_v62 = vld [vmem:[%s6786_s3] sm:$0xf] }
 0x1bd   : > { %v2399_v54 = vunpack.c.l.b16 %v1654_v7  ;;  %v2658_v60 = vunpack.c.l.b16 %v1701_v11 }
 0x1be   : > { %v1236_v13 = vpop.f32.mrf.mxu2  ;;  %v2529_v36 = vunpack.c.l.b16 %v1678_v6  ;;  %v1085_v24 = vpop.f32.mrf.mxu0  ;;  %v2788_v41 = vunpack.c.l.b16 %v1725_v35 }
 0x1bf   : > { %v1237_v48 = vadd.f32 %v1236_v13, %v6941_v8  ;;  %v1313_v29 = vpop.f32.mrf.mxu3  ;;  %v1162_v25 = vpop.f32.mrf.mxu1  ;;  %v5330_v16 = vpack.c.b16 %v2399_v54, %v2398_v37  ;;  %v1086_v46 = vadd.f32 %v1085_v24, %v6943_v18  ;;  %v4170_v54 = vld [vmem:[%s6786_s3 + $0x4] sm:$0xf0] }
 0x1c0   : > { %v1314_v32 = vadd.f32 %v1313_v29, %v6941_v8  ;;  %v5336_v27 = vpack.c.b16 %v2529_v36, %v2528_v45  ;;  %v1163_v3 = vadd.f32 %v1162_v25, %v6943_v18  ;;  %v4169_v36 = vld [vmem:[%s6786_s3 + $0x4] sm:$0xf]  ;;  %v5363_v25 = vor.u32 %v4170_v54, %v4078_v62 }
 0x1c1   : > { %v1510_v39 = vmax.f32 %v1237_v48, 0.0  ;;  %4027 = vmatmul.msk.bf16.gmra.mxu0 %vm709_vm3, %v4276_v10  ;;  %v1463_v50 = vmax.f32 %v1086_v46, 0.0  ;;  %v4080_v48 = vld [vmem:[%s6786_s3 + $0x8] sm:$0xf0] }
 0x1c2   : > { %v1534_v63 = vmax.f32 %v1314_v32, 0.0  ;;  %4043 = vmatmul.msk.bf16.gmra.mxu1 %vm709_vm3, %v4276_v10  ;;  %v1487_v26 = vmax.f32 %v1163_v3, 0.0 }
 0x1c3   : > { %v1702_v30 = vpack.c.bf16 %v1510_v39, %v1510_v39  ;;  %4059 = vmatmul.msk.bf16.gmra.mxu2 %vm709_vm3, %v4276_v10  ;;  %v1655_v34 = vpack.c.bf16 %v1463_v50, %v1463_v50 }
 0x1c4   : > { %v1726_v4 = vpack.c.bf16 %v1534_v63, %v1534_v63  ;;  %4075 = vmatmul.msk.bf16.gmra.mxu3 %vm709_vm3, %v4276_v10  ;;  %v1679_v13 = vpack.c.bf16 %v1487_v26, %v1487_v26  ;;  %v5365_v63 = vor.u32 %v4169_v36, %v4080_v48 }
 0x1c5   : > { %v2659_v1 = vunpack.c.l.b16 %v1702_v30  ;;  %v2400_v11 = vunpack.c.l.b16 %v1655_v34 }
 0x1c6   : > { %v2789_v33 = vunpack.c.l.b16 %v1726_v4  ;;  %v1239_v8 = vpop.f32.mrf.mxu2  ;;  %v1087_v31 = vpop.f32.mrf.mxu0 }
 0x1c7   : > { %v1316_v52 = vpop.f32.mrf.mxu3  ;;  %v5343_v57 = vpack.c.b16 %v2659_v1, %v2658_v60  ;;  %v1088_v0 = vadd.f32 %v1087_v31, %v6945_v38  ;;  %v1164_v55 = vpop.f32.mrf.mxu1  ;;  %v1240_v23 = vadd.f32 %v1239_v8, %v6943_v18 }
 0x1c8   : > { %v5346_v42 = vpack.c.b16 %v2789_v33, %v2788_v41  ;;  %v1165_v7 = vadd.f32 %v1164_v55, %v6945_v38  ;;  %v1317_v6 = vadd.f32 %v1316_v52, %v6943_v18  ;;  %v2530_v18 = vunpack.c.l.b16 %v1679_v13 }
 0x1c9   : > { %6944 = vst [vmem:[#allocation31_spill] sm:$0xff] %v5343_v57  ;;  %v1464_v37 = vmax.f32 %v1088_v0, 0.0  ;;  %v1511_v24 = vmax.f32 %v1240_v23, 0.0 }
 0x1ca   : > { %6946 = vst [vmem:[#allocation26_spill] sm:$0xff] %v5346_v42  ;;  %v1488_v45 = vmax.f32 %v1165_v7, 0.0  ;;  %v1535_v39 = vmax.f32 %v1317_v6, 0.0 }
 0x1cb   : > { %v1656_v29 = vpack.c.bf16 %v1464_v37, %v1464_v37  ;;  %v1703_v33 = vpack.c.bf16 %v1511_v24, %v1511_v24  ;;  %v4172_v24 = vld [vmem:[%s6786_s3 + $0x14] sm:$0xf0] }
 0x1cc   : > { %v1680_v32 = vpack.c.bf16 %v1488_v45, %v1488_v45  ;;  %v1727_v26 = vpack.c.bf16 %v1535_v39, %v1535_v39  ;;  %v6949_v45 = vld [vmem:[#allocation14_spill] sm:$0xff] }
 0x1cd   : > { %v2401_v10 = vunpack.c.l.b16 %v1656_v29  ;;  %v4086_v29 = vld [vmem:[%s6786_s3 + $0x10] sm:$0xf] }
 0x1ce   : > { %v1241_v35 = vpop.f32.mrf.mxu2  ;;  %v2531_v46 = vunpack.c.l.b16 %v1680_v32  ;;  %v5368_v4 = vpop.f32.mrf.mxu0  ;;  %v2790_v23 = vunpack.c.l.b16 %v1727_v26  ;;  %v4171_v32 = vld [vmem:[%s6786_s3 + $0x14] sm:$0xf] }
 0x1cf   : > { %v1242_v30 = vadd.f32 %v1241_v35, %v6945_v38  ;;  %v1318_v3 = vpop.f32.mrf.mxu3  ;;  %v5371_v1 = vpop.f32.mrf.mxu1  ;;  %v5373_v41 = vpack.c.b16 %v2401_v10, %v2400_v11  ;;  %v4088_v11 = vld [vmem:[%s6786_s3 + $0x18] sm:$0xf0]  ;;  %v5405_v10 = vor.u32 %v4172_v24, %v4086_v29 }
 0x1d0   : > { %v1319_v60 = vadd.f32 %v1318_v3, %v6945_v38  ;;  %v5376_v8 = vpack.c.b16 %v2531_v46, %v2530_v18  ;;  %v2660_v38 = vunpack.c.l.b16 %v1703_v33  ;;  %v5407_v46 = vor.u32 %v4171_v32, %v4088_v11 }
 0x1d1   : > { %v1512_v50 = vmax.f32 %v1242_v30, 0.0  ;;  %1930 = vmatmul.bf16.vlgmr.msra.gmra.mxu0 %v5363_v25 }
 0x1d2   : > { %v1536_v52 = vmax.f32 %v1319_v60, 0.0  ;;  %4108 = vmatmul.msk.bf16.vlgmr.msra.gmra.mxu1 %vm1909_vm4, %v5365_v63 }
 0x1d3   : > { %v1704_v31 = vpack.c.bf16 %v1512_v50, %v1512_v50  ;;  %2060 = vmatmul.bf16.vlgmr.msra.gmra.mxu2 %v5363_v25 }
 0x1d4   : > { %v1728_v0 = vpack.c.bf16 %v1536_v52, %v1536_v52  ;;  %4112 = vmatmul.msk.bf16.vlgmr.msra.gmra.mxu3 %vm1909_vm4, %v5365_v63 }
 0x1d5   : > { %v2661_v55 = vunpack.c.l.b16 %v1704_v31 }
 0x1d6   : > { %v2791_v7 = vunpack.c.l.b16 %v1728_v0  ;;  %v1244_v34 = vpop.f32.mrf.mxu2  ;;  %v5383_v37 = vpop.f32.mrf.mxu0 }
 0x1d7   : > { %v1321_v6 = vpop.f32.mrf.mxu3  ;;  %v5385_v62 = vpack.c.b16 %v2661_v55, %v2660_v38  ;;  %v5387_v54 = vpop.f32.mrf.mxu1  ;;  %v1245_v36 = vadd.f32 %v1244_v34, %v6949_v45 }
 0x1d8   : > { %v5389_v13 = vpack.c.b16 %v2791_v7, %v2790_v23  ;;  %v1322_v48 = vadd.f32 %v1321_v6, %v6949_v45 }
 0x1d9   : > { %6947 = vst [vmem:[#allocation27_spill] sm:$0xff] %v5385_v62  ;;  %v1513_v39 = vmax.f32 %v1245_v36, 0.0 }
 0x1da   : > { %6948 = vst [vmem:[#allocation28_spill] sm:$0xff] %v5389_v13  ;;  %v1537_v35 = vmax.f32 %v1322_v48, 0.0 }
 0x1db   : > { %v1705_v26 = vpack.c.bf16 %v1513_v39, %v1513_v39  ;;  %v4094_v39 = vld [vmem:[%s6786_s3 + $0x20] sm:$0xf] }
 0x1dc   : > { %v1729_v31 = vpack.c.bf16 %v1537_v35, %v1537_v35  ;;  %v4174_v35 = vld [vmem:[%s6786_s3 + $0x24] sm:$0xf0] }
 0x1dd   : > { %v2662_v23 = vunpack.c.l.b16 %v1705_v26 }
 0x1de   : > { %v1246_v18 = vpop.f32.mrf.mxu2  ;;  %v5410_v60 = vpop.f32.mrf.mxu0  ;;  %v2792_v34 = vunpack.c.l.b16 %v1729_v31 }
 0x1df   : > { %v1247_v30 = vadd.f32 %v1246_v18, %v4765_v20  ;;  %v1323_v3 = vpop.f32.mrf.mxu3  ;;  %v5413_v50 = vpop.f32.mrf.mxu1  ;;  %v4173_v18 = vld [vmem:[%s6786_s3 + $0x24] sm:$0xf] }
 0x1e0   : > { %v1324_v33 = vadd.f32 %v1323_v3, %v4765_v20  ;;  %v5441_v3 = vor.u32 %v4174_v35, %v4094_v39  ;;  %v4175_v39 = vld [vmem:[%s6786_s3 + $0x34] sm:$0xf]  ;;  %v4104_v35 = vld [vmem:[%s6786_s3 + $0x38] sm:$0xf0] }
 0x1e1   : > { %v1514_v52 = vmax.f32 %v1247_v30, 0.0  ;;  %1935 = vmatmul.bf16.gmra.mxu0 %v5405_v10  ;;  %v4096_v30 = vld [vmem:[%s6786_s3 + $0x28] sm:$0xf0]  ;;  %v5475_v58 = vor.u32 %v4175_v39, %v4104_v35 }
 0x1e2   : > { %v1538_v0 = vmax.f32 %v1324_v33, 0.0  ;;  %4109 = vmatmul.msk.bf16.gmra.mxu1 %vm1909_vm4, %v5407_v46  ;;  %6952 = vst [vmem:[#allocation25_spill] sm:$0xff] %v5441_v3  ;;  %v5445_v26 = vor.u32 %v4173_v18, %v4096_v30 }
 0x1e3   : > { %v1706_v38 = vpack.c.bf16 %v1514_v52, %v1514_v52  ;;  %2065 = vmatmul.bf16.gmra.mxu2 %v5405_v10  ;;  %6955 = vst [vmem:[#allocation20_spill] sm:$0xff] %v5475_v58 }
 0x1e4   : > { %v1730_v55 = vpack.c.bf16 %v1538_v0, %v1538_v0  ;;  %4113 = vmatmul.msk.bf16.gmra.mxu3 %vm1909_vm4, %v5407_v46  ;;  %6953 = vst [vmem:[#allocation22_spill] sm:$0xff] %v5445_v26 }
 0x1e5   : > { %v2663_v7 = vunpack.c.l.b16 %v1706_v38 }
 0x1e6   : > { %v2793_v6 = vunpack.c.l.b16 %v1730_v55  ;;  %v5421_v36 = vpop.f32.mrf.mxu2  ;;  %v1097_v29 = vpop.f32.mrf.mxu0 }
 0x1e7   : > { %v5423_v48 = vpop.f32.mrf.mxu3  ;;  %v5425_v24 = vpack.c.b16 %v2663_v7, %v2662_v23  ;;  %v1174_v32 = vpop.f32.mrf.mxu1 }
 0x1e8   : > { %v5427_v11 = vpack.c.b16 %v2793_v6, %v2792_v34  ;;  %v4102_v34 = vld [vmem:[%s6786_s3 + $0x30] sm:$0xf]  ;;  %v4176_v6 = vld [vmem:[%s6786_s3 + $0x34] sm:$0xf0] }
 0x1e9   : > { %6950 = vst [vmem:[#allocation29_spill] sm:$0xff] %v5425_v24  ;;  %v5471_v18 = vor.u32 %v4176_v6, %v4102_v34 }
 0x1ea   : > { %6951 = vst [vmem:[#allocation21_spill] sm:$0xff] %v5427_v11 }
 0x1eb   : > { %6954 = vst [vmem:[#allocation18_spill] sm:$0xff] %v5471_v18 }
 0x1ee   : > { %v5443_v33 = vpop.f32.mrf.mxu2  ;;  %v1100_v31 = vpop.f32.mrf.mxu0 }
 0x1ef   : > { %v5447_v52 = vpop.f32.mrf.mxu3  ;;  %v1177_v0 = vpop.f32.mrf.mxu1  ;;  %v1101_v6 = vadd.f32 %v1100_v31, %v4748_v14 }
 0x1f0   : > { %v1178_v59 = vadd.f32 %v1177_v0, %v4748_v14  ;;  %v1093_v0 = vadd.f32 %v5383_v37, %v4765_v20 }
 0x1f1   : > { %1940 = vmatmul.bf16.gmra.mxu0 %v5441_v3  ;;  %v1469_v13 = vmax.f32 %v1101_v6, 0.0 }
 0x1f2   : > { %4110 = vmatmul.msk.bf16.gmra.mxu1 %vm1909_vm4, %v5445_v26  ;;  %v1493_v40 = vmax.f32 %v1178_v59, 0.0  ;;  %v1466_v12 = vmax.f32 %v1093_v0, 0.0 }
 0x1f3   : > { %2070 = vmatmul.bf16.gmra.mxu2 %v5441_v3 }
 0x1f4   : > { %4114 = vmatmul.msk.bf16.gmra.mxu3 %vm1909_vm4, %v5445_v26 }
 0x1f6   : > { %v5455_v38 = vpop.f32.mrf.mxu2  ;;  %v1102_v23 = vpop.f32.mrf.mxu0 }
 0x1f7   : > { %v5457_v55 = vpop.f32.mrf.mxu3  ;;  %v1179_v7 = vpop.f32.mrf.mxu1  ;;  %v1103_v34 = vadd.f32 %v1102_v23, %v4759_v17  ;;  %v1098_v23 = vadd.f32 %v1097_v29, %v4726_v5 }
 0x1f8   : > { %v1180_v39 = vadd.f32 %v1179_v7, %v4759_v17 }
 0x1fa   : > { %v1494_v49 = vmax.f32 %v1180_v39, 0.0 }
 0x1fe   : > { %v5473_v30 = vpop.f32.mrf.mxu2  ;;  %v1105_v43 = vpop.f32.mrf.mxu0 }
 0x1ff   : > { %v5477_v22 = vpop.f32.mrf.mxu3  ;;  %v1182_v9 = vpop.f32.mrf.mxu1  ;;  %v1106_v47 = vadd.f32 %v1105_v43, %v4750_v15  ;;  %v5494_v43 = vadd.f32 %v5368_v4, %v6949_v45  ;;  %v1096_v4 = vadd.f32 %v5410_v60, %v4715_v61 }
 0x200   : > { %v1183_v42 = vadd.f32 %v1182_v9, %v4750_v15 }
 0x201   : > { %1945 = vmatmul.bf16.gmra.mxu0 %v5471_v18  ;;  %v1471_v35 = vmax.f32 %v1106_v47, 0.0  ;;  %v5503_v47 = vadd.f32 %v5371_v1, %v6949_v45  ;;  %v1468_v45 = vmax.f32 %v1098_v23, 0.0 }
 0x202   : > { %4111 = vmatmul.msk.bf16.gmra.mxu1 %vm1909_vm4, %v5475_v58  ;;  %v1495_v57 = vmax.f32 %v1183_v42, 0.0  ;;  %v1175_v42 = vadd.f32 %v1174_v32, %v4726_v5  ;;  %v1170_v32 = vadd.f32 %v5387_v54, %v4765_v20  ;;  %v1465_v54 = vmax.f32 %v5494_v43, 0.0 }
 0x203   : > { %2075 = vmatmul.bf16.gmra.mxu2 %v5471_v18  ;;  %v1663_v29 = vpack.c.bf16 %v1471_v35, %v1471_v35  ;;  %v1661_v35 = vpack.c.bf16 %v1469_v13, %v1469_v13  ;;  %v1660_v59 = vpack.c.bf16 %v1468_v45, %v1468_v45 }
 0x204   : > { %4115 = vmatmul.msk.bf16.gmra.mxu3 %vm1909_vm4, %v5475_v58  ;;  %v1470_v58 = vmax.f32 %v1103_v34, 0.0  ;;  %v1687_v34 = vpack.c.bf16 %v1495_v57, %v1495_v57  ;;  %v1492_v6 = vmax.f32 %v1175_v42, 0.0  ;;  %v1490_v13 = vmax.f32 %v1170_v32, 0.0 }
 0x205   : > { %v2408_v24 = vunpack.c.l.b16 %v1663_v29  ;;  %v2406_v29 = vunpack.c.l.b16 %v1661_v35 }
 0x206   : > { %v5490_v56 = vpop.f32.mrf.mxu2  ;;  %v1107_v44 = vpop.f32.mrf.mxu0  ;;  %v1662_v11 = vpack.c.bf16 %v1470_v58, %v1470_v58  ;;  %v1685_v58 = vpack.c.bf16 %v1493_v40, %v1493_v40  ;;  %v1684_v42 = vpack.c.bf16 %v1492_v6, %v1492_v6  ;;  %v1489_v40 = vmax.f32 %v5503_v47, 0.0 }
 0x207   : > { %v5496_v9 = vpop.f32.mrf.mxu3  ;;  %v1108_v31 = vadd.f32 %v1107_v44, %v4763_v19  ;;  %v1184_v18 = vpop.f32.mrf.mxu1  ;;  %v1173_v44 = vadd.f32 %v5413_v50, %v4715_v61  ;;  %v2538_v50 = vunpack.c.l.b16 %v1687_v34  ;;  %v1657_v34 = vpack.c.bf16 %v1465_v54, %v1465_v54 }
 0x208   : > { %v1185_v7 = vadd.f32 %v1184_v18, %v4763_v19  ;;  %v1467_v18 = vmax.f32 %v1096_v4, 0.0  ;;  %v2536_v43 = vunpack.c.l.b16 %v1685_v58 }
 0x209   : > { %v1472_v62 = vmax.f32 %v1108_v31, 0.0  ;;  %v1686_v31 = vpack.c.bf16 %v1494_v49, %v1494_v49  ;;  %v1491_v26 = vmax.f32 %v1173_v44, 0.0 }
 0x20a   : > { %v1496_v1 = vmax.f32 %v1185_v7, 0.0  ;;  %v1659_v4 = vpack.c.bf16 %v1467_v18, %v1467_v18 }
 0x20b   : > { %v1664_v60 = vpack.c.bf16 %v1472_v62, %v1472_v62  ;;  %v2407_v62 = vunpack.c.l.b16 %v1662_v11  ;;  %v2537_v0 = vunpack.c.l.b16 %v1686_v31  ;;  %v1658_v11 = vpack.c.bf16 %v1466_v12, %v1466_v12 }
 0x20c   : > { %v1688_v39 = vpack.c.bf16 %v1496_v1, %v1496_v1  ;;  %v1682_v1 = vpack.c.bf16 %v1490_v13, %v1490_v13  ;;  %v2404_v45 = vunpack.c.l.b16 %v1659_v4  ;;  %v2402_v31 = vunpack.c.l.b16 %v1657_v34 }
 0x20d   : > { %v2409_v53 = vunpack.c.l.b16 %v1664_v60  ;;  %v2424_v44 = vpack.c.b16 %v2407_v62, %v2406_v29  ;;  %v2554_v32 = vpack.c.b16 %v2537_v0, %v2536_v43  ;;  %v2403_v18 = vunpack.c.l.b16 %v1658_v11 }
 0x20e   : > { %v1261_v37 = vpop.f32.mrf.mxu2  ;;  %v2539_v57 = vunpack.c.l.b16 %v1688_v39  ;;  %v5515_v23 = vpop.f32.mrf.mxu0 }
 0x20f   : > { %v1338_v7 = vpop.f32.mrf.mxu3  ;;  %v2425_v3 = vpack.c.b16 %v2409_v53, %v2408_v24  ;;  %v5517_v20 = vpop.f32.mrf.mxu1  ;;  %v1683_v53 = vpack.c.bf16 %v1491_v26, %v1491_v26  ;;  %v2405_v24 = vunpack.c.l.b16 %v1660_v59  ;;  %v1681_v26 = vpack.c.bf16 %v1489_v40, %v1489_v40 }
 0x210   : > { %v2555_v49 = vpack.c.b16 %v2539_v57, %v2538_v50  ;;  %v2533_v50 = vunpack.c.l.b16 %v1682_v1  ;;  %v2422_v58 = vpack.c.b16 %v2403_v18, %v2402_v31  ;;  %v1262_v62 = vadd.f32 %v1261_v37, %v4763_v19 }
 0x211   : > { %2190 = vmatmul.bf16.vlgmr.msrb.gmra.mxu0 %v5363_v25  ;;  %v2534_v6 = vunpack.c.l.b16 %v1683_v53  ;;  %v2423_v35 = vpack.c.b16 %v2405_v24, %v2404_v45  ;;  %v2532_v59 = vunpack.c.l.b16 %v1681_v26  ;;  %v1339_v4 = vadd.f32 %v1338_v7, %v4763_v19 }
 0x212   : > { %2442 = vmatpush.bf16.msra.mxu0 %v2425_v3  ;;  %4116 = vmatmul.msk.bf16.vlgmr.msrb.gmra.mxu1 %vm1909_vm4, %v5365_v63  ;;  %v2535_v3 = vunpack.c.l.b16 %v1684_v42  ;;  %v1257_v40 = vadd.f32 %v5473_v30, %v4759_v17  ;;  %v1337_v37 = vadd.f32 %v5496_v9, %v4750_v15  ;;  %v1520_v11 = vmax.f32 %v1262_v62, 0.0 }
 0x213   : > { %2320 = vmatmul.bf16.vlgmr.msrb.gmra.mxu2 %v5363_v25  ;;  %v2552_v13 = vpack.c.b16 %v2533_v50, %v2532_v59  ;;  %v1255_v19 = vadd.f32 %v5455_v38, %v4748_v14  ;;  %v1544_v53 = vmax.f32 %v1339_v4, 0.0 }
 0x214   : > { %2572 = vmatpush.bf16.msra.mxu2 %v2555_v49  ;;  %4120 = vmatmul.msk.bf16.vlgmr.msrb.gmra.mxu3 %vm1909_vm4, %v5365_v63  ;;  %v2553_v57 = vpack.c.b16 %v2535_v3, %v2534_v6  ;;  %v1260_v49 = vadd.f32 %v5490_v56, %v4750_v15  ;;  %v1334_v56 = vadd.f32 %v5477_v22, %v4759_v17  ;;  %v1518_v30 = vmax.f32 %v1257_v40, 0.0 }
 0x215   : > { %v1252_v15 = vadd.f32 %v5443_v33, %v4726_v5  ;;  %v1543_v38 = vmax.f32 %v1337_v37, 0.0  ;;  %v1712_v9 = vpack.c.bf16 %v1520_v11, %v1520_v11  ;;  %v1250_v17 = vadd.f32 %v5421_v36, %v4715_v61 }
 0x216   : > { %v5527_v60 = vpop.f32.mrf.mxu2  ;;  %2443 = vmatpush.bf16.msra.mxu0 %v2424_v44  ;;  %v5531_v12 = vpop.f32.mrf.mxu0  ;;  %v1519_v7 = vmax.f32 %v1260_v49, 0.0  ;;  %v1329_v22 = vadd.f32 %v5447_v52, %v4726_v5  ;;  %v1542_v33 = vmax.f32 %v1334_v56, 0.0  ;;  %v1736_v44 = vpack.c.bf16 %v1544_v53, %v1544_v53  ;;  %v6956_v56 = vld [vmem:[#allocation25_spill] sm:$0xff] }
 0x217   : > { %v5529_v47 = vpop.f32.mrf.mxu3  ;;  %v5533_v39 = vpop.f32.mrf.mxu1  ;;  %v1516_v1 = vmax.f32 %v1252_v15, 0.0  ;;  %v1710_v52 = vpack.c.bf16 %v1518_v30, %v1518_v30  ;;  %v1735_v45 = vpack.c.bf16 %v1543_v38, %v1543_v38  ;;  %v1515_v3 = vmax.f32 %v1250_v17, 0.0 }
 0x218   : > { %2573 = vmatpush.bf16.msra.mxu2 %v2554_v32  ;;  %v1711_v43 = vpack.c.bf16 %v1519_v7, %v1519_v7  ;;  %v1540_v32 = vmax.f32 %v1329_v22, 0.0  ;;  %v1734_v18 = vpack.c.bf16 %v1542_v33, %v1542_v33  ;;  %v6957_v7 = vld [vmem:[#allocation22_spill] sm:$0xff] }
 0x219   : > { %v1708_v50 = vpack.c.bf16 %v1516_v1, %v1516_v1  ;;  %v1707_v59 = vpack.c.bf16 %v1515_v3, %v1515_v3  ;;  %v6961_v3 = vld [vmem:[#allocation21_spill] sm:$0xff] }
 0x21a   : > { %2444 = vmatpush.bf16.msra.mxu0 %v2423_v35  ;;  %v2668_v6 = vunpack.c.l.b16 %v1711_v43  ;;  %v2799_v35 = vunpack.c.l.b16 %v1736_v44  ;;  %v1732_v62 = vpack.c.bf16 %v1540_v32, %v1540_v32  ;;  %v6959_v44 = vld [vmem:[#allocation36_spill] sm:$0xff] }
 0x21b   : > { %v2665_v11 = vunpack.c.l.b16 %v1708_v50  ;;  %v2664_v53 = vunpack.c.l.b16 %v1707_v59  ;;  %v6965_v59 = vld [vmem:[#allocation28_spill] sm:$0xff] }
 0x21c   : > { %2574 = vmatpush.bf16.msra.mxu2 %v2553_v57  ;;  %v2795_v15 = vunpack.c.l.b16 %v1732_v62  ;;  %v6966_v62 = vld [vmem:[#allocation18_spill] sm:$0xff] }
 0x21d   : > { %v2683_v30 = vpack.c.b16 %v2665_v11, %v2664_v53  ;;  %v6969_v11 = vld [vmem:[#allocation20_spill] sm:$0xff] }
 0x21e   : > { %v5536_v54 = vpop.f32.mrf.mxu2  ;;  %2445 = vmatpush.bf16.msra.mxu0 %v2422_v58  ;;  %v5543_v29 = vpop.f32.mrf.mxu0 }
 0x21f   : > { %v5541_v42 = vpop.f32.mrf.mxu3  ;;  %v5545_v0 = vpop.f32.mrf.mxu1 }
 0x220   : > { %2575 = vmatpush.bf16.msra.mxu2 %v2552_v13 }
 0x221   : > { %2195 = vmatmul.bf16.gmra.mxu0 %v5405_v10 }
 0x222   : > { %2446 = vmatpush.bf16.msra.mxu0 %v5373_v41  ;;  %4117 = vmatmul.msk.bf16.gmra.mxu1 %vm1909_vm4, %v5407_v46  ;;  %v1332_v41 = vadd.f32 %v5457_v55, %v4748_v14  ;;  %v1327_v55 = vadd.f32 %v5423_v48, %v4715_v61  ;;  %v2798_v48 = vunpack.c.l.b16 %v1735_v45 }
 0x223   : > { %2325 = vmatmul.bf16.gmra.mxu2 %v5405_v10 }
 0x224   : > { %2576 = vmatpush.bf16.msra.mxu2 %v5376_v8  ;;  %4121 = vmatmul.msk.bf16.gmra.mxu3 %vm1909_vm4, %v5407_v46  ;;  %v1517_v8 = vmax.f32 %v1255_v19, 0.0  ;;  %v1541_v5 = vmax.f32 %v1332_v41, 0.0  ;;  %v1539_v31 = vmax.f32 %v1327_v55, 0.0  ;;  %v2815_v49 = vpack.c.b16 %v2799_v35, %v2798_v48  ;;  %v6964_v48 = vld [vmem:[#allocation35_spill] sm:$0xff] }
 0x225   : > { %v1113_v55 = vadd.f32 %v5531_v12, %v6959_v44 }
 0x226   : > { %v5571_v24 = vpop.f32.mrf.mxu2  ;;  %2447 = vmatpush.bf16.msra.mxu0 %v5330_v16  ;;  %v5576_v14 = vpop.f32.mrf.mxu0  ;;  %v2669_v16 = vunpack.c.l.b16 %v1712_v9  ;;  %v1709_v26 = vpack.c.bf16 %v1517_v8, %v1517_v8  ;;  %v1733_v61 = vpack.c.bf16 %v1541_v5, %v1541_v5  ;;  %v1731_v37 = vpack.c.bf16 %v1539_v31, %v1539_v31  ;;  %v6958_v9 = vld [vmem:[#allocation37_spill] sm:$0xff] }
 0x227   : > { %v5574_v34 = vpop.f32.mrf.mxu3  ;;  %v5581_v36 = vpop.f32.mrf.mxu1  ;;  %v1111_v17 = vadd.f32 %v5515_v23, %v6958_v9  ;;  %v1188_v22 = vadd.f32 %v5517_v20, %v6958_v9  ;;  %v1190_v5 = vadd.f32 %v5533_v39, %v6959_v44  ;;  %v1474_v23 = vmax.f32 %v1113_v55, 0.0  ;;  %v6963_v39 = vld [vmem:[#allocation27_spill] sm:$0xff] }
 0x228   : > { %2577 = vmatpush.bf16.msra.mxu2 %v5336_v27  ;;  %v2667_v27 = vunpack.c.l.b16 %v1710_v52  ;;  %v2685_v57 = vpack.c.b16 %v2669_v16, %v2668_v6  ;;  %v2666_v13 = vunpack.c.l.b16 %v1709_v26  ;;  %v2796_v19 = vunpack.c.l.b16 %v1733_v61  ;;  %v6960_v16 = vld [vmem:[#allocation29_spill] sm:$0xff]  ;;  %v6962_v6 = vld [vmem:[#allocation24_spill] sm:$0xff] }
 0x229   : > { %v1473_v52 = vmax.f32 %v1111_v17, 0.0  ;;  %v1497_v45 = vmax.f32 %v1188_v22, 0.0  ;;  %v1498_v20 = vmax.f32 %v1190_v5, 0.0  ;;  %v1116_v12 = vadd.f32 %v5543_v29, %v6962_v6  ;;  %v6967_v29 = vld [vmem:[#allocation23_spill] sm:$0xff] }
 0x22a   : > { %2448 = vmatpush.bf16.msra.mxu0 %v5307_v51  ;;  %v2797_v51 = vunpack.c.l.b16 %v1734_v18  ;;  %v1666_v50 = vpack.c.bf16 %v1474_v23, %v1474_v23  ;;  %v1193_v61 = vadd.f32 %v5545_v0, %v6962_v6  ;;  %v5650_v17 = vadd.f32 %v5529_v47, %v6958_v9 }
 0x22b   : > { %v1665_v26 = vpack.c.bf16 %v1473_v52, %v1473_v52  ;;  %v5617_v18 = vpack.c.bf16 %v1497_v45, %v1497_v45  ;;  %v5661_v47 = vadd.f32 %v5536_v54, %v6959_v44 }
 0x22c   : > { %2578 = vmatpush.bf16.msra.mxu2 %v5313_v2  ;;  %v2814_v41 = vpack.c.b16 %v2797_v51, %v2796_v19 }
 0x22d   : > { %v2410_v19 = vunpack.c.l.b16 %v1665_v26  ;;  %v2540_v0 = vunpack.c.l.b16 %v5617_v18 }
 0x22e   : > { %v5585_v58 = vpop.f32.mrf.mxu2  ;;  %2449 = vmatpush.bf16.msra.mxu0 %v5271_v21  ;;  %v5590_v40 = vpop.f32.mrf.mxu0  ;;  %v2684_v21 = vpack.c.b16 %v2667_v27, %v2666_v13  ;;  %v5630_v13 = vpack.c.bf16 %v1498_v20, %v1498_v20  ;;  %v6973_v20 = vld [vmem:[#allocation33_spill] sm:$0xff] }
 0x22f   : > { %v5588_v4 = vpop.f32.mrf.mxu3  ;;  %v5593_v2 = vpop.f32.mrf.mxu1 }
 0x230   : > { %2579 = vmatpush.bf16.msra.mxu2 %v5279_v28  ;;  %v2794_v28 = vunpack.c.l.b16 %v1731_v37  ;;  %v2541_v5 = vunpack.c.l.b16 %v5630_v13 }
 0x231   : > { %2200 = vmatmul.bf16.gmra.mxu0 %v6956_v56 }
 0x232   : > { %2702 = vmatpush.bf16.msrb.mxu0 %v2685_v57  ;;  %4118 = vmatmul.msk.bf16.gmra.mxu1 %vm1909_vm4, %v6957_v7  ;;  %v2813_v43 = vpack.c.b16 %v2795_v15, %v2794_v28  ;;  %v1118_v57 = vadd.f32 %v5576_v14, %v6964_v48  ;;  %v6970_v14 = vld [vmem:[#allocation31_spill] sm:$0xff]  ;;  %v5642_v15 = vadd.f32 %v5527_v60, %v6958_v9  ;;  %v1499_v28 = vmax.f32 %v1193_v61, 0.0  ;;  %v6972_v60 = vld [vmem:[#allocation26_spill] sm:$0xff] }
 0x233   : > { %2330 = vmatmul.bf16.gmra.mxu2 %v6956_v56  ;;  %v5665_v9 = vadd.f32 %v5541_v42, %v6959_v44 }
 0x234   : > { %2832 = vmatpush.bf16.msrb.mxu2 %v2815_v49  ;;  %4122 = vmatmul.msk.bf16.gmra.mxu3 %vm1909_vm4, %v6957_v7  ;;  %v6968_v49 = vld [vmem:[#allocation16_spill] sm:$0xff]  ;;  %v1476_v22 = vmax.f32 %v1118_v57, 0.0  ;;  %v5670_v26 = vpack.c.bf16 %v1499_v28, %v1499_v28 }
 0x236   : > { %2703 = vmatpush.bf16.msrb.mxu0 %v2684_v21  ;;  %v5601_v38 = vpop.f32.mrf.mxu2  ;;  %v1122_v33 = vpop.f32.mrf.mxu0  ;;  %v1475_v21 = vmax.f32 %v1116_v12, 0.0  ;;  %v6974_v12 = vld [vmem:[#allocation13_spill] sm:$0xff]  ;;  %v5675_v54 = vpack.c.bf16 %v1476_v22, %v1476_v22 }
 0x237   : > { %v5607_v8 = vpop.f32.mrf.mxu3  ;;  %v1199_v1 = vpop.f32.mrf.mxu1  ;;  %v1123_v51 = vadd.f32 %v1122_v33, %v6967_v29  ;;  %v6971_v33 = vld [vmem:[#allocation15_spill] sm:$0xff] }
 0x238   : > { %2833 = vmatpush.bf16.msrb.mxu2 %v2814_v41  ;;  %v2411_v41 = vunpack.c.l.b16 %v1666_v50  ;;  %v1200_v55 = vadd.f32 %v1199_v1, %v6967_v29 }
 0x239   : > { %v1478_v52 = vmax.f32 %v1123_v51, 0.0 }
 0x23a   : > { %2704 = vmatpush.bf16.msrb.mxu0 %v2683_v30  ;;  %v1195_v30 = vadd.f32 %v5581_v36, %v6964_v48  ;;  %v1198_v36 = vadd.f32 %v5593_v2, %v6971_v33  ;;  %v5673_v50 = vpack.c.b16 %v2411_v41, %v2410_v19  ;;  %v1502_v42 = vmax.f32 %v1200_v55, 0.0  ;;  %v6976_v19 = vld [vmem:[#allocation34_spill] sm:$0xff] }
 0x23b   : > { %v2542_v41 = vunpack.c.l.b16 %v5670_v26  ;;  %v2413_v55 = vunpack.c.l.b16 %v5675_v54 }
 0x23c   : > { %2834 = vmatpush.bf16.msrb.mxu2 %v2813_v43  ;;  %v1121_v43 = vadd.f32 %v5590_v40, %v6971_v33  ;;  %v5667_v40 = vpack.c.bf16 %v1475_v21, %v1475_v21  ;;  %v1500_v2 = vmax.f32 %v1195_v30, 0.0  ;;  %v1501_v57 = vmax.f32 %v1198_v36, 0.0 }
 0x23d   : > { %v1522_v21 = vmax.f32 %v5661_v47, 0.0  ;;  %v5685_v30 = vadd.f32 %v5571_v24, %v6962_v6  ;;  %v1694_v36 = vpack.c.bf16 %v1502_v42, %v1502_v42 }
 0x23e   : > { %2705 = vmatpush.bf16.msrb.mxu0 %v6960_v16  ;;  %v5615_v32 = vpop.f32.mrf.mxu2  ;;  %v1125_v31 = vpop.f32.mrf.mxu0  ;;  %v1477_v61 = vmax.f32 %v1121_v43, 0.0  ;;  %v5687_v22 = vpack.c.bf16 %v1500_v2, %v1500_v2 }
 0x23f   : > { %v5621_v35 = vpop.f32.mrf.mxu3  ;;  %v1202_v27 = vpop.f32.mrf.mxu1  ;;  %v1126_v37 = vadd.f32 %v1125_v31, %v6968_v49 }
 0x240   : > { %2835 = vmatpush.bf16.msrb.mxu2 %v6961_v3  ;;  %v1203_v53 = vadd.f32 %v1202_v27, %v6968_v49  ;;  %v6975_v27 = vld [vmem:[#allocation30_spill] sm:$0xff] }
 0x241   : > { %2205 = vmatmul.bf16.gmra.mxu0 %v6966_v62  ;;  %v1479_v45 = vmax.f32 %v1126_v37, 0.0 }
 0x242   : > { %2706 = vmatpush.bf16.msrb.mxu0 %v6963_v39  ;;  %4119 = vmatmul.msk.bf16.gmra.mxu1 %vm1909_vm4, %v6969_v11  ;;  %v1503_v1 = vmax.f32 %v1203_v53, 0.0  ;;  %v2412_v53 = vunpack.c.l.b16 %v5667_v40  ;;  %v1523_v40 = vmax.f32 %v5685_v30, 0.0  ;;  %v1546_v30 = vmax.f32 %v5665_v9, 0.0 }
 0x243   : > { %2335 = vmatmul.bf16.gmra.mxu2 %v6966_v62  ;;  %v1671_v51 = vpack.c.bf16 %v1479_v45, %v1479_v45  ;;  %v6977_v45 = vld [vmem:[#allocation32_spill] sm:$0xff] }
 0x244   : > { %2836 = vmatpush.bf16.msrb.mxu2 %v6965_v59  ;;  %4123 = vmatmul.msk.bf16.gmra.mxu3 %vm1909_vm4, %v6969_v11  ;;  %v1670_v59 = vpack.c.bf16 %v1478_v52, %v1478_v52 }
 0x246   : > { %2707 = vmatpush.bf16.msrb.mxu0 %v6970_v14  ;;  %v1279_v16 = vpop.f32.mrf.mxu2  ;;  %v1127_v3 = vpop.f32.mrf.mxu0  ;;  %v1695_v14 = vpack.c.bf16 %v1503_v1, %v1503_v1 }
 0x247   : > { %v1356_v23 = vpop.f32.mrf.mxu3  ;;  %v1128_v31 = vadd.f32 %v1127_v3, %v6974_v12  ;;  %v1204_v39 = vpop.f32.mrf.mxu1  ;;  %v1693_v3 = vpack.c.bf16 %v1501_v57, %v1501_v57  ;;  %v1280_v24 = vadd.f32 %v1279_v16, %v6968_v49 }
 0x248   : > { %2837 = vmatpush.bf16.msrb.mxu2 %v6972_v60  ;;  %v1205_v44 = vadd.f32 %v1204_v39, %v6974_v12  ;;  %v1669_v60 = vpack.c.bf16 %v1477_v61, %v1477_v61  ;;  %v5691_v1 = vpop.permute.xlu0 %1763  ;;  %v1357_v61 = vadd.f32 %v1356_v23, %v6968_v49  ;;  %v1272_v23 = vadd.f32 %v5585_v58, %v6964_v48 }
 0x249   : > { %v1480_v37 = vmax.f32 %v1128_v31, 0.0  ;;  %v2416_v31 = vunpack.c.l.b16 %v1671_v51  ;;  %v1277_v51 = vadd.f32 %v5615_v32, %v6967_v29  ;;  %v1527_v32 = vmax.f32 %v1280_v24, 0.0 }
 0x24a   : > { %2708 = vmatpush.bf16.msrb.mxu0 %v6973_v20  ;;  %v1504_v28 = vmax.f32 %v1205_v44, 0.0  ;;  %v2415_v20 = vunpack.c.l.b16 %v1670_v59  ;;  %v2545_v59 = vunpack.c.l.b16 %v1694_v36  ;;  %v2414_v16 = vunpack.c.l.b16 %v1669_v60 }
 0x24b   : > { %v1672_v43 = vpack.c.bf16 %v1480_v37, %v1480_v37  ;;  %v1275_v36 = vadd.f32 %v5601_v38, %v6971_v33  ;;  %v1352_v60 = vadd.f32 %v5607_v8, %v6971_v33  ;;  %v1347_v38 = vadd.f32 %v5574_v34, %v6962_v6 }
 0x24c   : > { %2838 = vmatpush.bf16.msrb.mxu2 %v6975_v27  ;;  %v1696_v52 = vpack.c.bf16 %v1504_v28, %v1504_v28  ;;  %v2546_v27 = vunpack.c.l.b16 %v1695_v14  ;;  %v1349_v24 = vadd.f32 %v5588_v4, %v6964_v48 }
 0x24d   : > { %v2417_v39 = vunpack.c.l.b16 %v1672_v43  ;;  %v1525_v33 = vmax.f32 %v1275_v36, 0.0 }
 0x24e   : > { %2709 = vmatpush.bf16.msrb.mxu0 %v6976_v19  ;;  %v1281_v44 = vpop.f32.mrf.mxu2  ;;  %v2547_v2 = vunpack.c.l.b16 %v1696_v52  ;;  %v1931_v54 = vpop.f32.mrf.mxu0  ;;  %v1354_v52 = vadd.f32 %v5621_v35, %v6967_v29  ;;  %v2428_v29 = vpack.c.b16 %v2415_v20, %v2414_v16 }
 0x24f   : > { %v1282_v37 = vadd.f32 %v1281_v44, %v6974_v12  ;;  %v1358_v19 = vpop.f32.mrf.mxu3  ;;  %v2429_v42 = vpack.c.b16 %v2417_v39, %v2416_v31  ;;  %v1960_v57 = vpop.f32.mrf.mxu1  ;;  %v1551_v31 = vmax.f32 %v1357_v61, 0.0  ;;  %v2543_v39 = vunpack.c.l.b16 %v5687_v22 }
 0x250   : > { %2839 = vmatpush.bf16.msrb.mxu2 %v6977_v45  ;;  %v1359_v28 = vadd.f32 %v1358_v19, %v6974_v12  ;;  %v1932_v45 = vadd.f32 %v1931_v54, %v5691_v1  ;;  %v2559_v14 = vpack.c.b16 %v2547_v2, %v2546_v27  ;;  %v2544_v12 = vunpack.c.l.b16 %v1693_v3  ;;  %v5714_v3 = vpop.permute.xlu1 %1768 }
 0x251   : > { %v1528_v43 = vmax.f32 %v1282_v37, 0.0  ;;  %2450 = vmatmul.bf16.vlgmr.msra.gmra.mxu0 %v5363_v25  ;;  %2475 = vmatpush.bf16.msra.mxu1 %v2429_v42  ;;  %v1526_v27 = vmax.f32 %v1277_v51, 0.0  ;;  %v1550_v37 = vmax.f32 %v1354_v52, 0.0  ;;  %v1719_v54 = vpack.c.bf16 %v1527_v32, %v1527_v32 }
 0x252   : > { %v1552_v44 = vmax.f32 %v1359_v28, 0.0  ;;  %v5703_v49 = vadd.f32 %v1960_v57, %v1932_v45  ;;  %2605 = vmatpush.bf16.msra.mxu3 %v2559_v14  ;;  %v2558_v58 = vpack.c.b16 %v2545_v59, %v2544_v12  ;;  %v2427_v42 = vpack.c.b16 %v2413_v55, %v2412_v53 }
 0x253   : > { %2580 = vmatmul.bf16.vlgmr.msra.gmra.mxu2 %v5363_v25  ;;  %v1720_v2 = vpack.c.bf16 %v1528_v43, %v1528_v43  ;;  %v1524_v28 = vmax.f32 %v1272_v23, 0.0  ;;  %v1549_v45 = vmax.f32 %v1352_v60, 0.0  ;;  %v1743_v34 = vpack.c.bf16 %v1551_v31, %v1551_v31 }
 0x254   : > { %v1744_v19 = vpack.c.bf16 %v1552_v44, %v1552_v44  ;;  %v1718_v48 = vpack.c.bf16 %v1526_v27, %v1526_v27  ;;  %v2557_v51 = vpack.c.b16 %v2543_v39, %v2542_v41  ;;  %v1548_v14 = vmax.f32 %v1349_v24, 0.0 }
 0x255   : > { %2476 = vmatpush.bf16.msra.mxu1 %v2428_v29  ;;  %v2677_v57 = vunpack.c.l.b16 %v1720_v2  ;;  %v1742_v43 = vpack.c.bf16 %v1550_v37, %v1550_v37  ;;  %v1717_v53 = vpack.c.bf16 %v1525_v33, %v1525_v33  ;;  %v2676_v55 = vunpack.c.l.b16 %v1719_v54  ;;  %v5737_v29 = vpop.permute.xlu2 %1773 }
 0x256   : > { %v2061_v8 = vpop.f32.mrf.mxu2  ;;  %2606 = vmatpush.bf16.msra.mxu3 %v2558_v58  ;;  %v1933_v22 = vpop.f32.mrf.mxu0  ;;  %v2807_v16 = vunpack.c.l.b16 %v1744_v19  ;;  %v1547_v23 = vmax.f32 %v1347_v38, 0.0  ;;  %v1741_v12 = vpack.c.bf16 %v1549_v45, %v1549_v45  ;;  %v2806_v36 = vunpack.c.l.b16 %v1743_v34 }
 0x257   : > { %v2062_v20 = vadd.f32 %v2061_v8, %v5691_v1  ;;  %v2090_v61 = vpop.f32.mrf.mxu3  ;;  %v1934_v6 = vadd.f32 %v1933_v22, %v5714_v3  ;;  %v1962_v4 = vpop.f32.mrf.mxu1  ;;  %v1716_v26 = vpack.c.bf16 %v1524_v28, %v1524_v28  ;;  %v2675_v41 = vunpack.c.l.b16 %v1718_v48 }
 0x258   : > { %v2689_v60 = vpack.c.b16 %v2677_v57, %v2676_v55  ;;  %v2556_v31 = vpack.c.b16 %v2541_v5, %v2540_v0  ;;  %v1740_v39 = vpack.c.bf16 %v1548_v14, %v1548_v14  ;;  %v2805_v27 = vunpack.c.l.b16 %v1742_v43  ;;  %v5760_v57 = vpop.permute.xlu0 %1778 }
 0x259   : > { %v5724_v59 = vadd.f32 %v2090_v61, %v2062_v20  ;;  %v5728_v52 = vadd.f32 %v1962_v4, %v1934_v6  ;;  %2477 = vmatpush.bf16.msra.mxu1 %v2427_v42  ;;  %v2819_v2 = vpack.c.b16 %v2807_v16, %v2806_v36  ;;  %v1521_v38 = vmax.f32 %v5642_v15, 0.0 }
 0x25a   : > { %2607 = vmatpush.bf16.msra.mxu3 %v2557_v51  ;;  %v1715_v24 = vpack.c.bf16 %v1523_v40, %v1523_v40  ;;  %v2674_v37 = vunpack.c.l.b16 %v1717_v53  ;;  %v1545_v0 = vmax.f32 %v5650_v17, 0.0  ;;  %v1739_v5 = vpack.c.bf16 %v1547_v23, %v1547_v23 }
 0x25b   : > { %v2804_v9 = vunpack.c.l.b16 %v1741_v12  ;;  %v1714_v15 = vpack.c.bf16 %v1522_v21, %v1522_v21  ;;  %v1738_v17 = vpack.c.bf16 %v1546_v30, %v1546_v30  ;;  %v2803_v22 = vunpack.c.l.b16 %v1740_v39 }
 0x25c   : > { %v2688_v20 = vpack.c.b16 %v2675_v41, %v2674_v37  ;;  %v1713_v47 = vpack.c.bf16 %v1521_v38, %v1521_v38  ;;  %v2672_v28 = vunpack.c.l.b16 %v1715_v24  ;;  %v1737_v45 = vpack.c.bf16 %v1545_v0, %v1545_v0 }
 0x25d   : > { %2478 = vmatpush.bf16.msra.mxu1 %v5673_v50  ;;  %v2673_v50 = vunpack.c.l.b16 %v1716_v26  ;;  %v2818_v42 = vpack.c.b16 %v2805_v27, %v2804_v9  ;;  %v2802_v34 = vunpack.c.l.b16 %v1739_v5  ;;  %v2671_v4 = vunpack.c.l.b16 %v1714_v15  ;;  %v5770_v27 = vpop.permute.xlu1 %1783  ;;  %v5786_v9 = vpop.permute.xlu2 %1788 }
 0x25e   : > { %v2063_v58 = vpop.f32.mrf.mxu2  ;;  %2608 = vmatpush.bf16.msra.mxu3 %v2556_v31  ;;  %v1936_v18 = vpop.f32.mrf.mxu0  ;;  %v2801_v51 = vunpack.c.l.b16 %v1738_v17  ;;  %v2670_v16 = vunpack.c.l.b16 %v1713_v47  ;;  %v2800_v23 = vunpack.c.l.b16 %v1737_v45 }
 0x25f   : > { %v2064_v19 = vadd.f32 %v2063_v58, %v5714_v3  ;;  %v2092_v13 = vpop.f32.mrf.mxu3  ;;  %v1937_v8 = vadd.f32 %v1936_v18, %v5737_v29  ;;  %v1965_v33 = vpop.f32.mrf.mxu1  ;;  %v2687_v48 = vpack.c.b16 %v2673_v50, %v2672_v28  ;;  %v2817_v43 = vpack.c.b16 %v2803_v22, %v2802_v34 }
 0x260   : > { %4124 = vmatmul.msk.bf16.vlgmr.msra.gmra.mxu1 %vm1909_vm4, %v5365_v63  ;;  %v2686_v41 = vpack.c.b16 %v2671_v4, %v2670_v16  ;;  %v2816_v31 = vpack.c.b16 %v2801_v51, %v2800_v23  ;;  %v5796_v45 = vpop.permute.xlu0 %1793 }
 0x261   : > { %2735 = vmatpush.bf16.msrb.mxu1 %v2689_v60  ;;  %v5748_v54 = vadd.f32 %v2092_v13, %v2064_v19  ;;  %2455 = vmatmul.bf16.gmra.mxu0 %v5405_v10  ;;  %v5753_v61 = vadd.f32 %v1965_v33, %v1937_v8 }
 0x262   : > { %2865 = vmatpush.bf16.msrb.mxu3 %v2819_v2 }
 0x263   : > { %4128 = vmatmul.msk.bf16.vlgmr.msra.gmra.mxu3 %vm1909_vm4, %v5365_v63  ;;  %2585 = vmatmul.bf16.gmra.mxu2 %v5405_v10 }
 0x265   : > { %2736 = vmatpush.bf16.msrb.mxu1 %v2688_v20  ;;  %v5812_v23 = vpop.permute.xlu1 %1798 }
 0x266   : > { %2866 = vmatpush.bf16.msrb.mxu3 %v2818_v42  ;;  %v2066_v14 = vpop.f32.mrf.mxu2  ;;  %v1938_v53 = vpop.f32.mrf.mxu0 }
 0x267   : > { %v2067_v40 = vadd.f32 %v2066_v14, %v5737_v29  ;;  %v2095_v55 = vpop.f32.mrf.mxu3  ;;  %v1939_v12 = vadd.f32 %v1938_v53, %v5760_v57  ;;  %v1967_v36 = vpop.f32.mrf.mxu1 }
 0x269   : > { %2737 = vmatpush.bf16.msrb.mxu1 %v2687_v48  ;;  %v5764_v26 = vadd.f32 %v2095_v55, %v2067_v40  ;;  %v5766_v60 = vadd.f32 %v1967_v36, %v1939_v12 }
 0x26a   : > { %2867 = vmatpush.bf16.msrb.mxu3 %v2817_v43 }
 0x26d   : > { %2738 = vmatpush.bf16.msrb.mxu1 %v2686_v41 }
 0x26e   : > { %2868 = vmatpush.bf16.msrb.mxu3 %v2816_v31  ;;  %v2068_v2 = vpop.f32.mrf.mxu2  ;;  %v1941_v38 = vpop.f32.mrf.mxu0 }
 0x26f   : > { %v2069_v58 = vadd.f32 %v2068_v2, %v5760_v57  ;;  %v2097_v24 = vpop.f32.mrf.mxu3  ;;  %v1942_v37 = vadd.f32 %v1941_v38, %v5770_v27  ;;  %v1970_v19 = vpop.f32.mrf.mxu1 }
 0x270   : > { %4125 = vmatmul.msk.bf16.gmra.mxu1 %vm1909_vm4, %v5407_v46 }
 0x271   : > { %v5774_v18 = vadd.f32 %v2097_v24, %v2069_v58  ;;  %2460 = vmatmul.bf16.gmra.mxu0 %v6956_v56  ;;  %v5779_v13 = vadd.f32 %v1970_v19, %v1942_v37 }
 0x273   : > { %4129 = vmatmul.msk.bf16.gmra.mxu3 %vm1909_vm4, %v5407_v46  ;;  %2590 = vmatmul.bf16.gmra.mxu2 %v6956_v56 }
 0x276   : > { %v2071_v8 = vpop.f32.mrf.mxu2  ;;  %v1943_v15 = vpop.f32.mrf.mxu0 }
 0x277   : > { %v2072_v33 = vadd.f32 %v2071_v8, %v5770_v27  ;;  %v2100_v50 = vpop.f32.mrf.mxu3  ;;  %v1944_v20 = vadd.f32 %v1943_v15, %v5786_v9  ;;  %v1972_v17 = vpop.f32.mrf.mxu1 }
 0x279   : > { %v5790_v22 = vadd.f32 %v2100_v50, %v2072_v33  ;;  %v5792_v42 = vadd.f32 %v1972_v17, %v1944_v20 }
 0x27e   : > { %v2073_v34 = vpop.f32.mrf.mxu2  ;;  %v1946_v48 = vpop.f32.mrf.mxu0 }
 0x27f   : > { %v2074_v4 = vadd.f32 %v2073_v34, %v5786_v9  ;;  %v2102_v51 = vpop.f32.mrf.mxu3  ;;  %v1947_v14 = vadd.f32 %v1946_v48, %v5796_v45  ;;  %v1975_v43 = vpop.f32.mrf.mxu1 }
 0x280   : > { %4126 = vmatmul.msk.bf16.gmra.mxu1 %vm1909_vm4, %v6957_v7 }
 0x281   : > { %v5800_v16 = vadd.f32 %v2102_v51, %v2074_v4  ;;  %2465 = vmatmul.bf16.gmra.mxu0 %v6966_v62  ;;  %v5805_v40 = vadd.f32 %v1975_v43, %v1947_v14 }
 0x283   : > { %4130 = vmatmul.msk.bf16.gmra.mxu3 %vm1909_vm4, %v6957_v7  ;;  %2595 = vmatmul.bf16.gmra.mxu2 %v6966_v62 }
 0x286   : > { %v2076_v12 = vpop.f32.mrf.mxu2  ;;  %v1948_v41 = vpop.f32.mrf.mxu0 }
 0x287   : > { %v2077_v36 = vadd.f32 %v2076_v12, %v5796_v45  ;;  %v2105_v31 = vpop.f32.mrf.mxu3  ;;  %v1949_v2 = vadd.f32 %v1948_v41, %v5812_v23  ;;  %v1977_v58 = vpop.f32.mrf.mxu1 }
 0x289   : > { %v5816_v38 = vadd.f32 %v2105_v31, %v2077_v36  ;;  %v5818_v24 = vadd.f32 %v1977_v58, %v1949_v2 }
 0x28b   : > { %6978 = vst [vmem:[#allocation19_spill] sm:$0xff] %v5816_v38 }
 0x28c   : > { %6979 = vst [vmem:[#allocation12_spill] sm:$0xff] %v5818_v24 }
 0x28e   : > { %v2078_v8 = vpop.f32.mrf.mxu2  ;;  %v2191_v50 = vpop.f32.mrf.mxu0 }
 0x28f   : > { %v2079_v33 = vadd.f32 %v2078_v8, %v5812_v23  ;;  %v2107_v15 = vpop.f32.mrf.mxu3  ;;  %v2192_v20 = vadd.f32 %v2191_v50, %v5691_v1  ;;  %v2220_v17 = vpop.f32.mrf.mxu1 }
 0x290   : > { %4127 = vmatmul.msk.bf16.gmra.mxu1 %vm1909_vm4, %v6969_v11 }
 0x291   : > { %v5824_v34 = vadd.f32 %v2107_v15, %v2079_v33  ;;  %2710 = vmatmul.bf16.vlgmr.msrb.gmra.mxu0 %v5363_v25  ;;  %v5829_v4 = vadd.f32 %v2220_v17, %v2192_v20 }
 0x293   : > { %6980 = vst [vmem:[#allocation17_spill] sm:$0xff] %v5824_v34  ;;  %4131 = vmatmul.msk.bf16.gmra.mxu3 %vm1909_vm4, %v6969_v11  ;;  %2840 = vmatmul.bf16.vlgmr.msrb.gmra.mxu2 %v5363_v25 }
 0x296   : > { %v2321_v14 = vpop.f32.mrf.mxu2  ;;  %v2193_v12 = vpop.f32.mrf.mxu0 }
 0x297   : > { %v2322_v43 = vadd.f32 %v2321_v14, %v5691_v1  ;;  %v2350_v36 = vpop.f32.mrf.mxu3  ;;  %v2194_v41 = vadd.f32 %v2193_v12, %v5714_v3  ;;  %v2222_v31 = vpop.f32.mrf.mxu1 }
 0x299   : > { %v5838_v2 = vadd.f32 %v2350_v36, %v2322_v43  ;;  %v5840_v58 = vadd.f32 %v2222_v31, %v2194_v41 }
 0x29e   : > { %v2323_v15 = vpop.f32.mrf.mxu2  ;;  %v2196_v50 = vpop.f32.mrf.mxu0 }
 0x29f   : > { %v2324_v25 = vadd.f32 %v2323_v15, %v5714_v3  ;;  %v2352_v20 = vpop.f32.mrf.mxu3  ;;  %v2197_v17 = vadd.f32 %v2196_v50, %v5737_v29  ;;  %v2225_v14 = vpop.f32.mrf.mxu1 }
 0x2a0   : > { %4132 = vmatmul.msk.bf16.vlgmr.msrb.gmra.mxu1 %vm1909_vm4, %v5365_v63 }
 0x2a1   : > { %v5846_v48 = vadd.f32 %v2352_v20, %v2324_v25  ;;  %2715 = vmatmul.bf16.gmra.mxu0 %v5405_v10  ;;  %v5851_v43 = vadd.f32 %v2225_v14, %v2197_v17 }
 0x2a3   : > { %4136 = vmatmul.msk.bf16.vlgmr.msrb.gmra.mxu3 %vm1909_vm4, %v5365_v63  ;;  %2845 = vmatmul.bf16.gmra.mxu2 %v5405_v10 }
 0x2a6   : > { %v2326_v41 = vpop.f32.mrf.mxu2  ;;  %v2198_v15 = vpop.f32.mrf.mxu0 }
 0x2a7   : > { %v2327_v31 = vadd.f32 %v2326_v41, %v5737_v29  ;;  %v2355_v25 = vpop.f32.mrf.mxu3  ;;  %v2199_v50 = vadd.f32 %v2198_v15, %v5760_v57  ;;  %v2227_v20 = vpop.f32.mrf.mxu1 }
 0x2a9   : > { %v5860_v8 = vadd.f32 %v2355_v25, %v2327_v31  ;;  %v5862_v17 = vadd.f32 %v2227_v20, %v2199_v50 }
 0x2ae   : > { %v2328_v12 = vpop.f32.mrf.mxu2  ;;  %v2201_v36 = vpop.f32.mrf.mxu0 }
 0x2af   : > { %v2329_v10 = vadd.f32 %v2328_v12, %v5760_v57  ;;  %v2357_v51 = vpop.f32.mrf.mxu3  ;;  %v2202_v41 = vadd.f32 %v2201_v36, %v5770_v27  ;;  %v2230_v33 = vpop.f32.mrf.mxu1 }
 0x2b0   : > { %4133 = vmatmul.msk.bf16.gmra.mxu1 %vm1909_vm4, %v5407_v46 }
 0x2b1   : > { %v5868_v47 = vadd.f32 %v2357_v51, %v2329_v10  ;;  %2720 = vmatmul.bf16.gmra.mxu0 %v6956_v56  ;;  %v5873_v31 = vadd.f32 %v2230_v33, %v2202_v41 }
 0x2b3   : > { %4137 = vmatmul.msk.bf16.gmra.mxu3 %vm1909_vm4, %v5407_v46  ;;  %2850 = vmatmul.bf16.gmra.mxu2 %v6956_v56 }
 0x2b6   : > { %v2331_v36 = vpop.f32.mrf.mxu2  ;;  %v2203_v25 = vpop.f32.mrf.mxu0 }
 0x2b7   : > { %v2332_v51 = vadd.f32 %v2331_v36, %v5770_v27  ;;  %v2360_v50 = vpop.f32.mrf.mxu3  ;;  %v2204_v20 = vadd.f32 %v2203_v25, %v5786_v9  ;;  %v2232_v10 = vpop.f32.mrf.mxu1 }
 0x2b9   : > { %v5882_v63 = vadd.f32 %v2360_v50, %v2332_v51  ;;  %v5884_v33 = vadd.f32 %v2232_v10, %v2204_v20 }
 0x2bb   : > { %6981 = vst [vmem:[#allocation14_spill] sm:$0xff] %v5882_v63 }
 0x2be   : > { %v2333_v15 = vpop.f32.mrf.mxu2  ;;  %v2206_v14 = vpop.f32.mrf.mxu0 }
 0x2bf   : > { %v2334_v56 = vadd.f32 %v2333_v15, %v5786_v9  ;;  %v2362_v12 = vpop.f32.mrf.mxu3  ;;  %v2207_v36 = vadd.f32 %v2206_v14, %v5796_v45  ;;  %v2235_v53 = vpop.f32.mrf.mxu1 }
 0x2c0   : > { %4134 = vmatmul.msk.bf16.gmra.mxu1 %vm1909_vm4, %v6957_v7 }
 0x2c1   : > { %v5890_v37 = vadd.f32 %v2362_v12, %v2334_v56  ;;  %2725 = vmatmul.bf16.gmra.mxu0 %v6966_v62  ;;  %v5895_v51 = vadd.f32 %v2235_v53, %v2207_v36 }
 0x2c3   : > { %6982 = vst [vmem:[#allocation25_spill] sm:$0xff] %v5890_v37  ;;  %4138 = vmatmul.msk.bf16.gmra.mxu3 %vm1909_vm4, %v6957_v7  ;;  %2855 = vmatmul.bf16.gmra.mxu2 %v6966_v62 }
 0x2c4   : > { %6983 = vst [vmem:[#allocation22_spill] sm:$0xff] %v5895_v51 }
 0x2c6   : > { %v2336_v14 = vpop.f32.mrf.mxu2  ;;  %v2208_v50 = vpop.f32.mrf.mxu0 }
 0x2c7   : > { %v2337_v12 = vadd.f32 %v2336_v14, %v5796_v45  ;;  %v2365_v20 = vpop.f32.mrf.mxu3  ;;  %v2209_v10 = vadd.f32 %v2208_v50, %v5812_v23  ;;  %v2237_v56 = vpop.f32.mrf.mxu1 }
 0x2c9   : > { %v5904_v46 = vadd.f32 %v2365_v20, %v2337_v12  ;;  %v5906_v53 = vadd.f32 %v2237_v56, %v2209_v10 }
 0x2cb   : > { %6984 = vst [vmem:[#allocation37_spill] sm:$0xff] %v5904_v46 }
 0x2cc   : > { %6985 = vst [vmem:[#allocation36_spill] sm:$0xff] %v5906_v53 }
 0x2ce   : > { %v2338_v25 = vpop.f32.mrf.mxu2  ;;  %v2451_v15 = vpop.f32.mrf.mxu0 }
 0x2cf   : > { %v2339_v62 = vadd.f32 %v2338_v25, %v5812_v23  ;;  %v2367_v41 = vpop.f32.mrf.mxu3  ;;  %v2452_v20 = vadd.f32 %v2451_v15, %v5691_v1 }
 0x2d0   : > { %4135 = vmatmul.msk.bf16.gmra.mxu1 %vm1909_vm4, %v6969_v11 }
 0x2d1   : > { %v5911_v21 = vadd.f32 %v2367_v41, %v2339_v62 }
 0x2d3   : > { %6986 = vst [vmem:[#allocation29_spill] sm:$0xff] %v5911_v21  ;;  %4139 = vmatmul.msk.bf16.gmra.mxu3 %vm1909_vm4, %v6969_v11 }
 0x2d6   : > { %v2581_v12 = vpop.f32.mrf.mxu2  ;;  %v2453_v50 = vpop.f32.mrf.mxu0 }
 0x2d7   : > { %v2582_v62 = vadd.f32 %v2581_v12, %v5691_v1  ;;  %v2454_v36 = vadd.f32 %v2453_v50, %v5714_v3 }
 0x2dd   : > { %v2480_v56 = vpop.f32.mrf.mxu1 }
 0x2de   : > { %v2583_v10 = vpop.f32.mrf.mxu2  ;;  %v5919_v7 = vadd.f32 %v2480_v56, %v2452_v20  ;;  %v2456_v25 = vpop.f32.mrf.mxu0 }
 0x2df   : > { %v2584_v56 = vadd.f32 %v2583_v10, %v5714_v3  ;;  %v2457_v41 = vadd.f32 %v2456_v25, %v5737_v29 }
 0x2e5   : > { %v2482_v14 = vpop.f32.mrf.mxu1 }
 0x2e6   : > { %v2610_v30 = vpop.f32.mrf.mxu3  ;;  %v2586_v11 = vpop.f32.mrf.mxu2  ;;  %v5926_v55 = vadd.f32 %v2482_v14, %v2454_v36 }
 0x2e7   : > { %v5924_v0 = vadd.f32 %v2610_v30, %v2582_v62  ;;  %v2458_v19 = vpop.f32.mrf.mxu0  ;;  %v2587_v15 = vadd.f32 %v2586_v11, %v5737_v29 }
 0x2e8   : > { %v2459_v20 = vadd.f32 %v2458_v19, %v5760_v57 }
 0x2e9   : > { %6987 = vst [vmem:[#allocation21_spill] sm:$0xff] %v5924_v0 }
 0x2ed   : > { %v2485_v32 = vpop.f32.mrf.mxu1 }
 0x2ee   : > { %v2612_v44 = vpop.f32.mrf.mxu3  ;;  %v2588_v50 = vpop.f32.mrf.mxu2  ;;  %v5934_v30 = vadd.f32 %v2485_v32, %v2457_v41 }
 0x2ef   : > { %v5932_v12 = vadd.f32 %v2612_v44, %v2584_v56  ;;  %v2461_v62 = vpop.f32.mrf.mxu0  ;;  %v2589_v36 = vadd.f32 %v2588_v50, %v5760_v57 }
 0x2f0   : > { %v2462_v14 = vadd.f32 %v2461_v62, %v5770_v27 }
 0x2f1   : > { %6988 = vst [vmem:[#allocation24_spill] sm:$0xff] %v5932_v12 }
 0x2f5   : > { %v2487_v28 = vpop.f32.mrf.mxu1 }
 0x2f6   : > { %v2615_v39 = vpop.f32.mrf.mxu3  ;;  %v2591_v25 = vpop.f32.mrf.mxu2  ;;  %v5942_v44 = vadd.f32 %v2487_v28, %v2459_v20 }
 0x2f7   : > { %v5940_v10 = vadd.f32 %v2615_v39, %v2587_v15  ;;  %v2463_v56 = vpop.f32.mrf.mxu0  ;;  %v2592_v32 = vadd.f32 %v2591_v25, %v5770_v27 }
 0x2f8   : > { %6990 = vst [vmem:[#allocation35_spill] sm:$0xff] %v5942_v44  ;;  %v2464_v41 = vadd.f32 %v2463_v56, %v5786_v9 }
 0x2f9   : > { %6989 = vst [vmem:[#allocation27_spill] sm:$0xff] %v5940_v10 }
 0x2fd   : > { %v2490_v6 = vpop.f32.mrf.mxu1 }
 0x2fe   : > { %v2617_v35 = vpop.f32.mrf.mxu3  ;;  %v2593_v19 = vpop.f32.mrf.mxu2  ;;  %v5950_v39 = vadd.f32 %v2490_v6, %v2462_v14 }
 0x2ff   : > { %v5948_v11 = vadd.f32 %v2617_v35, %v2589_v36  ;;  %v2466_v15 = vpop.f32.mrf.mxu0  ;;  %v2594_v28 = vadd.f32 %v2593_v19, %v5786_v9 }
 0x300   : > { %6992 = vst [vmem:[#allocation18_spill] sm:$0xff] %v5950_v39  ;;  %v2467_v20 = vadd.f32 %v2466_v15, %v5796_v45 }
 0x301   : > { %6991 = vst [vmem:[#allocation28_spill] sm:$0xff] %v5948_v11 }
 0x305   : > { %v2492_v10 = vpop.f32.mrf.mxu1 }
 0x306   : > { %v2620_v5 = vpop.f32.mrf.mxu3  ;;  %v2596_v62 = vpop.f32.mrf.mxu2  ;;  %v5958_v35 = vadd.f32 %v2492_v10, %v2464_v41 }
 0x307   : > { %v5956_v50 = vadd.f32 %v2620_v5, %v2592_v32  ;;  %v2468_v36 = vpop.f32.mrf.mxu0  ;;  %v2597_v6 = vadd.f32 %v2596_v62, %v5796_v45 }
 0x308   : > { %6994 = vst [vmem:[#allocation16_spill] sm:$0xff] %v5958_v35  ;;  %v2469_v14 = vadd.f32 %v2468_v36, %v5812_v23 }
 0x309   : > { %6993 = vst [vmem:[#allocation23_spill] sm:$0xff] %v5956_v50 }
 0x30d   : > { %v2495_v0 = vpop.f32.mrf.mxu1 }
 0x30e   : > { %v2622_v11 = vpop.f32.mrf.mxu3  ;;  %v2598_v56 = vpop.f32.mrf.mxu2  ;;  %v5966_v5 = vadd.f32 %v2495_v0, %v2467_v20 }
 0x30f   : > { %v5964_v25 = vadd.f32 %v2622_v11, %v2594_v28  ;;  %v2711_v32 = vpop.f32.mrf.mxu0  ;;  %v2599_v10 = vadd.f32 %v2598_v56, %v5812_v23 }
 0x310   : > { %6996 = vst [vmem:[#allocation31_spill] sm:$0xff] %v5966_v5  ;;  %v2712_v41 = vadd.f32 %v2711_v32, %v5691_v1 }
 0x311   : > { %6995 = vst [vmem:[#allocation20_spill] sm:$0xff] %v5964_v25 }
 0x315   : > { %v2497_v12 = vpop.f32.mrf.mxu1 }
 0x316   : > { %v2625_v50 = vpop.f32.mrf.mxu3  ;;  %v2841_v15 = vpop.f32.mrf.mxu2  ;;  %v5974_v11 = vadd.f32 %v2497_v12, %v2469_v14 }
 0x317   : > { %v5972_v19 = vadd.f32 %v2625_v50, %v2597_v6  ;;  %v2713_v28 = vpop.f32.mrf.mxu0  ;;  %v2842_v0 = vadd.f32 %v2841_v15, %v5691_v1 }
 0x318   : > { %6998 = vst [vmem:[#allocation26_spill] sm:$0xff] %v5974_v11  ;;  %v2714_v20 = vadd.f32 %v2713_v28, %v5714_v3 }
 0x319   : > { %6997 = vst [vmem:[#allocation15_spill] sm:$0xff] %v5972_v19 }
 0x31d   : > { %v2740_v39 = vpop.f32.mrf.mxu1 }
 0x31e   : > { %v2627_v25 = vpop.f32.mrf.mxu3  ;;  %v2843_v36 = vpop.f32.mrf.mxu2  ;;  %v5982_v50 = vadd.f32 %v2740_v39, %v2712_v41 }
 0x31f   : > { %v5980_v62 = vadd.f32 %v2627_v25, %v2599_v10  ;;  %v2716_v12 = vpop.f32.mrf.mxu0  ;;  %v2844_v6 = vadd.f32 %v2843_v36, %v5714_v3 }
 0x320   : > { %7000 = vst [vmem:[#allocation13_spill] sm:$0xff] %v5982_v50  ;;  %v2717_v14 = vadd.f32 %v2716_v12, %v5737_v29 }
 0x321   : > { %6999 = vst [vmem:[#allocation33_spill] sm:$0xff] %v5980_v62 }
 0x325   : > { %v2742_v32 = vpop.f32.mrf.mxu1 }
 0x326   : > { %v2870_v19 = vpop.f32.mrf.mxu3  ;;  %v2846_v11 = vpop.f32.mrf.mxu2  ;;  %v5990_v25 = vadd.f32 %v2742_v32, %v2714_v20 }
 0x327   : > { %v5988_v56 = vadd.f32 %v2870_v19, %v2842_v0  ;;  %v2718_v41 = vpop.f32.mrf.mxu0  ;;  %v2847_v32 = vadd.f32 %v2846_v11, %v5737_v29 }
 0x328   : > { %7002 = vst [vmem:[#allocation34_spill] sm:$0xff] %v5990_v25  ;;  %v2719_v39 = vadd.f32 %v2718_v41, %v5760_v57 }
 0x329   : > { %7001 = vst [vmem:[#allocation30_spill] sm:$0xff] %v5988_v56 }
 0x32d   : > { %v2745_v15 = vpop.f32.mrf.mxu1 }
 0x32e   : > { %v2872_v62 = vpop.f32.mrf.mxu3  ;;  %v5998_v28 = vadd.f32 %v2745_v15, %v2717_v14  ;;  %v2848_v0 = vpop.f32.mrf.mxu2 }
 0x32f   : > { %v5996_v1 = vadd.f32 %v2872_v62, %v2844_v6  ;;  %v2721_v10 = vpop.f32.mrf.mxu0  ;;  %v2849_v15 = vadd.f32 %v2848_v0, %v5760_v57 }
 0x330   : > { %7004 = vst [vmem:[#allocation38_spill] sm:$0xff] %v5998_v28  ;;  %v2722_v19 = vadd.f32 %v2721_v10, %v5770_v27 }
 0x331   : > { %7003 = vst [vmem:[#allocation32_spill] sm:$0xff] %v5996_v1 }
 0x335   : > { %v2747_v36 = vpop.f32.mrf.mxu1 }
 0x336   : > { %v2875_v25 = vpop.f32.mrf.mxu3  ;;  %v6006_v12 = vadd.f32 %v2747_v36, %v2719_v39  ;;  %v2851_v14 = vpop.f32.mrf.mxu2 }
 0x337   : > { %v6004_v3 = vadd.f32 %v2875_v25, %v2847_v32  ;;  %v2723_v29 = vpop.f32.mrf.mxu0  ;;  %v2852_v32 = vadd.f32 %v2851_v14, %v5770_v27 }
 0x338   : > { %7006 = vst [vmem:[#allocation40_spill] sm:$0xff] %v6006_v12  ;;  %v2724_v36 = vadd.f32 %v2723_v29, %v5786_v9 }
 0x339   : > { %7005 = vst [vmem:[#allocation39_spill] sm:$0xff] %v6004_v3 }
 0x33d   : > { %v2750_v41 = vpop.f32.mrf.mxu1 }
 0x33e   : > { %v2877_v20 = vpop.f32.mrf.mxu3  ;;  %v6014_v1 = vadd.f32 %v2750_v41, %v2722_v19  ;;  %v2853_v6 = vpop.f32.mrf.mxu2 }
 0x33f   : > { %v6012_v11 = vadd.f32 %v2877_v20, %v2849_v15  ;;  %v2726_v20 = vpop.f32.mrf.mxu0  ;;  %v2854_v41 = vadd.f32 %v2853_v6, %v5786_v9 }
 0x340   : > { %7008 = vst [vmem:[#allocation42_spill] sm:$0xff] %v6014_v1  ;;  %v2727_v39 = vadd.f32 %v2726_v20, %v5796_v45 }
 0x341   : > { %7007 = vst [vmem:[#allocation41_spill] sm:$0xff] %v6012_v11 }
 0x345   : > { %v2752_v10 = vpop.f32.mrf.mxu1 }
 0x346   : > { %v2880_v62 = vpop.f32.mrf.mxu3  ;;  %v6022_v0 = vadd.f32 %v2752_v10, %v2724_v36  ;;  %v2856_v29 = vpop.f32.mrf.mxu2 }
 0x347   : > { %v6020_v57 = vadd.f32 %v2880_v62, %v2852_v32  ;;  %v2728_v36 = vpop.f32.mrf.mxu0  ;;  %v2857_v10 = vadd.f32 %v2856_v29, %v5796_v45 }
 0x348   : > { %7010 = vst [vmem:[#allocation44_spill] sm:$0xff] %v6022_v0  ;;  %v2729_v15 = vadd.f32 %v2728_v36, %v5812_v23 }
 0x349   : > { %7009 = vst [vmem:[#allocation43_spill] sm:$0xff] %v6020_v57 }
 0x34d   : > { %v2755_v14 = vpop.f32.mrf.mxu1 }
 0x34e   : > { %v2882_v25 = vpop.f32.mrf.mxu3  ;;  %v6030_v1 = vadd.f32 %v2755_v14, %v2727_v39 }
 0x34f   : > { %v6028_v27 = vadd.f32 %v2882_v25, %v2854_v41  ;;  %v2858_v41 = vpop.f32.mrf.mxu2 }
 0x350   : > { %7012 = vst [vmem:[#allocation46_spill] sm:$0xff] %v6030_v1  ;;  %v2859_v14 = vadd.f32 %v2858_v41, %v5812_v23 }
 0x351   : > { %7011 = vst [vmem:[#allocation45_spill] sm:$0xff] %v6028_v27 }
 0x355   : > { %v2757_v6 = vpop.f32.mrf.mxu1 }
 0x356   : > { %v2885_v19 = vpop.f32.mrf.mxu3  ;;  %v6038_v20 = vadd.f32 %v2757_v6, %v2729_v15 }
 0x357   : > { %v6036_v9 = vadd.f32 %v2885_v19, %v2857_v10 }
 0x358   : > { %7014 = vst [vmem:[#allocation48_spill] sm:$0xff] %v6038_v20 }
 0x359   : > { %7013 = vst [vmem:[#allocation47_spill] sm:$0xff] %v6036_v9 }
 0x35d   : > { %2957 = sbr.rel (%p4140_p4) target bundleno = 1160 (0x488), region = 105 }
 0x35e   : > { %v2887_v62 = vpop.f32.mrf.mxu3 }
 0x35f   : > { %v6043_v32 = vadd.f32 %v2887_v62, %v2859_v14 }
 0x361   : > { %7015 = vst [vmem:[#allocation49_spill] sm:$0xff] %v6043_v32 }
 0x362   : > { %v7016_v19 = vmax.f32 %v5779_v13, 0.0  ;;  %v7017_v15 = vmax.f32 %v5753_v61, 0.0  ;;  %v7018_v29 = vmax.f32 %v5703_v49, 0.0  ;;  %v7019_v36 = vmax.f32 %v5792_v42, 0.0  ;;  %v7060_v45 = vld [vmem:[#allocation26_spill] sm:$0xff]  ;;  %v7062_v25 = vld [vmem:[#allocation23_spill] sm:$0xff] }
 0x363   : > { %v7020_v23 = vmax.f32 %v5766_v60, 0.0  ;;  %v7021_v62 = vmax.f32 %v5728_v52, 0.0  ;;  %v7022_v10 = vmax.f32 %v5724_v59, 0.0  ;;  %v7023_v6 = vmax.f32 %v5818_v24, 0.0  ;;  %v7064_v39 = vld [vmem:[#allocation28_spill] sm:$0xff] }
 0x364   : > { %2967 = vadd.xlane.f32.xlu2 %v7016_v19  ;;  %2963 = vadd.xlane.f32.xlu1 %v7017_v15  ;;  %v7024_v41 = vmax.f32 %v5805_v40, 0.0  ;;  %v7025_v14 = vmax.f32 %v5774_v18, 0.0  ;;  %v7026_v19 = vmax.f32 %v5764_v26, 0.0  ;;  %v7027_v15 = vmax.f32 %v5748_v54, 0.0 }
 0x365   : > { %2959 = vadd.xlane.f32.xlu0 %v7018_v29  ;;  %v7028_v29 = vmax.f32 %v5816_v38, 0.0  ;;  %vm3156_vm5 = vcmask 130112   ;;  %vm3160_vm6 = vcmask 195712   ;;  %vm3164_vm7 = vcmask 261312  }
 0x366   : > { %vm3168_vm8 = vcmask 326912   ;;  %vm3172_vm9 = vcmask 392512   ;;  %vm3176_vm10 = vcmask 458112   ;;  %vm3180_vm11 = vcmask 523712  }
 0x367   : > { %vm3287_vm12 = vcmask 1041409   ;;  %vm3289_vm13 = vcmask 1042434   ;;  %vm3291_vm14 = vcmask 1043459   ;;  %vm3293_vm15 = vcmask 1044484  }
 0x368   : > { %vm3295_vm0 = vcmask 1045509   ;;  %vm3297_vm1 = vcmask 1046534   ;;  %vm3299_vm2 = vcmask 1047559  }
 0x36c   : > { %2969 = vadd.xlane.f32.xlu2 %v7019_v36  ;;  %2965 = vadd.xlane.f32.xlu1 %v7020_v23  ;;  %v7029_v36 = vmax.f32 %v5800_v16, 0.0  ;;  %v7030_v23 = vmax.f32 %v5790_v22, 0.0 }
 0x36d   : > { %2961 = vadd.xlane.f32.xlu0 %v7021_v62  ;;  %v7031_v62 = vmax.f32 %v5840_v58, 0.0 }
 0x374   : > { %2975 = vadd.xlane.f32.xlu2 %v7022_v10  ;;  %2973 = vadd.xlane.f32.xlu1 %v7023_v6  ;;  %v7032_v10 = vmax.f32 %v5829_v4, 0.0  ;;  %v7033_v6 = vmax.f32 %v5824_v34, 0.0  ;;  %v7073_v34 = vmax.f32 %v5988_v56, 0.0 }
 0x375   : > { %2971 = vadd.xlane.f32.xlu0 %v7024_v41  ;;  %v7034_v41 = vmax.f32 %v5873_v31, 0.0 }
 0x37c   : > { %2981 = vadd.xlane.f32.xlu2 %v7025_v14  ;;  %2979 = vadd.xlane.f32.xlu1 %v7026_v19  ;;  %v7035_v14 = vmax.f32 %v5862_v17, 0.0  ;;  %v7036_v19 = vmax.f32 %v5851_v43, 0.0 }
 0x37d   : > { %2977 = vadd.xlane.f32.xlu0 %v7027_v15  ;;  %v7037_v15 = vmax.f32 %v5906_v53, 0.0 }
 0x384   : > { %2987 = vadd.xlane.f32.xlu2 %v7028_v29  ;;  %2985 = vadd.xlane.f32.xlu1 %v7029_v36  ;;  %v7038_v29 = vmax.f32 %v5895_v51, 0.0  ;;  %v7039_v36 = vmax.f32 %v5884_v33, 0.0 }
 0x385   : > { %2983 = vadd.xlane.f32.xlu0 %v7030_v23  ;;  %v7040_v23 = vmax.f32 %v5860_v8, 0.0 }
 0x38c   : > { %2993 = vadd.xlane.f32.xlu2 %v7031_v62  ;;  %2991 = vadd.xlane.f32.xlu1 %v7032_v10  ;;  %v7041_v62 = vmax.f32 %v5846_v48, 0.0  ;;  %v7042_v10 = vmax.f32 %v5838_v2, 0.0 }
 0x38d   : > { %2989 = vadd.xlane.f32.xlu0 %v7033_v6  ;;  %v7043_v6 = vmax.f32 %v5890_v37, 0.0 }
 0x394   : > { %2999 = vadd.xlane.f32.xlu2 %v7034_v41  ;;  %2997 = vadd.xlane.f32.xlu1 %v7035_v14  ;;  %v7044_v41 = vmax.f32 %v5882_v63, 0.0  ;;  %v7045_v14 = vmax.f32 %v5868_v47, 0.0 }
 0x395   : > { %2995 = vadd.xlane.f32.xlu0 %v7036_v19  ;;  %v7046_v19 = vmax.f32 %v5919_v7, 0.0 }
 0x39c   : > { %3005 = vadd.xlane.f32.xlu2 %v7037_v15  ;;  %3003 = vadd.xlane.f32.xlu1 %v7038_v29  ;;  %v7047_v15 = vmax.f32 %v5911_v21, 0.0  ;;  %v7048_v29 = vmax.f32 %v5904_v46, 0.0 }
 0x39d   : > { %3001 = vadd.xlane.f32.xlu0 %v7039_v36  ;;  %v7049_v36 = vmax.f32 %v5942_v44, 0.0 }
 0x3a4   : > { %3011 = vadd.xlane.f32.xlu2 %v7040_v23  ;;  %3009 = vadd.xlane.f32.xlu1 %v7041_v62  ;;  %v7050_v23 = vmax.f32 %v5934_v30, 0.0  ;;  %v7051_v62 = vmax.f32 %v5926_v55, 0.0 }
 0x3a5   : > { %3007 = vadd.xlane.f32.xlu0 %v7042_v10  ;;  %v7052_v10 = vmax.f32 %v5966_v5, 0.0  ;;  %v7066_v5 = vld [vmem:[#allocation27_spill] sm:$0xff] }
 0x3ac   : > { %3017 = vadd.xlane.f32.xlu2 %v7043_v6  ;;  %3015 = vadd.xlane.f32.xlu1 %v7044_v41  ;;  %v7053_v6 = vmax.f32 %v5958_v35, 0.0  ;;  %v7054_v41 = vld [vmem:[#allocation18_spill] sm:$0xff] }
 0x3ad   : > { %3013 = vadd.xlane.f32.xlu0 %v7045_v14  ;;  %v7055_v14 = vmax.f32 %v7054_v41, 0.0 }
 0x3b4   : > { %3023 = vadd.xlane.f32.xlu2 %v7046_v19  ;;  %3021 = vadd.xlane.f32.xlu1 %v7047_v15  ;;  %v7056_v19 = vld [vmem:[#allocation24_spill] sm:$0xff] }
 0x3b5   : > { %3019 = vadd.xlane.f32.xlu0 %v7048_v29  ;;  %v7057_v15 = vmax.f32 %v7056_v19, 0.0  ;;  %v7058_v29 = vld [vmem:[#allocation21_spill] sm:$0xff] }
 0x3bc   : > { %3029 = vadd.xlane.f32.xlu2 %v7049_v36  ;;  %3027 = vadd.xlane.f32.xlu1 %v7050_v23  ;;  %v7059_v36 = vmax.f32 %v7058_v29, 0.0  ;;  %v7061_v23 = vmax.f32 %v7060_v45, 0.0  ;;  %v7068_v29 = vmax.f32 %v5982_v50, 0.0  ;;  %v7069_v45 = vld [vmem:[#allocation15_spill] sm:$0xff] }
 0x3bd   : > { %3025 = vadd.xlane.f32.xlu0 %v7051_v62  ;;  %v7063_v62 = vmax.f32 %v7062_v25, 0.0  ;;  %v7071_v25 = vld [vmem:[#allocation20_spill] sm:$0xff] }
 0x3c4   : > { %3035 = vadd.xlane.f32.xlu2 %v7052_v10  ;;  %3033 = vadd.xlane.f32.xlu1 %v7053_v6  ;;  %v7065_v10 = vmax.f32 %v7064_v39, 0.0  ;;  %v7067_v6 = vmax.f32 %v7066_v5, 0.0 }
 0x3c5   : > { %3031 = vadd.xlane.f32.xlu0 %v7055_v14  ;;  %v3151_v14 = vlaneseq }
 0x3cc   : > { %3041 = vadd.xlane.f32.xlu2 %v7057_v15  ;;  %3039 = vadd.xlane.f32.xlu1 %v7059_v36  ;;  %v6137_v15 = vand.u32 127, %v3151_v14  ;;  %v7070_v36 = vmax.f32 %v7069_v45, 0.0 }
 0x3cd   : > { %3037 = vadd.xlane.f32.xlu0 %v7061_v23  ;;  %v7072_v23 = vmax.f32 %v7071_v25, 0.0 }
 0x3ce   : > { %v6146_v39 = vadd.s32 4294967272, %v6137_v15  ;;  %v6149_v5 = vadd.s32 4294967288, %v6137_v15 }
 0x3d4   : > { %3047 = vadd.xlane.f32.xlu2 %v7063_v62  ;;  %3045 = vadd.xlane.f32.xlu1 %v7065_v10  ;;  %v6152_v62 = vadd.s32 4294967280, %v6137_v15 }
 0x3d5   : > { %3043 = vadd.xlane.f32.xlu0 %v7067_v6  ;;  %v6155_v6 = vadd.s32 4294967256, %v6137_v15 }
 0x3d7   : > { %v2968_v41 = vpop.xlane.xlu2 %2967  ;;  %v2964_v21 = vpop.xlane.xlu1 %2963 }
 0x3d8   : > { %v2960_v19 = vpop.xlane.xlu0 %2959  ;;  %v3159_v35 = vperm.slane %v2964_v21, %v6152_v62 }
 0x3dc   : > { %3055 = vadd.xlane.f32.xlu2 %v7068_v29  ;;  %3051 = vadd.xlane.f32.xlu1 %v7070_v36  ;;  %v6158_v29 = vadd.s32 4294967264, %v6137_v15  ;;  %v3153_v36 = vperm.slane %v2960_v19, %v6137_v15  ;;  %v7074_v19 = vmax.f32 %v5998_v28, 0.0 }
 0x3dd   : > { %3049 = vadd.xlane.f32.xlu0 %v7072_v23 }
 0x3de   : > { %v3167_v51 = vperm.slane %v2968_v41, %v6158_v29 }
 0x3df   : > { %v2970_v10 = vpop.xlane.xlu2 %2969  ;;  %v2966_v14 = vpop.xlane.xlu1 %2965 }
 0x3e0   : > { %v2962_v45 = vpop.xlane.xlu0 %2961  ;;  %v3163_v25 = vperm.slane %v2966_v14, %v6146_v39  ;;  %v3171_v46 = vperm.slane %v2970_v10, %v6155_v6  ;;  %v6173_v14 = vadd.s32 4294967240, %v6137_v15  ;;  %v7075_v10 = vld [vmem:[#allocation34_spill] sm:$0xff] }
 0x3e1   : > { %v3155_v23 = vperm.slane %v2962_v45, %v6149_v5  ;;  %v7076_v45 = vmax.f32 %v7075_v10, 0.0  ;;  %v7077_v10 = vmax.f32 %v6004_v3, 0.0 }
 0x3e3   : > { %v3157_v53 = vsel %vm3156_vm5, %v3155_v23, %v3153_v36  ;;  %v6179_v36 = vadd.s32 4294967248, %v6137_v15 }
 0x3e4   : > { %v3161_v37 = vsel %vm3160_vm6, %v3159_v35, %v3157_v53  ;;  %3071 = vadd.xlane.f32.xlu2 %v7073_v34  ;;  %3059 = vadd.xlane.f32.xlu1 %v7074_v19 }
 0x3e5   : > { %v3165_v21 = vsel %vm3164_vm7, %v3163_v25, %v3161_v37  ;;  %3057 = vadd.xlane.f32.xlu0 %v7076_v45 }
 0x3e6   : > { %v3169_v53 = vsel %vm3168_vm8, %v3167_v51, %v3165_v21  ;;  %v7078_v51 = vmax.f32 %v6006_v12, 0.0  ;;  %v7079_v21 = vld [vmem:[#allocation32_spill] sm:$0xff] }
 0x3e7   : > { %v2976_v35 = vpop.xlane.xlu2 %2975  ;;  %v2974_v41 = vpop.xlane.xlu1 %2973  ;;  %v3173_v34 = vsel %vm3172_vm9, %v3171_v46, %v3169_v53  ;;  %v7080_v45 = vmax.f32 %v7079_v21, 0.0 }
 0x3e8   : > { %v3179_v23 = vperm.slane %v2974_v41, %v6173_v14  ;;  %v2972_v19 = vpop.xlane.xlu0 %2971  ;;  %v3182_v46 = vperm.slane %v2976_v35, %v6137_v15  ;;  %v7083_v35 = vld [vmem:[#allocation42_spill] sm:$0xff] }
 0x3e9   : > { %v3175_v56 = vperm.slane %v2972_v19, %v6179_v36  ;;  %v7084_v21 = vmax.f32 %v7083_v35, 0.0 }
 0x3eb   : > { %v3177_v37 = vsel %vm3176_vm10, %v3175_v56, %v3173_v34 }
 0x3ec   : > { %v3181_v25 = vsel %vm3180_vm11, %v3179_v23, %v3177_v37  ;;  %3075 = vadd.xlane.f32.xlu2 %v7077_v10  ;;  %3061 = vadd.xlane.f32.xlu1 %v7078_v51  ;;  %v7081_v10 = vmax.f32 %v6022_v0, 0.0  ;;  %v7082_v51 = vmax.f32 %v6012_v11, 0.0 }
 0x3ed   : > { %3073 = vadd.xlane.f32.xlu0 %v7080_v45 }
 0x3ef   : > { %v2982_v53 = vpop.xlane.xlu2 %2981  ;;  %v2980_v41 = vpop.xlane.xlu1 %2979 }
 0x3f0   : > { %v3185_v19 = vperm.slane %v2980_v41, %v6152_v62  ;;  %v2978_v28 = vpop.xlane.xlu0 %2977  ;;  %v3187_v56 = vperm.slane %v2982_v53, %v6146_v39 }
 0x3f1   : > { %v3183_v34 = vperm.slane %v2978_v28, %v6149_v5 }
 0x3f3   : > { %v3184_v23 = vsel %vm3156_vm5, %v3183_v34, %v3182_v46 }
 0x3f4   : > { %v3186_v37 = vsel %vm3160_vm6, %v3185_v19, %v3184_v23  ;;  %3065 = vadd.xlane.f32.xlu2 %v7081_v10  ;;  %3077 = vadd.xlane.f32.xlu1 %v7082_v51  ;;  %v7085_v10 = vmax.f32 %v6030_v1, 0.0  ;;  %v7086_v51 = vld [vmem:[#allocation33_spill] sm:$0xff] }
 0x3f5   : > { %3063 = vadd.xlane.f32.xlu0 %v7084_v21  ;;  %v3188_v45 = vsel %vm3164_vm7, %v3187_v56, %v3186_v37  ;;  %v7087_v35 = vmax.f32 %v7086_v51, 0.0  ;;  %v7088_v56 = vmax.f32 %v6020_v57, 0.0  ;;  %v7089_v51 = vmax.f32 %v6038_v20, 0.0 }
 0x3f7   : > { %v2988_v41 = vpop.xlane.xlu2 %2987  ;;  %v2986_v3 = vpop.xlane.xlu1 %2985 }
 0x3f8   : > { %v3191_v53 = vperm.slane %v2986_v3, %v6155_v6  ;;  %v2984_v28 = vpop.xlane.xlu0 %2983  ;;  %v3193_v46 = vperm.slane %v2988_v41, %v6179_v36 }
 0x3f9   : > { %v3189_v19 = vperm.slane %v2984_v28, %v6158_v29 }
 0x3fb   : > { %v3190_v34 = vsel %vm3168_vm8, %v3189_v19, %v3188_v45 }
 0x3fc   : > { %v3192_v23 = vsel %vm3172_vm9, %v3191_v53, %v3190_v34  ;;  %3067 = vadd.xlane.f32.xlu2 %v7085_v10  ;;  %3053 = vadd.xlane.f32.xlu1 %v7087_v35 }
 0x3fd   : > { %3079 = vadd.xlane.f32.xlu0 %v7088_v56  ;;  %v3194_v3 = vsel %vm3176_vm10, %v3193_v46, %v3192_v23  ;;  %v7090_v46 = vmax.f32 %v6036_v9, 0.0  ;;  %v7091_v23 = vmax.f32 %v6028_v27, 0.0 }
 0x3ff   : > { %v2994_v37 = vpop.xlane.xlu2 %2993  ;;  %v2992_v21 = vpop.xlane.xlu1 %2991 }
 0x400   : > { %v3198_v41 = vperm.slane %v2994_v37, %v6149_v5  ;;  %v3197_v28 = vperm.slane %v2992_v21, %v6137_v15  ;;  %v2990_v45 = vpop.xlane.xlu0 %2989 }
 0x401   : > { %v3195_v53 = vperm.slane %v2990_v45, %v6173_v14 }
 0x402   : > { %v3199_v19 = vsel %vm3156_vm5, %v3198_v41, %v3197_v28  ;;  %v7092_v28 = vmax.f32 %v6043_v32, 0.0 }
 0x403   : > { %v3196_v34 = vsel %vm3180_vm11, %v3195_v53, %v3194_v3 }
 0x404   : > { %v3288_v10 = vsel %vm3287_vm12, %v3196_v34, %v3181_v25  ;;  %3069 = vadd.xlane.f32.xlu1 %v7089_v51  ;;  %3083 = vadd.xlane.f32.xlu2 %v7090_v46 }
 0x405   : > { %3081 = vadd.xlane.f32.xlu0 %v7091_v23 }
 0x407   : > { %v3000_v35 = vpop.xlane.xlu2 %2999  ;;  %v2998_v56 = vpop.xlane.xlu1 %2997 }
 0x408   : > { %v3202_v37 = vperm.slane %v2998_v56, %v6146_v39  ;;  %v2996_v21 = vpop.xlane.xlu0 %2995  ;;  %v3204_v45 = vperm.slane %v3000_v35, %v6158_v29 }
 0x409   : > { %v3200_v41 = vperm.slane %v2996_v21, %v6152_v62 }
 0x40b   : > { %v3201_v25 = vsel %vm3160_vm6, %v3200_v41, %v3199_v19 }
 0x40c   : > { %v3203_v3 = vsel %vm3164_vm7, %v3202_v37, %v3201_v25 }
 0x40d   : > { %3085 = vadd.xlane.f32.xlu0 %v7092_v28  ;;  %v3205_v53 = vsel %vm3168_vm8, %v3204_v45, %v3203_v3 }
 0x40f   : > { %v3006_v34 = vpop.xlane.xlu2 %3005  ;;  %v3004_v51 = vpop.xlane.xlu1 %3003 }
 0x410   : > { %v3208_v46 = vperm.slane %v3004_v51, %v6179_v36  ;;  %v3002_v23 = vpop.xlane.xlu0 %3001  ;;  %v3210_v56 = vperm.slane %v3006_v34, %v6173_v14 }
 0x411   : > { %v3206_v35 = vperm.slane %v3002_v23, %v6155_v6 }
 0x413   : > { %v3207_v21 = vsel %vm3172_vm9, %v3206_v35, %v3205_v53 }
 0x414   : > { %v3209_v19 = vsel %vm3176_vm10, %v3208_v46, %v3207_v21 }
 0x415   : > { %v3211_v37 = vsel %vm3180_vm11, %v3210_v56, %v3209_v19 }
 0x416   : > { %v3290_v41 = vsel %vm3289_vm13, %v3211_v37, %v3288_v10 }
 0x417   : > { %v3012_v25 = vpop.xlane.xlu2 %3011  ;;  %v3010_v28 = vpop.xlane.xlu1 %3009 }
 0x418   : > { %v3215_v45 = vperm.slane %v3012_v25, %v6152_v62  ;;  %v3213_v3 = vperm.slane %v3010_v28, %v6149_v5  ;;  %v3008_v51 = vpop.xlane.xlu0 %3007 }
 0x419   : > { %v3212_v32 = vperm.slane %v3008_v51, %v6137_v15 }
 0x41b   : > { %v3214_v34 = vsel %vm3156_vm5, %v3213_v3, %v3212_v32 }
 0x41c   : > { %v3216_v23 = vsel %vm3160_vm6, %v3215_v45, %v3214_v34 }
 0x41f   : > { %v3018_v53 = vpop.xlane.xlu2 %3017  ;;  %v3016_v35 = vpop.xlane.xlu1 %3015 }
 0x420   : > { %v3219_v46 = vperm.slane %v3016_v35, %v6158_v29  ;;  %v3014_v21 = vpop.xlane.xlu0 %3013  ;;  %v3221_v10 = vperm.slane %v3018_v53, %v6155_v6 }
 0x421   : > { %v3217_v56 = vperm.slane %v3014_v21, %v6146_v39 }
 0x423   : > { %v3218_v19 = vsel %vm3164_vm7, %v3217_v56, %v3216_v23 }
 0x424   : > { %v3220_v37 = vsel %vm3168_vm8, %v3219_v46, %v3218_v19 }
 0x425   : > { %v3222_v25 = vsel %vm3172_vm9, %v3221_v10, %v3220_v37 }
 0x427   : > { %v3024_v28 = vpop.xlane.xlu2 %3023  ;;  %v3022_v51 = vpop.xlane.xlu1 %3021 }
 0x428   : > { %v3225_v32 = vperm.slane %v3022_v51, %v6173_v14  ;;  %v3020_v45 = vpop.xlane.xlu0 %3019  ;;  %v3227_v21 = vperm.slane %v3024_v28, %v6137_v15 }
 0x429   : > { %v3223_v3 = vperm.slane %v3020_v45, %v6179_v36 }
 0x42b   : > { %v3224_v34 = vsel %vm3176_vm10, %v3223_v3, %v3222_v25 }
 0x42c   : > { %v3226_v53 = vsel %vm3180_vm11, %v3225_v32, %v3224_v34 }
 0x42d   : > { %v3292_v35 = vsel %vm3291_vm14, %v3226_v53, %v3290_v41 }
 0x42f   : > { %v3030_v23 = vpop.xlane.xlu2 %3029  ;;  %v3028_v56 = vpop.xlane.xlu1 %3027 }
 0x430   : > { %v3230_v46 = vperm.slane %v3028_v56, %v6152_v62  ;;  %v3026_v10 = vpop.xlane.xlu0 %3025  ;;  %v3232_v19 = vperm.slane %v3030_v23, %v6146_v39 }
 0x431   : > { %v3228_v37 = vperm.slane %v3026_v10, %v6149_v5 }
 0x433   : > { %v3229_v51 = vsel %vm3156_vm5, %v3228_v37, %v3227_v21 }
 0x434   : > { %v3231_v45 = vsel %vm3160_vm6, %v3230_v46, %v3229_v51 }
 0x435   : > { %v3233_v25 = vsel %vm3164_vm7, %v3232_v19, %v3231_v45 }
 0x437   : > { %v3036_v3 = vpop.xlane.xlu2 %3035  ;;  %v3034_v32 = vpop.xlane.xlu1 %3033 }
 0x438   : > { %v3032_v41 = vpop.xlane.xlu0 %3031  ;;  %v3236_v34 = vperm.slane %v3034_v32, %v6155_v6  ;;  %v3238_v56 = vperm.slane %v3036_v3, %v6179_v36 }
 0x439   : > { %v3234_v28 = vperm.slane %v3032_v41, %v6158_v29 }
 0x43b   : > { %v3235_v53 = vsel %vm3168_vm8, %v3234_v28, %v3233_v25 }
 0x43c   : > { %v3237_v23 = vsel %vm3172_vm9, %v3236_v34, %v3235_v53 }
 0x43d   : > { %v3239_v19 = vsel %vm3176_vm10, %v3238_v56, %v3237_v23 }
 0x43f   : > { %v3042_v10 = vpop.xlane.xlu2 %3041  ;;  %v3040_v27 = vpop.xlane.xlu1 %3039 }
 0x440   : > { %v3038_v21 = vpop.xlane.xlu0 %3037  ;;  %v3243_v56 = vperm.slane %v3042_v10, %v6149_v5 }
 0x441   : > { %v3240_v46 = vperm.slane %v3038_v21, %v6173_v14 }
 0x443   : > { %v3241_v37 = vsel %vm3180_vm11, %v3240_v46, %v3239_v19 }
 0x444   : > { %v6273_v51 = vsel %vm3293_vm15, %v3241_v37, %v3292_v35  ;;  %v3242_v35 = vperm.slane %v3040_v27, %v6137_v15 }
 0x446   : > { %v3244_v46 = vsel %vm3156_vm5, %v3243_v56, %v3242_v35 }
 0x447   : > { %v3048_v45 = vpop.xlane.xlu2 %3047  ;;  %v3046_v32 = vpop.xlane.xlu1 %3045 }
 0x448   : > { %v3044_v41 = vpop.xlane.xlu0 %3043  ;;  %v3247_v12 = vperm.slane %v3046_v32, %v6146_v39  ;;  %v3249_v63 = vperm.slane %v3048_v45, %v6158_v29 }
 0x449   : > { %v3245_v23 = vperm.slane %v3044_v41, %v6152_v62 }
 0x44b   : > { %v3246_v44 = vsel %vm3160_vm6, %v3245_v23, %v3244_v46 }
 0x44c   : > { %v3248_v10 = vsel %vm3164_vm7, %v3247_v12, %v3246_v44 }
 0x44f   : > { %v3056_v25 = vpop.xlane.xlu2 %3055  ;;  %v3052_v28 = vpop.xlane.xlu1 %3051 }
 0x450   : > { %v3050_v3 = vpop.xlane.xlu0 %3049  ;;  %v3257_v50 = vperm.slane %v3056_v25, %v6137_v15  ;;  %v3253_v44 = vperm.slane %v3052_v28, %v6179_v36 }
 0x451   : > { %v3251_v35 = vperm.slane %v3050_v3, %v6155_v6 }
 0x457   : > { %v3072_v9 = vpop.xlane.xlu2 %3071  ;;  %v3060_v34 = vpop.xlane.xlu1 %3059 }
 0x458   : > { %v3058_v53 = vpop.xlane.xlu0 %3057  ;;  %v3272_v27 = vperm.slane %v3072_v9, %v6137_v15  ;;  %v3260_v41 = vperm.slane %v3060_v34, %v6152_v62 }
 0x459   : > { %v3258_v38 = vperm.slane %v3058_v53, %v6149_v5  ;;  %v3250_v53 = vsel %vm3168_vm8, %v3249_v63, %v3248_v10 }
 0x45b   : > { %v3259_v32 = vsel %vm3156_vm5, %v3258_v38, %v3257_v50  ;;  %v3252_v38 = vsel %vm3172_vm9, %v3251_v35, %v3250_v53 }
 0x45c   : > { %v3261_v12 = vsel %vm3160_vm6, %v3260_v41, %v3259_v32  ;;  %v2958_v32 = vld [vmem:[#allocation2] sm:$0xff] }
 0x45f   : > { %v3076_v20 = vpop.xlane.xlu2 %3075  ;;  %v3062_v57 = vpop.xlane.xlu1 %3061 }
 0x460   : > { %v3074_v1 = vpop.xlane.xlu0 %3073  ;;  %v3262_v23 = vperm.slane %v3062_v57, %v6146_v39  ;;  %v3275_v45 = vperm.slane %v3076_v20, %v6152_v62 }
 0x461   : > { %v3273_v56 = vperm.slane %v3074_v1, %v6149_v5 }
 0x462   : > { %v3263_v50 = vsel %vm3164_vm7, %v3262_v23, %v3261_v12 }
 0x463   : > { %v3274_v9 = vsel %vm3156_vm5, %v3273_v56, %v3272_v27 }
 0x467   : > { %v3066_v21 = vpop.xlane.xlu2 %3065  ;;  %v3078_v0 = vpop.xlane.xlu1 %3077 }
 0x468   : > { %v3064_v11 = vpop.xlane.xlu0 %3063  ;;  %v3277_v1 = vperm.slane %v3078_v0, %v6146_v39  ;;  %v3276_v0 = vsel %vm3160_vm6, %v3275_v45, %v3274_v9 }
 0x469   : > { %v3264_v25 = vperm.slane %v3064_v11, %v6158_v29  ;;  %v3266_v11 = vperm.slane %v3066_v21, %v6155_v6  ;;  %v3254_v21 = vsel %vm3176_vm10, %v3253_v44, %v3252_v38 }
 0x46a   : > { %v3278_v3 = vsel %vm3164_vm7, %v3277_v1, %v3276_v0 }
 0x46b   : > { %v3265_v57 = vsel %vm3168_vm8, %v3264_v25, %v3263_v50 }
 0x46c   : > { %v3267_v34 = vsel %vm3172_vm9, %v3266_v11, %v3265_v57 }
 0x46f   : > { %v3054_v19 = vpop.xlane.xlu1 %3053  ;;  %v3068_v24 = vpop.xlane.xlu2 %3067 }
 0x470   : > { %v3080_v37 = vpop.xlane.xlu0 %3079  ;;  %v3268_v20 = vperm.slane %v3068_v24, %v6179_v36  ;;  %v3255_v5 = vperm.slane %v3054_v19, %v6173_v14 }
 0x471   : > { %v3279_v63 = vperm.slane %v3080_v37, %v6158_v29 }
 0x472   : > { %v3269_v24 = vsel %vm3176_vm10, %v3268_v20, %v3267_v34  ;;  %v3256_v19 = vsel %vm3180_vm11, %v3255_v5, %v3254_v21 }
 0x473   : > { %v3280_v29 = vsel %vm3168_vm8, %v3279_v63, %v3278_v3  ;;  %v3296_v56 = vsel %vm3295_vm0, %v3256_v19, %v6273_v51 }
 0x477   : > { %v3070_v15 = vpop.xlane.xlu1 %3069  ;;  %v3084_v28 = vpop.xlane.xlu2 %3083 }
 0x478   : > { %v3082_v46 = vpop.xlane.xlu0 %3081  ;;  %v3270_v39 = vperm.slane %v3070_v15, %v6173_v14  ;;  %v3283_v37 = vperm.slane %v3084_v28, %v6179_v36 }
 0x479   : > { %v3281_v62 = vperm.slane %v3082_v46, %v6155_v6 }
 0x47a   : > { %v3271_v10 = vsel %vm3180_vm11, %v3270_v39, %v3269_v24 }
 0x47b   : > { %v3282_v6 = vsel %vm3172_vm9, %v3281_v62, %v3280_v29  ;;  %v3298_v36 = vsel %vm3297_vm1, %v3271_v10, %v3296_v56 }
 0x47c   : > { %v3284_v35 = vsel %vm3176_vm10, %v3283_v37, %v3282_v6 }
 0x480   : > { %v3086_v27 = vpop.xlane.xlu0 %3085 }
 0x481   : > { %v3285_v41 = vperm.slane %v3086_v27, %v6173_v14 }
 0x483   : > { %v3286_v23 = vsel %vm3180_vm11, %v3285_v41, %v3284_v35 }
 0x484   : > { %v3300_v25 = vsel %vm3299_vm2, %v3286_v23, %v3298_v36 }
 0x485   : > { %v3302_v53 = vadd.f32 %v3300_v25, %v2958_v32 }
 0x487   : > { %3303 = vst.msk [vmem:[#allocation2] sm:$0xff] %vm1909_vm4, %v3302_v53 }
 0x488 PF: > { %p4141_p5 = scmp.ne.s32.totalorder %s4373_s14, 2 }
 0x489   : > { %s7195_s24 = scalar_lea.vmem (!%p4141_p5), [#allocation4], %s4550_s25 }
 0x48a   : > { %3307 = sbr.rel (%p4141_p5) target bundleno = 1735 (0x6c7), region = 109 }
 0x48f   : > { %v3308_v45 = vlaneseq  ;;  %v4394_v14 = vmov 0.0   ;;  %v7093_v44 = vmax.f32 %v5724_v59, 0.0  ;;  %v7094_v9 = vmax.f32 %v5753_v61, 0.0  ;;  %v7120_v23 = vld [vmem:[#allocation21_spill] sm:$0xff] }
 0x490   : > { %v7095_v15 = vmax.f32 %v5703_v49, 0.0  ;;  %v7096_v50 = vmax.f32 %v5748_v54, 0.0  ;;  %v7097_v63 = vmax.f32 %v5764_v26, 0.0  ;;  %v7098_v57 = vmax.f32 %v5728_v52, 0.0 }
 0x491   : > { %v6323_v46 = vand.u32 127, %v3308_v45  ;;  %v7099_v49 = vmax.f32 %v5840_v58, 0.0  ;;  %v7100_v5 = vmax.f32 %v5766_v60, 0.0  ;;  %v7101_v62 = vmax.f32 %v5829_v4, 0.0  ;;  %v7123_v45 = vld [vmem:[#allocation14_spill] sm:$0xff] }
 0x492   : > { %v7102_v52 = vmax.f32 %v5851_v43, 0.0  ;;  %v7103_v0 = vmax.f32 %v5838_v2, 0.0  ;;  %v7104_v39 = vmax.f32 %v5774_v18, 0.0  ;;  %v7105_v4 = vmax.f32 %v5779_v13, 0.0 }
 0x493   : > { %vm3311_vm3 = vcmp.lt.s32.totalorder %v6323_v46, 36  ;;  %v7106_v34 = vmax.f32 %v5790_v22, 0.0  ;;  %v7107_v21 = vmax.f32 %v5846_v48, 0.0  ;;  %v7108_v18 = vmax.f32 %v5860_v8, 0.0 }
 0x494   : > { %v6326_v51 = vsel %vm3311_vm3, 1.0, %v4394_v14  ;;  %v7109_v37 = vmax.f32 %v5919_v7, 0.0  ;;  %v7110_v24 = vmax.f32 %v5862_v17, 0.0  ;;  %v7111_v48 = vmax.f32 %v5792_v42, 0.0 }
 0x495   : > { %v3322_v12 = vmul.f32 %v6326_v51, %v7093_v44  ;;  %v3316_v1 = vmul.f32 %v6326_v51, %v7094_v9  ;;  %v3314_v38 = vmul.f32 %v6326_v51, %v7095_v15  ;;  %v3323_v11 = vmul.f32 %v6326_v51, %v7096_v50  ;;  %v7129_v50 = vld [vmem:[#allocation13_spill] sm:$0xff] }
 0x496   : > { %v3324_v59 = vmul.f32 %v6326_v51, %v7097_v63  ;;  %v3315_v61 = vmul.f32 %v6326_v51, %v7098_v57  ;;  %v3331_v20 = vmul.f32 %v6326_v51, %v7099_v49  ;;  %v3317_v54 = vmul.f32 %v6326_v51, %v7100_v5  ;;  %v7131_v63 = vld [vmem:[#allocation35_spill] sm:$0xff]  ;;  %v7135_v5 = vld [vmem:[#allocation17_spill] sm:$0xff] }
 0x497   : > { %3394 = vadd.xlane.f32.xlu1 %v3322_v12  ;;  %3382 = vadd.xlane.f32.xlu2 %v3316_v1  ;;  %v3330_v26 = vmul.f32 %v6326_v51, %v7101_v62  ;;  %v3332_v28 = vmul.f32 %v6326_v51, %v7102_v52  ;;  %v3338_v58 = vmul.f32 %v6326_v51, %v7103_v0  ;;  %v7112_v6 = vmax.f32 %v5800_v16, 0.0  ;;  %v7125_v12 = vld [vmem:[#allocation19_spill] sm:$0xff]  ;;  %v7139_v0 = vld [vmem:[#allocation25_spill] sm:$0xff] }
 0x498   : > { %3378 = vadd.xlane.f32.xlu0 %v3314_v38  ;;  %v3325_v60 = vmul.f32 %v6326_v51, %v7104_v39  ;;  %v3318_v3 = vmul.f32 %v6326_v51, %v7105_v4  ;;  %v3326_v43 = vmul.f32 %v6326_v51, %v7106_v34  ;;  %v3339_v2 = vmul.f32 %v6326_v51, %v7107_v21  ;;  %v7127_v1 = vld [vmem:[#allocation27_spill] sm:$0xff]  ;;  %v7143_v34 = vld [vmem:[#allocation22_spill] sm:$0xff] }
 0x499   : > { %v3340_v29 = vmul.f32 %v6326_v51, %v7108_v18  ;;  %v3346_v13 = vmul.f32 %v6326_v51, %v7109_v37  ;;  %v3333_v22 = vmul.f32 %v6326_v51, %v7110_v24  ;;  %v3319_v19 = vmul.f32 %v6326_v51, %v7111_v48  ;;  %v7147_v37 = vld [vmem:[#allocation30_spill] sm:$0xff] }
 0x49a   : > { %v3327_v8 = vmul.f32 %v6326_v51, %v7112_v6  ;;  %v7113_v10 = vmax.f32 %v5926_v55, 0.0  ;;  %v7114_v17 = vmax.f32 %v5868_v47, 0.0  ;;  %v7115_v41 = vmax.f32 %v5934_v30, 0.0  ;;  %v7117_v55 = vld [vmem:[#allocation24_spill] sm:$0xff] }
 0x49b   : > { %v7116_v56 = vmax.f32 %v5873_v31, 0.0  ;;  %v7118_v35 = vmax.f32 %v7117_v55, 0.0  ;;  %v7119_v36 = vmax.f32 %v5805_v40, 0.0  ;;  %v7121_v25 = vmax.f32 %v7120_v23, 0.0  ;;  %v7151_v6 = vld [vmem:[#allocation36_spill] sm:$0xff] }
 0x49c   : > { %v3347_v7 = vmul.f32 %v6326_v51, %v7113_v10  ;;  %v3341_v27 = vmul.f32 %v6326_v51, %v7114_v17  ;;  %v3348_v42 = vmul.f32 %v6326_v51, %v7115_v41  ;;  %v7122_v31 = vmax.f32 %v5884_v33, 0.0  ;;  %v7155_v41 = vld [vmem:[#allocation32_spill] sm:$0xff] }
 0x49d   : > { %v3334_v16 = vmul.f32 %v6326_v51, %v7116_v56  ;;  %v3355_v32 = vmul.f32 %v6326_v51, %v7118_v35  ;;  %v3320_v47 = vmul.f32 %v6326_v51, %v7119_v36  ;;  %v3354_v30 = vmul.f32 %v6326_v51, %v7121_v25  ;;  %v7159_v23 = vld [vmem:[#allocation40_spill] sm:$0xff] }
 0x49e   : > { %v3335_v53 = vmul.f32 %v6326_v51, %v7122_v31  ;;  %v7124_v14 = vmax.f32 %v7123_v45, 0.0  ;;  %v7126_v9 = vmax.f32 %v7125_v12, 0.0  ;;  %v7128_v15 = vmax.f32 %v7127_v1, 0.0  ;;  %v7161_v31 = vld [vmem:[#allocation16_spill] sm:$0xff] }
 0x49f   : > { %3396 = vadd.xlane.f32.xlu1 %v3323_v11  ;;  %3398 = vadd.xlane.f32.xlu2 %v3324_v59  ;;  %v7130_v11 = vmax.f32 %v7129_v50, 0.0  ;;  %v7132_v59 = vmax.f32 %v7131_v63, 0.0  ;;  %v7160_v25 = vmax.f32 %v7159_v23, 0.0  ;;  %v6477_v12 = vadd.s32 4294967280, %v6323_v46  ;;  %v7163_v50 = vld [vmem:[#allocation29_spill] sm:$0xff]  ;;  %v7165_v63 = vld [vmem:[#allocation31_spill] sm:$0xff] }
 0x4a0   : > { %3380 = vadd.xlane.f32.xlu0 %v3315_v61  ;;  %v3342_v44 = vmul.f32 %v6326_v51, %v7124_v14  ;;  %v3328_v40 = vmul.f32 %v6326_v51, %v7126_v9  ;;  %v3356_v38 = vmul.f32 %v6326_v51, %v7128_v15  ;;  %v7133_v61 = vld [vmem:[#allocation12_spill] sm:$0xff]  ;;  %v6473_v14 = vadd.s32 4294967288, %v6323_v46 }
 0x4a1   : > { %v3362_v33 = vmul.f32 %v6326_v51, %v7130_v11  ;;  %v3349_v57 = vmul.f32 %v6326_v51, %v7132_v59  ;;  %v7134_v49 = vmax.f32 %v7133_v61, 0.0  ;;  %vm3573_vm5 = vcmask 130112  }
 0x4a2   : > { %vm3577_vm6 = vcmask 195712   ;;  %v7164_v11 = vmax.f32 %v7163_v50, 0.0  ;;  %v7166_v59 = vmax.f32 %v7165_v63, 0.0  ;;  %vm3581_vm7 = vcmask 261312   ;;  %v7183_v50 = vld [vmem:[#allocation46_spill] sm:$0xff] }
 0x4a3   : > { %vm3585_vm8 = vcmask 326912   ;;  %vm3589_vm9 = vcmask 392512   ;;  %vm3593_vm10 = vcmask 458112   ;;  %vm3597_vm11 = vcmask 523712  }
 0x4a4   : > { %vm3704_vm12 = vcmask 1041409   ;;  %vm3706_vm13 = vcmask 1042434   ;;  %vm3708_vm14 = vcmask 1043459   ;;  %vm3710_vm15 = vcmask 1044484  }
 0x4a5   : > { %vm3712_vm0 = vcmask 1045509   ;;  %vm3714_vm1 = vcmask 1046534   ;;  %vm3716_vm2 = vcmask 1047559  }
 0x4a7   : > { %3412 = vadd.xlane.f32.xlu1 %v3331_v20  ;;  %3384 = vadd.xlane.f32.xlu2 %v3317_v54  ;;  %v3321_v20 = vmul.f32 %v6326_v51, %v7134_v49  ;;  %v7136_v54 = vmax.f32 %v7135_v5, 0.0 }
 0x4a8   : > { %3410 = vadd.xlane.f32.xlu0 %v3330_v26  ;;  %v7137_v26 = vld [vmem:[#allocation34_spill] sm:$0xff] }
 0x4a9   : > { %v3329_v62 = vmul.f32 %v6326_v51, %v7136_v54  ;;  %v7138_v52 = vmax.f32 %v7137_v26, 0.0 }
 0x4af   : > { %3414 = vadd.xlane.f32.xlu1 %v3332_v28  ;;  %3426 = vadd.xlane.f32.xlu2 %v3338_v58  ;;  %v3363_v28 = vmul.f32 %v6326_v51, %v7138_v52  ;;  %v7140_v58 = vmax.f32 %v7139_v0, 0.0  ;;  %v6497_v0 = vadd.s32 4294967272, %v6323_v46 }
 0x4b0   : > { %3400 = vadd.xlane.f32.xlu0 %v3325_v60  ;;  %v7141_v60 = vld [vmem:[#allocation18_spill] sm:$0xff] }
 0x4b1   : > { %v3343_v39 = vmul.f32 %v6326_v51, %v7140_v58  ;;  %v7142_v4 = vmax.f32 %v7141_v60, 0.0 }
 0x4b7   : > { %3386 = vadd.xlane.f32.xlu1 %v3318_v3  ;;  %3402 = vadd.xlane.f32.xlu2 %v3326_v43  ;;  %v3350_v3 = vmul.f32 %v6326_v51, %v7142_v4  ;;  %v7144_v43 = vmax.f32 %v7143_v34, 0.0 }
 0x4b8   : > { %3428 = vadd.xlane.f32.xlu0 %v3339_v2  ;;  %v7145_v2 = vld [vmem:[#allocation38_spill] sm:$0xff] }
 0x4b9   : > { %v3336_v21 = vmul.f32 %v6326_v51, %v7144_v43  ;;  %v7146_v18 = vmax.f32 %v7145_v2, 0.0  ;;  %v7169_v43 = vld [vmem:[#allocation42_spill] sm:$0xff] }
 0x4bf   : > { %3430 = vadd.xlane.f32.xlu1 %v3340_v29  ;;  %3442 = vadd.xlane.f32.xlu2 %v3346_v13  ;;  %v3364_v29 = vmul.f32 %v6326_v51, %v7146_v18  ;;  %v7148_v13 = vmax.f32 %v7147_v37, 0.0  ;;  %v7171_v18 = vld [vmem:[#allocation41_spill] sm:$0xff] }
 0x4c0   : > { %3416 = vadd.xlane.f32.xlu0 %v3333_v22  ;;  %v7149_v22 = vld [vmem:[#allocation28_spill] sm:$0xff] }
 0x4c1   : > { %v3370_v24 = vmul.f32 %v6326_v51, %v7148_v13  ;;  %v7150_v48 = vmax.f32 %v7149_v22, 0.0 }
 0x4c7   : > { %3388 = vadd.xlane.f32.xlu1 %v3319_v19  ;;  %3404 = vadd.xlane.f32.xlu2 %v3327_v8  ;;  %v3357_v19 = vmul.f32 %v6326_v51, %v7150_v48  ;;  %v7152_v8 = vmax.f32 %v7151_v6, 0.0 }
 0x4c8   : > { %3444 = vadd.xlane.f32.xlu0 %v3347_v7  ;;  %v7153_v7 = vld [vmem:[#allocation37_spill] sm:$0xff] }
 0x4c9   : > { %v3337_v10 = vmul.f32 %v6326_v51, %v7152_v8  ;;  %v7154_v17 = vmax.f32 %v7153_v7, 0.0 }
 0x4cf   : > { %3432 = vadd.xlane.f32.xlu1 %v3341_v27  ;;  %3446 = vadd.xlane.f32.xlu2 %v3348_v42  ;;  %v3344_v27 = vmul.f32 %v6326_v51, %v7154_v17  ;;  %v7156_v42 = vmax.f32 %v7155_v41, 0.0 }
 0x4d0   : > { %3418 = vadd.xlane.f32.xlu0 %v3334_v16 }
 0x4d1   : > { %v3371_v56 = vmul.f32 %v6326_v51, %v7156_v42 }
 0x4d7   : > { %3460 = vadd.xlane.f32.xlu1 %v3355_v32  ;;  %3390 = vadd.xlane.f32.xlu2 %v3320_v47  ;;  %v7157_v32 = vld [vmem:[#allocation23_spill] sm:$0xff] }
 0x4d8   : > { %3458 = vadd.xlane.f32.xlu0 %v3354_v30  ;;  %v7158_v36 = vmax.f32 %v7157_v32, 0.0  ;;  %v3365_v30 = vmul.f32 %v6326_v51, %v7160_v25  ;;  %v7179_v32 = vld [vmem:[#allocation26_spill] sm:$0xff] }
 0x4da   : > { %v3358_v47 = vmul.f32 %v6326_v51, %v7158_v36  ;;  %v7180_v36 = vmax.f32 %v7179_v32, 0.0 }
 0x4df   : > { %3420 = vadd.xlane.f32.xlu1 %v3335_v53  ;;  %3434 = vadd.xlane.f32.xlu2 %v3342_v44  ;;  %v7162_v53 = vmax.f32 %v7161_v31, 0.0 }
 0x4e0   : > { %3406 = vadd.xlane.f32.xlu0 %v3328_v40 }
 0x4e1   : > { %v3351_v45 = vmul.f32 %v6326_v51, %v7162_v53 }
 0x4e7   : > { %3462 = vadd.xlane.f32.xlu1 %v3356_v38  ;;  %3474 = vadd.xlane.f32.xlu2 %v3362_v33  ;;  %v3345_v33 = vmul.f32 %v6326_v51, %v7164_v11  ;;  %v7184_v11 = vmax.f32 %v7183_v50, 0.0 }
 0x4e8   : > { %3448 = vadd.xlane.f32.xlu0 %v3349_v57  ;;  %v3352_v57 = vmul.f32 %v6326_v51, %v7166_v59  ;;  %v7185_v59 = vld [vmem:[#allocation43_spill] sm:$0xff] }
 0x4ef   : > { %3392 = vadd.xlane.f32.xlu1 %v3321_v20  ;;  %3408 = vadd.xlane.f32.xlu2 %v3329_v62  ;;  %v7167_v20 = vld [vmem:[#allocation39_spill] sm:$0xff] }
 0x4f0   : > { %3476 = vadd.xlane.f32.xlu0 %v3363_v28  ;;  %v7168_v5 = vmax.f32 %v7167_v20, 0.0 }
 0x4f2   : > { %v3372_v54 = vmul.f32 %v6326_v51, %v7168_v5 }
 0x4f7   : > { %3436 = vadd.xlane.f32.xlu1 %v3343_v39  ;;  %3450 = vadd.xlane.f32.xlu2 %v3350_v3 }
 0x4f8   : > { %3422 = vadd.xlane.f32.xlu0 %v3336_v21  ;;  %v7170_v21 = vmax.f32 %v7169_v43, 0.0  ;;  %v7191_v43 = vld [vmem:[#allocation45_spill] sm:$0xff] }
 0x4fa   : > { %v3366_v2 = vmul.f32 %v6326_v51, %v7170_v21  ;;  %v7192_v21 = vmax.f32 %v7191_v43, 0.0 }
 0x4ff   : > { %3478 = vadd.xlane.f32.xlu1 %v3364_v29  ;;  %3490 = vadd.xlane.f32.xlu2 %v3370_v24  ;;  %v7172_v29 = vmax.f32 %v7171_v18, 0.0  ;;  %v7173_v24 = vld [vmem:[#allocation20_spill] sm:$0xff] }
 0x500   : > { %3464 = vadd.xlane.f32.xlu0 %v3357_v19  ;;  %v7174_v22 = vmax.f32 %v7173_v24, 0.0 }
 0x501   : > { %v3373_v37 = vmul.f32 %v6326_v51, %v7172_v29 }
 0x502   : > { %v3359_v48 = vmul.f32 %v6326_v51, %v7174_v22 }
 0x507   : > { %3424 = vadd.xlane.f32.xlu1 %v3337_v10  ;;  %3438 = vadd.xlane.f32.xlu2 %v3344_v27  ;;  %v7175_v27 = vld [vmem:[#allocation15_spill] sm:$0xff] }
 0x508   : > { %3492 = vadd.xlane.f32.xlu0 %v3371_v56  ;;  %v7176_v41 = vmax.f32 %v7175_v27, 0.0  ;;  %v7177_v56 = vld [vmem:[#allocation44_spill] sm:$0xff] }
 0x50a   : > { %v3395_v16 = vpop.xlane.xlu1 %3394  ;;  %v3383_v55 = vpop.xlane.xlu2 %3382  ;;  %v3360_v42 = vmul.f32 %v6326_v51, %v7176_v41 }
 0x50b   : > { %v3379_v35 = vpop.xlane.xlu0 %3378  ;;  %v3599_v44 = vperm.slane %v3395_v16, %v6323_v46  ;;  %v3576_v62 = vperm.slane %v3383_v55, %v6477_v12  ;;  %v7178_v16 = vmax.f32 %v7177_v56, 0.0 }
 0x50c   : > { %v3570_v61 = vperm.slane %v3379_v35, %v6323_v46 }
 0x50d   : > { %v3367_v55 = vmul.f32 %v6326_v51, %v7178_v16 }
 0x50f   : > { %3466 = vadd.xlane.f32.xlu1 %v3358_v47  ;;  %3480 = vadd.xlane.f32.xlu2 %v3365_v30  ;;  %v3353_v47 = vmul.f32 %v6326_v51, %v7180_v36  ;;  %v6528_v30 = vadd.s32 4294967264, %v6323_v46 }
 0x510   : > { %3452 = vadd.xlane.f32.xlu0 %v3351_v45 }
 0x512   : > { %v3397_v9 = vpop.xlane.xlu1 %3396  ;;  %v3399_v40 = vpop.xlane.xlu2 %3398 }
 0x513   : > { %v3600_v1 = vperm.slane %v3397_v9, %v6473_v14  ;;  %v3602_v15 = vperm.slane %v3399_v40, %v6477_v12  ;;  %v3381_v38 = vpop.xlane.xlu0 %3380 }
 0x514   : > { %v3572_v49 = vperm.slane %v3381_v38, %v6473_v14 }
 0x515   : > { %v3601_v26 = vsel %vm3573_vm5, %v3600_v1, %v3599_v44  ;;  %v7181_v1 = vld [vmem:[#allocation33_spill] sm:$0xff] }
 0x516   : > { %v3603_v52 = vsel %vm3577_vm6, %v3602_v15, %v3601_v26  ;;  %v3574_v28 = vsel %vm3573_vm5, %v3572_v49, %v3570_v61  ;;  %v7182_v15 = vmax.f32 %v7181_v1, 0.0 }
 0x517   : > { %3440 = vadd.xlane.f32.xlu1 %v3345_v33  ;;  %3454 = vadd.xlane.f32.xlu2 %v3352_v57  ;;  %v3578_v58 = vsel %vm3577_vm6, %v3576_v62, %v3574_v28  ;;  %v3368_v33 = vmul.f32 %v6326_v51, %v7184_v11  ;;  %v7186_v57 = vmax.f32 %v7185_v59, 0.0  ;;  %v7187_v28 = vld [vmem:[#allocation48_spill] sm:$0xff] }
 0x518   : > { %3494 = vadd.xlane.f32.xlu0 %v3372_v54  ;;  %v3361_v38 = vmul.f32 %v6326_v51, %v7182_v15 }
 0x519   : > { %v3374_v61 = vmul.f32 %v6326_v51, %v7186_v57 }
 0x51a   : > { %v3413_v39 = vpop.xlane.xlu1 %3412  ;;  %v3385_v60 = vpop.xlane.xlu2 %3384 }
 0x51b   : > { %v3615_v4 = vperm.slane %v3413_v39, %v6473_v14  ;;  %v3580_v3 = vperm.slane %v3385_v60, %v6497_v0  ;;  %v3411_v34 = vpop.xlane.xlu0 %3410  ;;  %v7189_v60 = vld [vmem:[#allocation47_spill] sm:$0xff] }
 0x51c   : > { %v3614_v13 = vperm.slane %v3411_v34, %v6323_v46 }
 0x51d   : > { %v3582_v19 = vsel %vm3581_vm7, %v3580_v3, %v3578_v58  ;;  %v7188_v58 = vmax.f32 %v7187_v28, 0.0 }
 0x51e   : > { %v3616_v6 = vsel %vm3573_vm5, %v3615_v4, %v3614_v13  ;;  %v7190_v4 = vmax.f32 %v7189_v60, 0.0 }
 0x51f   : > { %3482 = vadd.xlane.f32.xlu1 %v3366_v2  ;;  %3496 = vadd.xlane.f32.xlu2 %v3373_v37  ;;  %v3369_v39 = vmul.f32 %v6326_v51, %v7188_v58  ;;  %v3375_v2 = vmul.f32 %v6326_v51, %v7192_v21  ;;  %v6560_v37 = vadd.s32 4294967256, %v6323_v46  ;;  %v6599_v58 = vadd.s32 4294967240, %v6323_v46 }
 0x520   : > { %3468 = vadd.xlane.f32.xlu0 %v3359_v48  ;;  %v3376_v3 = vmul.f32 %v6326_v51, %v7190_v4 }
 0x522   : > { %v3415_v8 = vpop.xlane.xlu1 %3414  ;;  %v3427_v10 = vpop.xlane.xlu2 %3426 }
 0x523   : > { %v3617_v7 = vperm.slane %v3415_v8, %v6477_v12  ;;  %v3401_v17 = vpop.xlane.xlu0 %3400  ;;  %v3629_v31 = vperm.slane %v3427_v10, %v6323_v46  ;;  %v7193_v10 = vld [vmem:[#allocation49_spill] sm:$0xff] }
 0x524   : > { %v3604_v35 = vperm.slane %v3401_v17, %v6497_v0 }
 0x525   : > { %v3618_v23 = vsel %vm3577_vm6, %v3617_v7, %v3616_v6  ;;  %v7194_v7 = vmax.f32 %v7193_v10, 0.0 }
 0x526   : > { %v3605_v25 = vsel %vm3581_vm7, %v3604_v35, %v3603_v52 }
 0x527   : > { %3470 = vadd.xlane.f32.xlu1 %v3360_v42  ;;  %3484 = vadd.xlane.f32.xlu2 %v3367_v55  ;;  %v3377_v17 = vmul.f32 %v6326_v51, %v7194_v7 }
 0x528   : > { %3456 = vadd.xlane.f32.xlu0 %v3353_v47 }
 0x52a   : > { %v3387_v53 = vpop.xlane.xlu1 %3386  ;;  %v3403_v45 = vpop.xlane.xlu2 %3402 }
 0x52b   : > { %v3584_v44 = vperm.slane %v3387_v53, %v6528_v30  ;;  %v3606_v9 = vperm.slane %v3403_v45, %v6528_v30  ;;  %v3429_v40 = vpop.xlane.xlu0 %3428 }
 0x52c   : > { %v3630_v63 = vperm.slane %v3429_v40, %v6473_v14 }
 0x52d   : > { %v3586_v49 = vsel %vm3585_vm8, %v3584_v44, %v3582_v19  ;;  %v3607_v20 = vsel %vm3585_vm8, %v3606_v9, %v3605_v25  ;;  %v6579_v25 = vadd.s32 4294967248, %v6323_v46 }
 0x52e   : > { %v3631_v5 = vsel %vm3573_vm5, %v3630_v63, %v3629_v31 }
 0x52f   : > { %3472 = vadd.xlane.f32.xlu1 %v3361_v38  ;;  %3486 = vadd.xlane.f32.xlu2 %v3368_v33 }
 0x530   : > { %3498 = vadd.xlane.f32.xlu0 %v3374_v61 }
 0x532   : > { %v3431_v54 = vpop.xlane.xlu1 %3430  ;;  %v3443_v62 = vpop.xlane.xlu2 %3442 }
 0x533   : > { %v3632_v26 = vperm.slane %v3431_v54, %v6477_v12  ;;  %v3417_v52 = vpop.xlane.xlu0 %3416  ;;  %v3644_v13 = vperm.slane %v3443_v62, %v6323_v46 }
 0x534   : > { %v3619_v34 = vperm.slane %v3417_v52, %v6497_v0 }
 0x535   : > { %v3633_v18 = vsel %vm3577_vm6, %v3632_v26, %v3631_v5 }
 0x536   : > { %v3620_v29 = vsel %vm3581_vm7, %v3619_v34, %v3618_v23 }
 0x537   : > { %3488 = vadd.xlane.f32.xlu1 %v3369_v39  ;;  %3502 = vadd.xlane.f32.xlu2 %v3376_v3 }
 0x538   : > { %3500 = vadd.xlane.f32.xlu0 %v3375_v2 }
 0x53a   : > { %v3389_v24 = vpop.xlane.xlu1 %3388  ;;  %v3405_v22 = vpop.xlane.xlu2 %3404 }
 0x53b   : > { %v3588_v48 = vperm.slane %v3389_v24, %v6560_v37  ;;  %v3608_v19 = vperm.slane %v3405_v22, %v6560_v37  ;;  %v3445_v6 = vpop.xlane.xlu0 %3444 }
 0x53c   : > { %v3645_v8 = vperm.slane %v3445_v6, %v6473_v14 }
 0x53d   : > { %v3590_v27 = vsel %vm3589_vm9, %v3588_v48, %v3586_v49  ;;  %v3609_v41 = vsel %vm3589_vm9, %v3608_v19, %v3607_v20 }
 0x53e   : > { %v3646_v42 = vsel %vm3573_vm5, %v3645_v8, %v3644_v13 }
 0x540   : > { %3504 = vadd.xlane.f32.xlu0 %v3377_v17 }
 0x542   : > { %v3433_v56 = vpop.xlane.xlu1 %3432  ;;  %v3447_v16 = vpop.xlane.xlu2 %3446 }
 0x543   : > { %v3634_v55 = vperm.slane %v3433_v56, %v6497_v0  ;;  %v3647_v35 = vperm.slane %v3447_v16, %v6477_v12  ;;  %v3419_v32 = vpop.xlane.xlu0 %3418 }
 0x544   : > { %v3621_v36 = vperm.slane %v3419_v32, %v6528_v30 }
 0x545   : > { %v3635_v47 = vsel %vm3581_vm7, %v3634_v55, %v3633_v18  ;;  %v3648_v51 = vsel %vm3577_vm6, %v3647_v35, %v3646_v42 }
 0x546   : > { %v3622_v23 = vsel %vm3585_vm8, %v3621_v36, %v3620_v29 }
 0x54a   : > { %v3461_v31 = vpop.xlane.xlu1 %3460  ;;  %v3391_v53 = vpop.xlane.xlu2 %3390 }
 0x54b   : > { %v3660_v45 = vperm.slane %v3461_v31, %v6473_v14  ;;  %v3592_v44 = vperm.slane %v3391_v53, %v6579_v25  ;;  %v3459_v9 = vpop.xlane.xlu0 %3458 }
 0x54c   : > { %v3659_v40 = vperm.slane %v3459_v9, %v6323_v46 }
 0x54d   : > { %v3594_v1 = vsel %vm3593_vm10, %v3592_v44, %v3590_v27 }
 0x54e   : > { %v3661_v15 = vsel %vm3573_vm5, %v3660_v45, %v3659_v40 }
 0x552   : > { %v3421_v38 = vpop.xlane.xlu1 %3420  ;;  %v3435_v50 = vpop.xlane.xlu2 %3434 }
 0x553   : > { %v3623_v11 = vperm.slane %v3421_v38, %v6560_v37  ;;  %v3636_v33 = vperm.slane %v3435_v50, %v6528_v30  ;;  %v3407_v63 = vpop.xlane.xlu0 %3406  ;;  %v3730_v50 = vld [vmem:[%s6788_s5 + $0x38] sm:$0xff] }
 0x554   : > { %v3610_v59 = vperm.slane %v3407_v63, %v6579_v25  ;;  %3746 = vmatpush.msra.mxu0 %v3730_v50 }
 0x555   : > { %v3624_v57 = vsel %vm3589_vm9, %v3623_v11, %v3622_v23  ;;  %v3637_v61 = vsel %vm3585_vm8, %v3636_v33, %v3635_v47  ;;  %v3729_v11 = vld [vmem:[%s6788_s5 + $0x30] sm:$0xff] }
 0x556   : > { %v3611_v49 = vsel %vm3593_vm10, %v3610_v59, %v3609_v41  ;;  %3747 = vmatpush.msra.mxu0 %v3729_v11  ;;  %v3728_v59 = vld [vmem:[%s6788_s5 + $0x28] sm:$0xff] }
 0x558   : > { %3748 = vmatpush.msra.mxu0 %v3728_v59 }
 0x55a   : > { %v3463_v20 = vpop.xlane.xlu1 %3462  ;;  %v3475_v5 = vpop.xlane.xlu2 %3474 }
 0x55b   : > { %v3662_v54 = vperm.slane %v3463_v20, %v6477_v12  ;;  %v3449_v62 = vpop.xlane.xlu0 %3448  ;;  %v3674_v39 = vperm.slane %v3475_v5, %v6323_v46  ;;  %v3727_v20 = vld [vmem:[%s6788_s5 + $0x20] sm:$0xff]  ;;  %v3726_v5 = vld [vmem:[%s6788_s5 + $0x18] sm:$0xff] }
 0x55c   : > { %v3649_v26 = vperm.slane %v3449_v62, %v6497_v0  ;;  %3749 = vmatpush.msra.mxu0 %v3727_v20 }
 0x55d   : > { %v6595_v52 = vsel %vm3577_vm6, %v3662_v54, %v3661_v15 }
 0x55e   : > { %v3650_v28 = vsel %vm3581_vm7, %v3649_v26, %v3648_v51  ;;  %3750 = vmatpush.msra.mxu0 %v3726_v5 }
 0x562   : > { %v3393_v60 = vpop.xlane.xlu1 %3392  ;;  %v3409_v4 = vpop.xlane.xlu2 %3408 }
 0x563   : > { %v3596_v3 = vperm.slane %v3393_v60, %v6599_v58  ;;  %v3612_v34 = vperm.slane %v3409_v4, %v6599_v58  ;;  %v3477_v43 = vpop.xlane.xlu0 %3476  ;;  %v3725_v60 = vld [vmem:[%s6788_s5 + $0x10] sm:$0xff] }
 0x564   : > { %v3675_v21 = vperm.slane %v3477_v43, %v6473_v14  ;;  %v3724_v43 = vld [vmem:[%s6788_s5 + $0x8] sm:$0xff]  ;;  %3751 = vmatpush.msra.mxu0 %v3725_v60 }
 0x565   : > { %v3598_v2 = vsel %vm3597_vm11, %v3596_v3, %v3594_v1  ;;  %v3613_v18 = vsel %vm3597_vm11, %v3612_v34, %v3611_v49 }
 0x566   : > { %v3705_v29 = vsel %vm3704_vm12, %v3613_v18, %v3598_v2  ;;  %v6608_v13 = vsel %vm3573_vm5, %v3675_v21, %v3674_v39  ;;  %3752 = vmatpush.msra.mxu0 %v3724_v43 }
 0x56a   : > { %v3437_v24 = vpop.xlane.xlu1 %3436  ;;  %v3451_v22 = vpop.xlane.xlu2 %3450 }
 0x56b   : > { %v3423_v48 = vpop.xlane.xlu0 %3422  ;;  %v3638_v36 = vperm.slane %v3437_v24, %v6560_v37  ;;  %v3651_v33 = vperm.slane %v3451_v22, %v6528_v30 }
 0x56c   : > { %v3625_v19 = vperm.slane %v3423_v48, %v6579_v25 }
 0x56d   : > { %v3639_v31 = vsel %vm3589_vm9, %v3638_v36, %v3637_v61  ;;  %v3652_v54 = vsel %vm3585_vm8, %v3651_v33, %v3650_v28 }
 0x56e   : > { %v3626_v6 = vsel %vm3593_vm10, %v3625_v19, %v3624_v57 }
 0x572   : > { %v6612_v8 = vpop.xlane.xlu1 %3478  ;;  %v6614_v10 = vpop.xlane.xlu2 %3490 }
 0x573   : > { %v3465_v7 = vpop.xlane.xlu0 %3464 }
 0x574   : > { %v3664_v4 = vperm.slane %v3465_v7, %v6497_v0 }
 0x576   : > { %v3665_v24 = vsel %vm3581_vm7, %v3664_v4, %v6595_v52  ;;  %v3762_v52 = vld [vmem:[%s6790_s7 + $0x18] sm:$0xff]  ;;  %v4278_v4 = vld [vmem:[%s6791_s8] ss:$0 sm:$0xff] }
 0x577   : > { %3783 = vmatpush.msra.mxu1 %v3762_v52 }
 0x57a   : > { %v3425_v17 = vpop.xlane.xlu1 %3424  ;;  %v3439_v27 = vpop.xlane.xlu2 %3438 }
 0x57b   : > { %v3627_v41 = vperm.slane %v3425_v17, %v6599_v58  ;;  %v6617_v42 = vpop.xlane.xlu0 %3492  ;;  %v3640_v47 = vperm.slane %v3439_v27, %v6579_v25  ;;  %v3677_v17 = vperm.slane %v6612_v8, %v6477_v12 }
 0x57d   : > { %v3628_v56 = vsel %vm3597_vm11, %v3627_v41, %v3626_v6  ;;  %v3641_v44 = vsel %vm3593_vm10, %v3640_v47, %v3639_v31  ;;  %v3678_v8 = vsel %vm3577_vm6, %v3677_v17, %v6608_v13 }
 0x57e   : > { %v3707_v16 = vsel %vm3706_vm13, %v3628_v56, %v3705_v29  ;;  %v3723_v29 = vld [vmem:[%s6788_s5] sm:$0xff] }
 0x57f   : > { %3753 = vmatpush.msra.mxu0 %v3723_v29 }
 0x582   : > { %v3467_v55 = vpop.xlane.xlu1 %3466  ;;  %v6620_v35 = vpop.xlane.xlu2 %3480 }
 0x583   : > { %v3453_v32 = vpop.xlane.xlu0 %3452  ;;  %v3666_v34 = vperm.slane %v3467_v55, %v6528_v30  ;;  %v3679_v56 = vperm.slane %v6620_v35, %v6497_v0  ;;  %v3690_v35 = vperm.slane %v6617_v42, %v6473_v14 }
 0x584   : > { %v3653_v63 = vperm.slane %v3453_v32, %v6560_v37 }
 0x585   : > { %v3667_v22 = vsel %vm3585_vm8, %v3666_v34, %v3665_v24 }
 0x586   : > { %v3654_v26 = vsel %vm3589_vm9, %v3653_v63, %v3652_v54  ;;  %v3759_v54 = vld [vmem:[%s6790_s7] sm:$0xff] }
 0x58a   : > { %v3441_v51 = vpop.xlane.xlu1 %3440  ;;  %v3455_v23 = vpop.xlane.xlu2 %3454 }
 0x58b   : > { %v3642_v53 = vperm.slane %v3441_v51, %v6599_v58  ;;  %v6626_v45 = vpop.xlane.xlu0 %3494  ;;  %v3655_v57 = vperm.slane %v3455_v23, %v6579_v25  ;;  %v3680_v51 = vsel %vm3581_vm7, %v3679_v56, %v3678_v8  ;;  %v3689_v23 = vperm.slane %v6614_v10, %v6323_v46 }
 0x58d   : > { %v3643_v9 = vsel %vm3597_vm11, %v3642_v53, %v3641_v44  ;;  %v3656_v3 = vsel %vm3593_vm10, %v3655_v57, %v3654_v26  ;;  %v3692_v44 = vperm.slane %v6626_v45, %v6477_v12  ;;  %v3691_v42 = vsel %vm3573_vm5, %v3690_v35, %v3689_v23  ;;  %v3310_v57 = vld [vmem:[#allocation2] sm:$0xff] }
 0x58e   : > { %v3709_v40 = vsel %vm3708_vm14, %v3643_v9, %v3707_v16 }
 0x58f   : > { %v3693_v50 = vsel %vm3577_vm6, %v3692_v44, %v3691_v42 }
 0x592   : > { %v3483_v1 = vpop.xlane.xlu1 %3482  ;;  %v6630_v15 = vpop.xlane.xlu2 %3496 }
 0x593   : > { %v3469_v38 = vpop.xlane.xlu0 %3468  ;;  %v3681_v55 = vperm.slane %v3483_v1, %v6528_v30  ;;  %v3694_v1 = vperm.slane %v6630_v15, %v6497_v0 }
 0x594   : > { %v3668_v21 = vperm.slane %v3469_v38, %v6560_v37 }
 0x595   : > { %v3682_v31 = vsel %vm3585_vm8, %v3681_v55, %v3680_v51  ;;  %v3695_v11 = vsel %vm3581_vm7, %v3694_v1, %v3693_v50 }
 0x596   : > { %v3669_v19 = vsel %vm3589_vm9, %v3668_v21, %v3667_v22 }
 0x59a   : > { %v3471_v61 = vpop.xlane.xlu1 %3470  ;;  %v3485_v49 = vpop.xlane.xlu2 %3484 }
 0x59b   : > { %v3457_v62 = vpop.xlane.xlu0 %3456  ;;  %v3670_v18 = vperm.slane %v3471_v61, %v6579_v25  ;;  %v3683_v36 = vperm.slane %v3485_v49, %v6560_v37 }
 0x59c   : > { %v3657_v39 = vperm.slane %v3457_v62, %v6599_v58  ;;  %v4277_v62 = vld [vmem:[%s6789_s6] ss:$0 sm:$0xff] }
 0x59d   : > { %v3671_v27 = vsel %vm3593_vm10, %v3670_v18, %v3669_v19  ;;  %v3684_v9 = vsel %vm3589_vm9, %v3683_v36, %v3682_v31 }
 0x59e   : > { %v3658_v28 = vsel %vm3597_vm11, %v3657_v39, %v3656_v3 }
 0x59f   : > { %v3711_v2 = vsel %vm3710_vm15, %v3658_v28, %v3709_v40 }
 0x5a2   : > { %v3473_v48 = vpop.xlane.xlu1 %3472  ;;  %v3487_v41 = vpop.xlane.xlu2 %3486 }
 0x5a3   : > { %v3672_v6 = vperm.slane %v3473_v48, %v6599_v58  ;;  %v3499_v7 = vpop.xlane.xlu0 %3498  ;;  %v3685_v47 = vperm.slane %v3487_v41, %v6579_v25 }
 0x5a4   : > { %v3696_v10 = vperm.slane %v3499_v7, %v6528_v30 }
 0x5a5   : > { %v3673_v16 = vsel %vm3597_vm11, %v3672_v6, %v3671_v27  ;;  %v3686_v46 = vsel %vm3593_vm10, %v3685_v47, %v3684_v9 }
 0x5a6   : > { %v3713_v32 = vsel %vm3712_vm0, %v3673_v16, %v3711_v2  ;;  %v3697_v33 = vsel %vm3585_vm8, %v3696_v10, %v3695_v11 }
 0x5aa   : > { %v3489_v53 = vpop.xlane.xlu1 %3488  ;;  %v3503_v45 = vpop.xlane.xlu2 %3502 }
 0x5ab   : > { %v3687_v13 = vperm.slane %v3489_v53, %v6599_v58  ;;  %v3501_v40 = vpop.xlane.xlu0 %3500  ;;  %v3700_v0 = vperm.slane %v3503_v45, %v6579_v25  ;;  %v3761_v25 = vld [vmem:[%s6790_s7 + $0x10] sm:$0xff] }
 0x5ac   : > { %v3698_v12 = vperm.slane %v3501_v40, %v6560_v37  ;;  %3784 = vmatpush.msra.mxu1 %v3761_v25 }
 0x5ad   : > { %v3688_v14 = vsel %vm3597_vm11, %v3687_v13, %v3686_v46 }
 0x5ae   : > { %v3715_v38 = vsel %vm3714_vm1, %v3688_v14, %v3713_v32  ;;  %v3699_v15 = vsel %vm3589_vm9, %v3698_v12, %v3697_v33 }
 0x5af   : > { %v3701_v59 = vsel %vm3593_vm10, %v3700_v0, %v3699_v15 }
 0x5b3   : > { %v3505_v63 = vpop.xlane.xlu0 %3504 }
 0x5b4   : > { %v3702_v30 = vperm.slane %v3505_v63, %v6599_v58  ;;  %v3760_v58 = vld [vmem:[%s6790_s7 + $0x8] sm:$0xff] }
 0x5b5   : > { %3785 = vmatpush.msra.mxu1 %v3760_v58 }
 0x5b6   : > { %v3703_v37 = vsel %vm3597_vm11, %v3702_v30, %v3701_v59 }
 0x5b7   : > { %v3717_v61 = vsel %vm3716_vm2, %v3703_v37, %v3715_v38  ;;  %3786 = vmatpush.msra.mxu1 %v3759_v54 }
 0x5b8   : > { %v3719_v49 = vadd.f32 %v3717_v61, %v3310_v57 }
 0x5ba   : > { %3720 = vst.msk [vmem:[#allocation2] sm:$0xff] %vm1909_vm4, %v3719_v49 }
 0x5c1   : > { %v3721_v20 = vld [vmem:[#allocation2] sm:$0xff] }
 0x5c2   : > { %v3722_v5 = vmul.f32 0.0034246575, %v3721_v20 }
 0x5c4   : > { %4143 = vmatmul.msk.f32.vlgmr.msra.gmra.mxu0 %vm1909_vm4, %v3722_v5  ;;  %vm3767_vm4 = vcmask 261120  }
 0x641   : > { %v3755_v26 = vpop.f32.mrf.mxu0 }
 0x642   : > { %v3756_v39 = vadd.f32 %v4277_v62, %v3755_v26 }
 0x644   : > { %v3758_v60 = vmax.f32 %v3756_v39, 0.0 }
 0x646   : > { %4144 = vmatmul.msk.f32.vlgmr.msra.gmra.mxu1 %vm3767_vm4, %v3758_v60 }
 0x6c3   : > { %v3788_v3 = vpop.f32.mrf.mxu1 }
 0x6c4   : > { %v3789_v34 = vadd.f32 %v4278_v4, %v3788_v3 }
 0x6c6   : > { %3791 = vst [vmem:[%s7195_s24] sm:$0xff] %v3789_v34 }
 0x6c7 PF: > { %s4146_s28 = sshll.u32 %s4377_s15, 3  ;;  %s7196_s20 = sld [smem:[#allocation52_spill]] }
 0x6c8   : > { %s7197_s29 = scalar_lea.vmem [#allocation4], %s4550_s25  ;;  %s7198_s23 = sand.u32 1, %s4357_s10  }
 0x6c9   : > { %s3805_s26 = sshll.u32 %s7197_s29, 4  ;;  %s3793_s30 = scalar_lea.sflag [#allocation5], %s7198_s23  ;;  %s3806_s26 = int_to_ptr.vmem [resolvable:$true] %s3805_s26 }
 0x6cd   : > { %s3803_s12 = scalar_lea.hbm %s7196_s20, %s4146_s28  ;;  %s4299_s1 = scalar_lea.hbm %s7196_s20, 16 }
 0x6ce   : > { %s3807_s14 = sshll.u32 %s3803_s12, 4  ;;  %s3808_s14 = int_to_ptr.hbm [resolvable:$true] %s3807_s14 }
 0x6cf   : > { %s4293_s22 = sshra.s32 %s3808_s14, 4  ;;  %s4294_s22 = int_to_ptr.hbm [resolvable:$true] %s4293_s22 }
 0x6d0   : > { %s4295_s24 = scalar_lea.hbm %s4294_s22, 8  ;;  %p4300_p10 = scmp.lt.s32.totalorder %s4294_s22, %s7196_s20 }
 0x6d1   : > { %p4296_p6 = scmp.ne.s32.totalorder %s4294_s22, %s4295_s24  ;;  %p4301_p11 = scmp.lt.s32.totalorder %s4299_s1, %s4295_s24 }
 0x6d3   : > { %p4297_p8 = pnand %p4296_p6, %p4517_p7  ;;  %p4302_p13 = por %p4301_p11, %p4300_p10 }
 0x6d5   : > { %p4298_p9 = pneg %p4297_p8 }
 0x6d7   : > { %p4303_p0 = pnand %p4302_p13, %p4298_p9 }
 0x6d9   : > { %4306 = shalt.err (!%p4303_p0)
}
 0x6da   : > { %4178 = dma.vmem_to_hbm [thread:$0]  (%p4517_p7), %s3806_s26, 128, %s3808_s14, %s3793_s30  }
 0x6db PF: > { %s7199_s25 = sld [smem:[#allocation7_spill]]  ;;  %p4184_p1 = scmp.ge.s32.totalorder %s4389_s18, 2 }
 0x6dd   : > { %p4181_p2 = pnand %p4184_p1, %p4525_p12 }
 0x6df   : > { %p4182_p3 = pneg %p4181_p2 }
 0x6e1   : > { %s3819_s12 = sand.u32 1, %s7199_s25  }
 0x6e2   : > { %s3820_s0 = scalar_lea.sflag [#allocation5], %s3819_s12 }
 0x6e3   : > { %4348 = dma.done.wait (%p4182_p3), %s3820_s0, 128  }
 0x6e4   : > { %4350 = vsyncadd (%p4182_p3), %s3820_s0, 4294967168  ;;  %s22_s18 = sadd.s32 1, %s4389_s18   ;;  %s7201_s1 = sld [smem:[#allocation11_spill]] }
 0x6e5   : > { %p19_p4 = scmp.ge.s32.totalorder %s22_s18, 8   ;;  %s7202_s27 = sld [smem:[#allocation8_spill]] }
 0x6e6   : > { %s7203_s29 = sld [smem:[#allocation9_spill]]  ;;  %s7204_s30 = smov %s4357_s10 }
 0x6e7   : > { %s7205_s10 = smov %s4361_s11  ;;  %s7206_s11 = smov %s4530_s9 }
 0x6e8   : > { %s7207_s12 = smov %s4369_s13  ;;  %s7209_s14 = smov %s4381_s16 }
 0x6e9   : > { %s7210_s15 = smov %s4385_s17  ;;  %21 = sbr.rel (!%p19_p4) target bundleno = 10 (0xa), region = 149 }
 0x6ea   : > { %s7208_s13 = smov %s7201_s1 }
 0x6eb   : > { %s7211_s16 = smov %s7202_s27 }
 0x6ec   : > { %s7212_s17 = smov %s7203_s29 }
 0x6ee   :  { %3826 = vsyncpa [#allocation5], 1 }
 0x6ef   :  { %3828 = vsyncpa [#allocation5 + $0x1], 1 }

</bundles_post_ra>
